<compile_context>
chip_gen: v5e
topology: v5e:2x2
jax: 0.10.0
libtpu: 0.0.40
codegen_flags: <defaults>
</compile_context>

<pallas_src>
import functools

import jax
import jax.numpy as jnp
from jax import lax
from jax.experimental import pallas as pl
from jax.experimental.pallas import tpu as pltpu


# ---------------------------------------------------------------------------
# Pallas kernels
# ---------------------------------------------------------------------------
def _conv_bias_act_kernel(apply_leaky, x_ref, w_ref, b_ref, o_ref):
    """o = x @ w + b, optionally LeakyReLU(0.2).  x/w bf16, f32 accumulation."""
    y = jnp.dot(x_ref[...], w_ref[...], preferred_element_type=jnp.float32)
    y = y + b_ref[...]                       # f32 VPU math
    if apply_leaky:
        y = jnp.where(y >= 0, y, 0.2 * y)
    o_ref[...] = y.astype(o_ref.dtype)


def _conv_bn_leaky_kernel(patches_ref, w_ref, gamma_ref, beta_ref, o_ref):
    """Fused Conv(matmul, no bias) -> BatchNorm(batch stats) -> LeakyReLU(0.2).

    The whole [M, Cout] activation stays on-core: batch mean / biased
    variance are computed in-kernel, so nothing round-trips through HBM
    between the conv and the normalization.  All post-MXU math is f32.
    """
    y = jnp.dot(patches_ref[...], w_ref[...],
                preferred_element_type=jnp.float32)          # [M, Cout] f32
    m = jnp.mean(y, axis=0, keepdims=True)
    var = jnp.mean(jnp.square(y - m), axis=0, keepdims=True)  # biased var
    z = (y - m) * lax.rsqrt(var + 1e-5) * gamma_ref[...] + beta_ref[...]
    o_ref[...] = jnp.where(z >= 0, z, 0.2 * z).astype(o_ref.dtype)


# ---------------------------------------------------------------------------
# Wrappers around pallas_call
# ---------------------------------------------------------------------------
def _pick_tm(m):
    # Largest tile dividing M; falling back to tm == m is legal because the
    # block then equals the full array (the (8,128) rule is waived).
    for t in (512, 256, 128, 64, 32, 16, 8):
        if m % t == 0:
            return t
    return m


def conv_bias_act(patches, w_flat, bias, apply_leaky):
    """patches: [M, K] bf16, w_flat: [K, Cout] bf16, bias: [1, Cout] f32."""
    m, k = patches.shape
    cout = w_flat.shape[1]
    tm = _pick_tm(m)
    kernel = functools.partial(_conv_bias_act_kernel, apply_leaky)
    return pl.pallas_call(
        kernel,
        out_shape=jax.ShapeDtypeStruct((m, cout), jnp.float32),
        grid_spec=pltpu.PrefetchScalarGridSpec(
            num_scalar_prefetch=0,
            grid=(m // tm,),
            in_specs=[
                pl.BlockSpec((tm, k), lambda i: (i, 0)),
                pl.BlockSpec((k, cout), lambda i: (0, 0)),
                pl.BlockSpec((1, cout), lambda i: (0, 0)),
            ],
            out_specs=pl.BlockSpec((tm, cout), lambda i: (i, 0)),
        ),
        compiler_params=pltpu.CompilerParams(
            dimension_semantics=("parallel",)),
    )(patches, w_flat, bias)


def conv_bn_leaky(patches, w_flat, gamma, beta):
    """One fused pallas_call: Conv(no bias) + BN(batch stats) + LeakyReLU.

    Single invocation (batch statistics need the full M axis); the largest
    block at N=2 is 512x128 bf16 patches (~128 KB), comfortably within VMEM
    on v5e/v6e and on v7x's 64 MiB.  If batch size grows, switch to a
    two-pass grid (partial sums, then normalize).
    """
    m, _ = patches.shape
    cout = w_flat.shape[1]
    vmem = pl.BlockSpec(memory_space=pltpu.MemorySpace.VMEM)
    return pl.pallas_call(
        _conv_bn_leaky_kernel,
        out_shape=jax.ShapeDtypeStruct((m, cout), jnp.float32),
        in_specs=[vmem, vmem, vmem, vmem],
        out_specs=vmem,
    )(patches, w_flat, gamma, beta)


# ---------------------------------------------------------------------------
# Plain-JAX glue: im2col patch extraction (NHWC), emitted in bf16
# ---------------------------------------------------------------------------
def im2col(x, k, stride, pad):
    n, h, w, c = x.shape
    xp = jnp.pad(x, ((0, 0), (pad, pad), (pad, pad), (0, 0)))
    ho = (h + 2 * pad - k) // stride + 1
    wo = (w + 2 * pad - k) // stride + 1
    cols = []
    for i in range(k):
        for j in range(k):
            cols.append(xp[:, i:i + stride * ho:stride,
                           j:j + stride * wo:stride, :])
    patches = jnp.stack(cols, axis=3)                  # N, Ho, Wo, k*k, C
    patches = patches.reshape(n * ho * wo, k * k * c)  # K ordered (kh, kw, C)
    return patches, (n, ho, wo)


# ---------------------------------------------------------------------------
# Critic forward (Pallas) and pure-JAX reference
# ---------------------------------------------------------------------------
def _w_bf16(w):
    cout = w.shape[-1]
    return w.reshape(-1, cout).astype(jnp.bfloat16), cout


@jax.jit
def critic_forward(x_nhwc, params):
    # Layer 1: Conv(k4,s2,p1) + bias + LeakyReLU(0.2)
    p, shp = im2col(x_nhwc.astype(jnp.bfloat16), 4, 2, 1)
    wf, cout = _w_bf16(params["w1"])
    y = conv_bias_act(p, wf, params["b1"].reshape(1, cout), True)
    x = y.reshape(*shp, cout)

    # Blocks 2-4: one fused Pallas kernel each (Conv -> BN(batch) -> LeakyReLU)
    for name in ("2", "3", "4"):
        p, shp = im2col(x.astype(jnp.bfloat16), 4, 2, 1)
        wf, cout = _w_bf16(params["w" + name])
        y = conv_bn_leaky(p, wf,
                          params["g" + name].reshape(1, cout),
                          params["bt" + name].reshape(1, cout))
        x = y.reshape(*shp, cout)

    # Layer 5: Conv(k4,s2,p0) + bias (no activation) -> N x 1 x 1 x 1
    p, shp = im2col(x.astype(jnp.bfloat16), 4, 2, 0)
    wf, cout = _w_bf16(params["w5"])
    y = conv_bias_act(p, wf, params["b5"].reshape(1, cout), False)
    return y.reshape(*shp, 1)   # NHWC (== NCHW here since H=W=C=1)


def critic_ref(x_nhwc, params):
    """Full-precision f32 reference (golden values)."""
    def conv(x, w, stride, pad):
        return lax.conv_general_dilated(
            x, w, (stride, stride), [(pad, pad), (pad, pad)],
            dimension_numbers=("NHWC", "HWIO", "NHWC"),
            precision=lax.Precision.HIGHEST)

    def leaky(z):
        return jnp.where(z >= 0, z, 0.2 * z)

    y = leaky(conv(x_nhwc, params["w1"], 2, 1) + params["b1"])
    for name in ("2", "3", "4"):
        y = conv(y, params["w" + name], 2, 1)
        m = jnp.mean(y, axis=(0, 1, 2), keepdims=True)
        v = jnp.mean(jnp.square(y - m), axis=(0, 1, 2), keepdims=True)
        y = (y - m) * lax.rsqrt(v + 1e-5) * params["g" + name] + params["bt" + name]
        y = leaky(y)
    return conv(y, params["w5"], 2, 0) + params["b5"]


# ---------------------------------------------------------------------------
if __name__ == "__main__":
    N, C_IMG, FD = 2, 3, 8   # batch, channels_image, features_d (small)

    keys = iter(jax.random.split(jax.random.PRNGKey(0), 32))
    layer_dims = [
        ("1", C_IMG, FD, True),        # conv + bias + LeakyReLU
        ("2", FD, FD * 2, False),      # conv(no bias) + BN + LeakyReLU
        ("3", FD * 2, FD * 4, False),
        ("4", FD * 4, FD * 8, False),
        ("5", FD * 8, 1, True),        # conv + bias (no activation)
    ]
    params = {}
    for name, cin, cout, has_bias in layer_dims:
        params["w" + name] = 0.02 * jax.random.normal(
            next(keys), (4, 4, cin, cout), jnp.float32)       # [kh, kw, Cin, Cout]
        if has_bias:
            params["b" + name] = 0.02 * jax.random.normal(
                next(keys), (cout,), jnp.float32)
        else:
            params["g" + name] = 1.0 + 0.1 * jax.random.normal(
                next(keys), (cout,), jnp.float32)             # BN gamma
            params["bt" + name] = 0.1 * jax.random.normal(
                next(keys), (cout,), jnp.float32)             # BN beta

    # Input in PyTorch NCHW convention, converted to NHWC for the kernel path.
    x_nchw = jax.random.normal(next(keys), (N, C_IMG, 64, 64), jnp.float32)
    x_nhwc = jnp.transpose(x_nchw, (0, 2, 3, 1))

    out_nhwc = jax.block_until_ready(critic_forward(x_nhwc, params))
    out_nchw = jnp.transpose(out_nhwc, (0, 3, 1, 2))   # N x 1 x 1 x 1

    ref_nhwc = critic_ref(x_nhwc, params)

    assert out_nchw.shape == (N, 1, 1, 1), out_nchw.shape
    assert bool(jnp.all(jnp.isfinite(out_nchw)))
    # Tolerance reflects the deliberate bf16-at-the-MXU tradeoff (per perf
    # review) vs. the f32/HIGHEST golden reference through 5 conv layers.
    assert bool(jnp.allclose(out_nhwc, ref_nhwc, atol=5e-2, rtol=5e-2)), (
        float(jnp.max(jnp.abs(out_nhwc - ref_nhwc))))
    print("KERNEL_OK")
</pallas_src>

<mosaic_0001>
module attributes {stable_mosaic.version = 11 : i64} {
  func.func @_conv_bias_act_kernel(%arg0: i32, %arg1: memref<512x48xbf16, #tpu.memory_space<vmem>>, %arg2: memref<48x8xbf16, #tpu.memory_space<vmem>>, %arg3: memref<1x8xf32, #tpu.memory_space<vmem>>, %arg4: memref<512x8xf32, #tpu.memory_space<vmem>>) attributes {dimension_semantics = [#tpu.dimension_semantics<parallel>], iteration_bounds = array<i64: 4>, scalar_prefetch = 0 : i64, scratch_operands = 0 : i64, tpu.core_type = #tpu.core_type<tc>, window_params = [{transform_indices = @transform_0, window_bounds = array<i64: 512, 48>}, {pipeline_mode = #tpu.pipeline_mode<synchronous>, transform_indices = @transform_1, window_bounds = array<i64: 48, 8>}, {pipeline_mode = #tpu.pipeline_mode<synchronous>, transform_indices = @transform_2, window_bounds = array<i64: 1, 8>}, {transform_indices = @transform_3, window_bounds = array<i64: 512, 8>}]} {
    %c0 = arith.constant 0 : index
    %c0_0 = arith.constant 0 : index
    %0 = vector.load %arg1[%c0, %c0_0] : memref<512x48xbf16, #tpu.memory_space<vmem>>, vector<512x48xbf16>
    %c0_1 = arith.constant 0 : index
    %c0_2 = arith.constant 0 : index
    %1 = vector.load %arg2[%c0_1, %c0_2] : memref<48x8xbf16, #tpu.memory_space<vmem>>, vector<48x8xbf16>
    %cst = arith.constant dense<0.000000e+00> : vector<512x8xf32>
    %2 = tpu.matmul %0, %1, %cst {dimension_numbers = #tpu.dot_dimension_numbers<[1], [0], [0], [1], [0, 0, 1, 1], [], []>} : vector<512x48xbf16>, vector<48x8xbf16>, vector<512x8xf32> -> vector<512x8xf32>
    %c0_3 = arith.constant 0 : index
    %c0_4 = arith.constant 0 : index
    %3 = vector.load %arg3[%c0_3, %c0_4] : memref<1x8xf32, #tpu.memory_space<vmem>>, vector<1x8xf32>
    %4 = vector.broadcast %3 : vector<1x8xf32> to vector<512x8xf32>
    %5 = arith.addf %2, %4 : vector<512x8xf32>
    %cst_5 = arith.constant 0.000000e+00 : f32
    %6 = vector.broadcast %cst_5 : f32 to vector<512x8xf32>
    %7 = arith.cmpf oge, %5, %6 : vector<512x8xf32>
    %cst_6 = arith.constant 2.000000e-01 : f32
    %8 = vector.broadcast %cst_6 : f32 to vector<512x8xf32>
    %9 = arith.mulf %8, %5 : vector<512x8xf32>
    %10 = arith.select %7, %5, %9 : vector<512x8xi1>, vector<512x8xf32>
    %c0_7 = arith.constant 0 : index
    %c0_8 = arith.constant 0 : index
    %11 = vector.load %arg4[%c0_7, %c0_8] : memref<512x8xf32, #tpu.memory_space<vmem>>, vector<512x8xf32>
    tpu.vector_store %arg4[%c0_7, %c0_8], %10 {strides = array<i32>} : memref<512x8xf32, #tpu.memory_space<vmem>>, vector<512x8xf32>,
    return
  }
  func.func @transform_0(%arg0: i32) -> (i32, i32) {
    %c0_i32 = arith.constant 0 : i32
    %c0_i32_0 = arith.constant 0 : i32
    return %arg0, %c0_i32 : i32, i32
  }
  func.func @transform_1(%arg0: i32) -> (i32, i32) {
    %c0_i32 = arith.constant 0 : i32
    %c0_i32_0 = arith.constant 0 : i32
    %c0_i32_1 = arith.constant 0 : i32
    return %c0_i32, %c0_i32_0 : i32, i32
  }
  func.func @transform_2(%arg0: i32) -> (i32, i32) {
    %c0_i32 = arith.constant 0 : i32
    %c0_i32_0 = arith.constant 0 : i32
    %c0_i32_1 = arith.constant 0 : i32
    return %c0_i32, %c0_i32_0 : i32, i32
  }
  func.func @transform_3(%arg0: i32) -> (i32, i32) {
    %c0_i32 = arith.constant 0 : i32
    %c0_i32_0 = arith.constant 0 : i32
    return %arg0, %c0_i32 : i32, i32
  }
}

module attributes {stable_mosaic.version = 11 : i64} {
  func.func @_conv_bn_leaky_kernel(%arg0: memref<512x128xbf16, #tpu.memory_space<vmem>>, %arg1: memref<128x16xbf16, #tpu.memory_space<vmem>>, %arg2: memref<1x16xf32, #tpu.memory_space<vmem>>, %arg3: memref<1x16xf32, #tpu.memory_space<vmem>>, %arg4: memref<512x16xf32, #tpu.memory_space<vmem>>) attributes {dimension_semantics = [], scalar_prefetch = 0 : i64, scratch_operands = 0 : i64, tpu.core_type = #tpu.core_type<tc>} {
    %c0 = arith.constant 0 : index
    %c0_0 = arith.constant 0 : index
    %0 = vector.load %arg0[%c0, %c0_0] : memref<512x128xbf16, #tpu.memory_space<vmem>>, vector<512x128xbf16>
    %c0_1 = arith.constant 0 : index
    %c0_2 = arith.constant 0 : index
    %1 = vector.load %arg1[%c0_1, %c0_2] : memref<128x16xbf16, #tpu.memory_space<vmem>>, vector<128x16xbf16>
    %cst = arith.constant dense<0.000000e+00> : vector<512x16xf32>
    %2 = tpu.matmul %0, %1, %cst {dimension_numbers = #tpu.dot_dimension_numbers<[1], [0], [0], [1], [0, 0, 1, 1], [], []>} : vector<512x128xbf16>, vector<128x16xbf16>, vector<512x16xf32> -> vector<512x16xf32>
    %cst_3 = arith.constant dense<0.000000e+00> : vector<16xf32>
    %3 = vector.multi_reduction <add>, %2, %cst_3 [0] : vector<512x16xf32> to vector<16xf32>
    %4 = vector.shape_cast %3 : vector<16xf32> to vector<1x16xf32>
    %cst_4 = arith.constant 5.120000e+02 : f32
    %5 = vector.broadcast %cst_4 : f32 to vector<1x16xf32>
    %6 = arith.divf %4, %5 : vector<1x16xf32>
    %7 = vector.broadcast %6 : vector<1x16xf32> to vector<512x16xf32>
    %8 = arith.subf %2, %7 : vector<512x16xf32>
    %9 = arith.mulf %8, %8 : vector<512x16xf32>
    %cst_5 = arith.constant dense<0.000000e+00> : vector<16xf32>
    %10 = vector.multi_reduction <add>, %9, %cst_5 [0] : vector<512x16xf32> to vector<16xf32>
    %11 = vector.shape_cast %10 : vector<16xf32> to vector<1x16xf32>
    %cst_6 = arith.constant 5.120000e+02 : f32
    %12 = vector.broadcast %cst_6 : f32 to vector<1x16xf32>
    %13 = arith.divf %11, %12 : vector<1x16xf32>
    %14 = vector.broadcast %6 : vector<1x16xf32> to vector<512x16xf32>
    %15 = arith.subf %2, %14 : vector<512x16xf32>
    %cst_7 = arith.constant 9.99999974E-6 : f32
    %16 = vector.broadcast %cst_7 : f32 to vector<1x16xf32>
    %17 = arith.addf %13, %16 : vector<1x16xf32>
    %18 = math.rsqrt %17 : vector<1x16xf32>
    %19 = vector.broadcast %18 : vector<1x16xf32> to vector<512x16xf32>
    %20 = arith.mulf %15, %19 : vector<512x16xf32>
    %c0_8 = arith.constant 0 : index
    %c0_9 = arith.constant 0 : index
    %21 = vector.load %arg2[%c0_8, %c0_9] : memref<1x16xf32, #tpu.memory_space<vmem>>, vector<1x16xf32>
    %22 = vector.broadcast %21 : vector<1x16xf32> to vector<512x16xf32>
    %23 = arith.mulf %20, %22 : vector<512x16xf32>
    %c0_10 = arith.constant 0 : index
    %c0_11 = arith.constant 0 : index
    %24 = vector.load %arg3[%c0_10, %c0_11] : memref<1x16xf32, #tpu.memory_space<vmem>>, vector<1x16xf32>
    %25 = vector.broadcast %24 : vector<1x16xf32> to vector<512x16xf32>
    %26 = arith.addf %23, %25 : vector<512x16xf32>
    %cst_12 = arith.constant 0.000000e+00 : f32
    %27 = vector.broadcast %cst_12 : f32 to vector<512x16xf32>
    %28 = arith.cmpf oge, %26, %27 : vector<512x16xf32>
    %cst_13 = arith.constant 2.000000e-01 : f32
    %29 = vector.broadcast %cst_13 : f32 to vector<512x16xf32>
    %30 = arith.mulf %29, %26 : vector<512x16xf32>
    %31 = arith.select %28, %26, %30 : vector<512x16xi1>, vector<512x16xf32>
    %c0_14 = arith.constant 0 : index
    %c0_15 = arith.constant 0 : index
    %32 = vector.load %arg4[%c0_14, %c0_15] : memref<512x16xf32, #tpu.memory_space<vmem>>, vector<512x16xf32>
    tpu.vector_store %arg4[%c0_14, %c0_15], %31 {strides = array<i32>} : memref<512x16xf32, #tpu.memory_space<vmem>>, vector<512x16xf32>,
    return
  }
}

module attributes {stable_mosaic.version = 11 : i64} {
  func.func @_conv_bn_leaky_kernel(%arg0: memref<128x256xbf16, #tpu.memory_space<vmem>>, %arg1: memref<256x32xbf16, #tpu.memory_space<vmem>>, %arg2: memref<1x32xf32, #tpu.memory_space<vmem>>, %arg3: memref<1x32xf32, #tpu.memory_space<vmem>>, %arg4: memref<128x32xf32, #tpu.memory_space<vmem>>) attributes {dimension_semantics = [], scalar_prefetch = 0 : i64, scratch_operands = 0 : i64, tpu.core_type = #tpu.core_type<tc>} {
    %c0 = arith.constant 0 : index
    %c0_0 = arith.constant 0 : index
    %0 = vector.load %arg0[%c0, %c0_0] : memref<128x256xbf16, #tpu.memory_space<vmem>>, vector<128x256xbf16>
    %c0_1 = arith.constant 0 : index
    %c0_2 = arith.constant 0 : index
    %1 = vector.load %arg1[%c0_1, %c0_2] : memref<256x32xbf16, #tpu.memory_space<vmem>>, vector<256x32xbf16>
    %cst = arith.constant dense<0.000000e+00> : vector<128x32xf32>
    %2 = tpu.matmul %0, %1, %cst {dimension_numbers = #tpu.dot_dimension_numbers<[1], [0], [0], [1], [0, 0, 1, 1], [], []>} : vector<128x256xbf16>, vector<256x32xbf16>, vector<128x32xf32> -> vector<128x32xf32>
    %cst_3 = arith.constant dense<0.000000e+00> : vector<32xf32>
    %3 = vector.multi_reduction <add>, %2, %cst_3 [0] : vector<128x32xf32> to vector<32xf32>
    %4 = vector.shape_cast %3 : vector<32xf32> to vector<1x32xf32>
    %cst_4 = arith.constant 1.280000e+02 : f32
    %5 = vector.broadcast %cst_4 : f32 to vector<1x32xf32>
    %6 = arith.divf %4, %5 : vector<1x32xf32>
    %7 = vector.broadcast %6 : vector<1x32xf32> to vector<128x32xf32>
    %8 = arith.subf %2, %7 : vector<128x32xf32>
    %9 = arith.mulf %8, %8 : vector<128x32xf32>
    %cst_5 = arith.constant dense<0.000000e+00> : vector<32xf32>
    %10 = vector.multi_reduction <add>, %9, %cst_5 [0] : vector<128x32xf32> to vector<32xf32>
    %11 = vector.shape_cast %10 : vector<32xf32> to vector<1x32xf32>
    %cst_6 = arith.constant 1.280000e+02 : f32
    %12 = vector.broadcast %cst_6 : f32 to vector<1x32xf32>
    %13 = arith.divf %11, %12 : vector<1x32xf32>
    %14 = vector.broadcast %6 : vector<1x32xf32> to vector<128x32xf32>
    %15 = arith.subf %2, %14 : vector<128x32xf32>
    %cst_7 = arith.constant 9.99999974E-6 : f32
    %16 = vector.broadcast %cst_7 : f32 to vector<1x32xf32>
    %17 = arith.addf %13, %16 : vector<1x32xf32>
    %18 = math.rsqrt %17 : vector<1x32xf32>
    %19 = vector.broadcast %18 : vector<1x32xf32> to vector<128x32xf32>
    %20 = arith.mulf %15, %19 : vector<128x32xf32>
    %c0_8 = arith.constant 0 : index
    %c0_9 = arith.constant 0 : index
    %21 = vector.load %arg2[%c0_8, %c0_9] : memref<1x32xf32, #tpu.memory_space<vmem>>, vector<1x32xf32>
    %22 = vector.broadcast %21 : vector<1x32xf32> to vector<128x32xf32>
    %23 = arith.mulf %20, %22 : vector<128x32xf32>
    %c0_10 = arith.constant 0 : index
    %c0_11 = arith.constant 0 : index
    %24 = vector.load %arg3[%c0_10, %c0_11] : memref<1x32xf32, #tpu.memory_space<vmem>>, vector<1x32xf32>
    %25 = vector.broadcast %24 : vector<1x32xf32> to vector<128x32xf32>
    %26 = arith.addf %23, %25 : vector<128x32xf32>
    %cst_12 = arith.constant 0.000000e+00 : f32
    %27 = vector.broadcast %cst_12 : f32 to vector<128x32xf32>
    %28 = arith.cmpf oge, %26, %27 : vector<128x32xf32>
    %cst_13 = arith.constant 2.000000e-01 : f32
    %29 = vector.broadcast %cst_13 : f32 to vector<128x32xf32>
    %30 = arith.mulf %29, %26 : vector<128x32xf32>
    %31 = arith.select %28, %26, %30 : vector<128x32xi1>, vector<128x32xf32>
    %c0_14 = arith.constant 0 : index
    %c0_15 = arith.constant 0 : index
    %32 = vector.load %arg4[%c0_14, %c0_15] : memref<128x32xf32, #tpu.memory_space<vmem>>, vector<128x32xf32>
    tpu.vector_store %arg4[%c0_14, %c0_15], %31 {strides = array<i32>} : memref<128x32xf32, #tpu.memory_space<vmem>>, vector<128x32xf32>,
    return
  }
}

module attributes {stable_mosaic.version = 11 : i64} {
  func.func @_conv_bn_leaky_kernel(%arg0: memref<32x512xbf16, #tpu.memory_space<vmem>>, %arg1: memref<512x64xbf16, #tpu.memory_space<vmem>>, %arg2: memref<1x64xf32, #tpu.memory_space<vmem>>, %arg3: memref<1x64xf32, #tpu.memory_space<vmem>>, %arg4: memref<32x64xf32, #tpu.memory_space<vmem>>) attributes {dimension_semantics = [], scalar_prefetch = 0 : i64, scratch_operands = 0 : i64, tpu.core_type = #tpu.core_type<tc>} {
    %c0 = arith.constant 0 : index
    %c0_0 = arith.constant 0 : index
    %0 = vector.load %arg0[%c0, %c0_0] : memref<32x512xbf16, #tpu.memory_space<vmem>>, vector<32x512xbf16>
    %c0_1 = arith.constant 0 : index
    %c0_2 = arith.constant 0 : index
    %1 = vector.load %arg1[%c0_1, %c0_2] : memref<512x64xbf16, #tpu.memory_space<vmem>>, vector<512x64xbf16>
    %cst = arith.constant dense<0.000000e+00> : vector<32x64xf32>
    %2 = tpu.matmul %0, %1, %cst {dimension_numbers = #tpu.dot_dimension_numbers<[1], [0], [0], [1], [0, 0, 1, 1], [], []>} : vector<32x512xbf16>, vector<512x64xbf16>, vector<32x64xf32> -> vector<32x64xf32>
    %cst_3 = arith.constant dense<0.000000e+00> : vector<64xf32>
    %3 = vector.multi_reduction <add>, %2, %cst_3 [0] : vector<32x64xf32> to vector<64xf32>
    %4 = vector.shape_cast %3 : vector<64xf32> to vector<1x64xf32>
    %cst_4 = arith.constant 3.200000e+01 : f32
    %5 = vector.broadcast %cst_4 : f32 to vector<1x64xf32>
    %6 = arith.divf %4, %5 : vector<1x64xf32>
    %7 = vector.broadcast %6 : vector<1x64xf32> to vector<32x64xf32>
    %8 = arith.subf %2, %7 : vector<32x64xf32>
    %9 = arith.mulf %8, %8 : vector<32x64xf32>
    %cst_5 = arith.constant dense<0.000000e+00> : vector<64xf32>
    %10 = vector.multi_reduction <add>, %9, %cst_5 [0] : vector<32x64xf32> to vector<64xf32>
    %11 = vector.shape_cast %10 : vector<64xf32> to vector<1x64xf32>
    %cst_6 = arith.constant 3.200000e+01 : f32
    %12 = vector.broadcast %cst_6 : f32 to vector<1x64xf32>
    %13 = arith.divf %11, %12 : vector<1x64xf32>
    %14 = vector.broadcast %6 : vector<1x64xf32> to vector<32x64xf32>
    %15 = arith.subf %2, %14 : vector<32x64xf32>
    %cst_7 = arith.constant 9.99999974E-6 : f32
    %16 = vector.broadcast %cst_7 : f32 to vector<1x64xf32>
    %17 = arith.addf %13, %16 : vector<1x64xf32>
    %18 = math.rsqrt %17 : vector<1x64xf32>
    %19 = vector.broadcast %18 : vector<1x64xf32> to vector<32x64xf32>
    %20 = arith.mulf %15, %19 : vector<32x64xf32>
    %c0_8 = arith.constant 0 : index
    %c0_9 = arith.constant 0 : index
    %21 = vector.load %arg2[%c0_8, %c0_9] : memref<1x64xf32, #tpu.memory_space<vmem>>, vector<1x64xf32>
    %22 = vector.broadcast %21 : vector<1x64xf32> to vector<32x64xf32>
    %23 = arith.mulf %20, %22 : vector<32x64xf32>
    %c0_10 = arith.constant 0 : index
    %c0_11 = arith.constant 0 : index
    %24 = vector.load %arg3[%c0_10, %c0_11] : memref<1x64xf32, #tpu.memory_space<vmem>>, vector<1x64xf32>
    %25 = vector.broadcast %24 : vector<1x64xf32> to vector<32x64xf32>
    %26 = arith.addf %23, %25 : vector<32x64xf32>
    %cst_12 = arith.constant 0.000000e+00 : f32
    %27 = vector.broadcast %cst_12 : f32 to vector<32x64xf32>
    %28 = arith.cmpf oge, %26, %27 : vector<32x64xf32>
    %cst_13 = arith.constant 2.000000e-01 : f32
    %29 = vector.broadcast %cst_13 : f32 to vector<32x64xf32>
    %30 = arith.mulf %29, %26 : vector<32x64xf32>
    %31 = arith.select %28, %26, %30 : vector<32x64xi1>, vector<32x64xf32>
    %c0_14 = arith.constant 0 : index
    %c0_15 = arith.constant 0 : index
    %32 = vector.load %arg4[%c0_14, %c0_15] : memref<32x64xf32, #tpu.memory_space<vmem>>, vector<32x64xf32>
    tpu.vector_store %arg4[%c0_14, %c0_15], %31 {strides = array<i32>} : memref<32x64xf32, #tpu.memory_space<vmem>>, vector<32x64xf32>,
    return
  }
}

module attributes {stable_mosaic.version = 11 : i64} {
  func.func @_conv_bias_act_kernel(%arg0: i32, %arg1: memref<2x1024xbf16, #tpu.memory_space<vmem>>, %arg2: memref<1024x1xbf16, #tpu.memory_space<vmem>>, %arg3: memref<1x1xf32, #tpu.memory_space<vmem>>, %arg4: memref<2x1xf32, #tpu.memory_space<vmem>>) attributes {dimension_semantics = [#tpu.dimension_semantics<parallel>], iteration_bounds = array<i64: 1>, scalar_prefetch = 0 : i64, scratch_operands = 0 : i64, tpu.core_type = #tpu.core_type<tc>, window_params = [{transform_indices = @transform_0, window_bounds = array<i64: 2, 1024>}, {pipeline_mode = #tpu.pipeline_mode<synchronous>, transform_indices = @transform_1, window_bounds = array<i64: 1024, 1>}, {pipeline_mode = #tpu.pipeline_mode<synchronous>, transform_indices = @transform_2, window_bounds = array<i64: 1, 1>}, {transform_indices = @transform_3, window_bounds = array<i64: 2, 1>}]} {
    %c0 = arith.constant 0 : index
    %c0_0 = arith.constant 0 : index
    %0 = vector.load %arg1[%c0, %c0_0] : memref<2x1024xbf16, #tpu.memory_space<vmem>>, vector<2x1024xbf16>
    %c0_1 = arith.constant 0 : index
    %c0_2 = arith.constant 0 : index
    %1 = vector.load %arg2[%c0_1, %c0_2] : memref<1024x1xbf16, #tpu.memory_space<vmem>>, vector<1024x1xbf16>
    %cst = arith.constant dense<0.000000e+00> : vector<2x1xf32>
    %2 = tpu.matmul %0, %1, %cst {dimension_numbers = #tpu.dot_dimension_numbers<[1], [0], [0], [1], [0, 0, 1, 1], [], []>} : vector<2x1024xbf16>, vector<1024x1xbf16>, vector<2x1xf32> -> vector<2x1xf32>
    %c0_3 = arith.constant 0 : index
    %c0_4 = arith.constant 0 : index
    %3 = vector.load %arg3[%c0_3, %c0_4] : memref<1x1xf32, #tpu.memory_space<vmem>>, vector<1x1xf32>
    %4 = vector.broadcast %3 : vector<1x1xf32> to vector<2x1xf32>
    %5 = arith.addf %2, %4 : vector<2x1xf32>
    %c0_5 = arith.constant 0 : index
    %c0_6 = arith.constant 0 : index
    %6 = vector.load %arg4[%c0_5, %c0_6] : memref<2x1xf32, #tpu.memory_space<vmem>>, vector<2x1xf32>
    tpu.vector_store %arg4[%c0_5, %c0_6], %5 {strides = array<i32>} : memref<2x1xf32, #tpu.memory_space<vmem>>, vector<2x1xf32>,
    return
  }
  func.func @transform_0(%arg0: i32) -> (i32, i32) {
    %c0_i32 = arith.constant 0 : i32
    %c0_i32_0 = arith.constant 0 : i32
    return %arg0, %c0_i32 : i32, i32
  }
  func.func @transform_1(%arg0: i32) -> (i32, i32) {
    %c0_i32 = arith.constant 0 : i32
    %c0_i32_0 = arith.constant 0 : i32
    %c0_i32_1 = arith.constant 0 : i32
    return %c0_i32, %c0_i32_0 : i32, i32
  }
  func.func @transform_2(%arg0: i32) -> (i32, i32) {
    %c0_i32 = arith.constant 0 : i32
    %c0_i32_0 = arith.constant 0 : i32
    %c0_i32_1 = arith.constant 0 : i32
    return %c0_i32, %c0_i32_0 : i32, i32
  }
  func.func @transform_3(%arg0: i32) -> (i32, i32) {
    %c0_i32 = arith.constant 0 : i32
    %c0_i32_0 = arith.constant 0 : i32
    return %arg0, %c0_i32 : i32, i32
  }
}

</mosaic_0001>

<bundles_post_ra>
// kernel: critic_forward.5
= control target key start
LH: loop header
LB: loop body
LE: loop exit
PB: predicated region body
PF: predicated region fallthrough
CT: control target
= control target key end

     0   :  { %s1270_s12 = smov 0   ;;  %s1565_s0 = inlined_call_operand.vmem [shape: bf16[2048,48], index: 0, kind: input, shape index: {}]   ;;  %s1566_s1 = inlined_call_operand.vmem [shape: bf16[48,8], index: 1, kind: input, shape index: {}]   ;;  %s1567_s2 = inlined_call_operand.vmem [shape: f32[1,8], index: 2, kind: input, shape index: {}]   ;;  %s1568_s3 = inlined_call_operand.vmem [shape: f32[2048,8], index: 3, kind: output, shape index: {}]  }
   0x1 LB: > { %s1006_s13 = sadd.s32 4294967295, %s1248_s12   ;;  %p1010_p0 = scmp.ge.s32.totalorder %s1248_s12, 1  ;;  %s1248_s12 = sphi %s1270_s12, %s13_s12  }
   0x2   : > { %p138_p1 = scmp.lt.s32.totalorder %s1248_s12, 5 }
   0x4   : > { %p139_p2 = pnand %p1010_p0, %p138_p1 }
   0x5   : > { %s1011_s16 = sshll.u32 (!%p139_p2), %s1006_s13, 6 }
   0x6   : > { %142 = sbr.rel (%p139_p2) target bundleno = 283 (0x11b), region = 32  ;;  %p163_p3 = scmp.lt.s32.totalorder (!%p139_p2), %s1011_s16, 255 }
   0xb   : > { %v1223_v0 = vld [vmem:[%s1566_s1 + $0x10] sm:$0xff]  ;;  %v1222_v1 = vld [vmem:[%s1566_s1 + $0x8] sm:$0xff]  ;;  %s1570_s16 = smov (!%p163_p3, %s1011_s16), 255  ;;  %v1221_v2 = vld [vmem:[%s1566_s1] sm:$0xff]  ;;  %vm427_vm0 = vcmask 392192   ;;  %vm885_vm1 = vcmask 64512  }
   0xc   : > { %529 = vmatpush.bf16.msra.mxu0 %v1223_v0  ;;  %1224 = vmatpush.bf16.msra.mxu1 %v1223_v0  ;;  %s1012_s19 = sshll.u32 %s1570_s16, 2  ;;  %v1362_v35 = vld [vmem:[%s1567_s2] ss:$0 sm:$0xff]  ;;  %s1014_s27 = sshll.u32 %s1570_s16, 3 }
   0xd   : > { %1225 = vmatpush.bf16.msra.mxu2 %v1223_v0  ;;  %1226 = vmatpush.bf16.msra.mxu3 %v1223_v0  ;;  %s1293_s24 = scalar_lea.vmem %s1565_s0, %s1012_s19  ;;  %s1370_s30 = scalar_lea.vmem %s1568_s3, %s1014_s27 }
   0xe   : > { %v1189_v3 = vld [vmem:[%s1293_s24] sm:$0xff]  ;;  %v1190_v7 = vld [vmem:[%s1293_s24 + $0x8] sm:$0xff]  ;;  %v1191_v11 = vld [vmem:[%s1293_s24 + $0x10] sm:$0xff] }
   0xf   : > { %v1197_v4 = vld [vmem:[%s1293_s24 + $0x40] sm:$0xff]  ;;  %v1198_v8 = vld [vmem:[%s1293_s24 + $0x48] sm:$0xff]  ;;  %v1199_v12 = vld [vmem:[%s1293_s24 + $0x50] sm:$0xff] }
  0x10   : > { %530 = vmatpush.bf16.msra.mxu0 %v1222_v1  ;;  %1227 = vmatpush.bf16.msra.mxu1 %v1222_v1  ;;  %v1205_v5 = vld [vmem:[%s1293_s24 + $0x80] sm:$0xff]  ;;  %v1206_v9 = vld [vmem:[%s1293_s24 + $0x88] sm:$0xff]  ;;  %v1207_v13 = vld [vmem:[%s1293_s24 + $0x90] sm:$0xff] }
  0x11   : > { %1228 = vmatpush.bf16.msra.mxu2 %v1222_v1  ;;  %1229 = vmatpush.bf16.msra.mxu3 %v1222_v1  ;;  %v1213_v6 = vld [vmem:[%s1293_s24 + $0xc0] sm:$0xff]  ;;  %v1214_v10 = vld [vmem:[%s1293_s24 + $0xc8] sm:$0xff]  ;;  %v1215_v14 = vld [vmem:[%s1293_s24 + $0xd0] sm:$0xff] }
  0x12   : > { %v1192_v15 = vld [vmem:[%s1293_s24 + $0x18] sm:$0xff]  ;;  %v1193_v19 = vld [vmem:[%s1293_s24 + $0x20] sm:$0xff]  ;;  %v1194_v23 = vld [vmem:[%s1293_s24 + $0x28] sm:$0xff] }
  0x13   : > { %v1200_v16 = vld [vmem:[%s1293_s24 + $0x58] sm:$0xff]  ;;  %v1201_v20 = vld [vmem:[%s1293_s24 + $0x60] sm:$0xff]  ;;  %v1202_v24 = vld [vmem:[%s1293_s24 + $0x68] sm:$0xff] }
  0x14   : > { %531 = vmatpush.bf16.msra.mxu0 %v1221_v2  ;;  %1230 = vmatpush.bf16.msra.mxu1 %v1221_v2  ;;  %v1208_v17 = vld [vmem:[%s1293_s24 + $0x98] sm:$0xff]  ;;  %v1209_v21 = vld [vmem:[%s1293_s24 + $0xa0] sm:$0xff]  ;;  %v1210_v25 = vld [vmem:[%s1293_s24 + $0xa8] sm:$0xff] }
  0x15   : > { %1231 = vmatpush.bf16.msra.mxu2 %v1221_v2  ;;  %1232 = vmatpush.bf16.msra.mxu3 %v1221_v2  ;;  %v1216_v18 = vld [vmem:[%s1293_s24 + $0xd8] sm:$0xff]  ;;  %v1217_v22 = vld [vmem:[%s1293_s24 + $0xe0] sm:$0xff]  ;;  %v1218_v26 = vld [vmem:[%s1293_s24 + $0xe8] sm:$0xff] }
  0x16   : > { %v1195_v27 = vld [vmem:[%s1293_s24 + $0x30] sm:$0xff]  ;;  %v1196_v31 = vld [vmem:[%s1293_s24 + $0x38] sm:$0xff] }
  0x17   : > { %1155 = vmatmul.msk.bf16.vlgmr.msra.gmra.mxu0 %vm427_vm0, %v1189_v3  ;;  %1163 = vmatmul.msk.bf16.vlgmr.msra.gmra.mxu1 %vm427_vm0, %v1197_v4  ;;  %v1203_v28 = vld [vmem:[%s1293_s24 + $0x70] sm:$0xff]  ;;  %v1204_v32 = vld [vmem:[%s1293_s24 + $0x78] sm:$0xff] }
  0x18   : > { %1171 = vmatmul.msk.bf16.vlgmr.msra.gmra.mxu2 %vm427_vm0, %v1205_v5  ;;  %1179 = vmatmul.msk.bf16.vlgmr.msra.gmra.mxu3 %vm427_vm0, %v1213_v6  ;;  %v1211_v29 = vld [vmem:[%s1293_s24 + $0xb0] sm:$0xff]  ;;  %v1212_v33 = vld [vmem:[%s1293_s24 + $0xb8] sm:$0xff] }
  0x19   : > { %v1219_v30 = vld [vmem:[%s1293_s24 + $0xf0] sm:$0xff]  ;;  %v1220_v34 = vld [vmem:[%s1293_s24 + $0xf8] sm:$0xff] }
  0x27   : > { %1156 = vmatmul.msk.bf16.gmra.mxu0 %vm427_vm0, %v1190_v7  ;;  %1164 = vmatmul.msk.bf16.gmra.mxu1 %vm427_vm0, %v1198_v8 }
  0x28   : > { %1172 = vmatmul.msk.bf16.gmra.mxu2 %vm427_vm0, %v1206_v9  ;;  %1180 = vmatmul.msk.bf16.gmra.mxu3 %vm427_vm0, %v1214_v10 }
  0x37   : > { %1157 = vmatmul.msk.bf16.gmra.mxu0 %vm427_vm0, %v1191_v11  ;;  %1165 = vmatmul.msk.bf16.gmra.mxu1 %vm427_vm0, %v1199_v12 }
  0x38   : > { %1173 = vmatmul.msk.bf16.gmra.mxu2 %vm427_vm0, %v1207_v13  ;;  %1181 = vmatmul.msk.bf16.gmra.mxu3 %vm427_vm0, %v1215_v14 }
  0x47   : > { %1158 = vmatmul.msk.bf16.gmra.mxu0 %vm427_vm0, %v1192_v15  ;;  %1166 = vmatmul.msk.bf16.gmra.mxu1 %vm427_vm0, %v1200_v16 }
  0x48   : > { %1174 = vmatmul.msk.bf16.gmra.mxu2 %vm427_vm0, %v1208_v17  ;;  %1182 = vmatmul.msk.bf16.gmra.mxu3 %vm427_vm0, %v1216_v18 }
  0x57   : > { %1159 = vmatmul.msk.bf16.gmra.mxu0 %vm427_vm0, %v1193_v19  ;;  %1167 = vmatmul.msk.bf16.gmra.mxu1 %vm427_vm0, %v1201_v20 }
  0x58   : > { %1175 = vmatmul.msk.bf16.gmra.mxu2 %vm427_vm0, %v1209_v21  ;;  %1183 = vmatmul.msk.bf16.gmra.mxu3 %vm427_vm0, %v1217_v22 }
  0x67   : > { %1160 = vmatmul.msk.bf16.gmra.mxu0 %vm427_vm0, %v1194_v23  ;;  %1168 = vmatmul.msk.bf16.gmra.mxu1 %vm427_vm0, %v1202_v24 }
  0x68   : > { %1176 = vmatmul.msk.bf16.gmra.mxu2 %vm427_vm0, %v1210_v25  ;;  %1184 = vmatmul.msk.bf16.gmra.mxu3 %vm427_vm0, %v1218_v26 }
  0x77   : > { %1161 = vmatmul.msk.bf16.gmra.mxu0 %vm427_vm0, %v1195_v27  ;;  %1169 = vmatmul.msk.bf16.gmra.mxu1 %vm427_vm0, %v1203_v28 }
  0x78   : > { %1177 = vmatmul.msk.bf16.gmra.mxu2 %vm427_vm0, %v1211_v29  ;;  %1185 = vmatmul.msk.bf16.gmra.mxu3 %vm427_vm0, %v1219_v30 }
  0x87   : > { %1162 = vmatmul.msk.bf16.gmra.mxu0 %vm427_vm0, %v1196_v31  ;;  %1170 = vmatmul.msk.bf16.gmra.mxu1 %vm427_vm0, %v1204_v32 }
  0x88   : > { %1178 = vmatmul.msk.bf16.gmra.mxu2 %vm427_vm0, %v1212_v33  ;;  %1186 = vmatmul.msk.bf16.gmra.mxu3 %vm427_vm0, %v1220_v34 }
  0x94   : > { %v533_v36 = vpop.f32.mrf.mxu0  ;;  %v573_v37 = vpop.f32.mrf.mxu1 }
  0x95   : > { %v534_v38 = vadd.f32 %v1362_v35, %v533_v36  ;;  %v574_v39 = vadd.f32 %v1362_v35, %v573_v37 }
  0x97   : > { %vm693_vm2 = vcmp.ge.f32.partialorder %v534_v38, 0.0  ;;  %v757_v40 = vmul.f32 0.2, %v534_v38  ;;  %vm709_vm3 = vcmp.ge.f32.partialorder %v574_v39, 0.0  ;;  %v773_v41 = vmul.f32 0.2, %v574_v39 }
  0x99   : > { %v821_v42 = vsel %vm693_vm2, %v534_v38, %v757_v40  ;;  %v837_v43 = vsel %vm709_vm3, %v574_v39, %v773_v41 }
  0x9a   : > { %886 = vst.msk [vmem:[%s1370_s30] sm:$0xff] %vm885_vm1, %v821_v42 }
  0x9b   : > { %902 = vst.msk [vmem:[%s1370_s30 + $0x80] sm:$0xff] %vm885_vm1, %v837_v43  ;;  %v613_v44 = vpop.f32.mrf.mxu2  ;;  %v653_v45 = vpop.f32.mrf.mxu3 }
  0x9c   : > { %v614_v46 = vadd.f32 %v1362_v35, %v613_v44  ;;  %v654_v47 = vadd.f32 %v1362_v35, %v653_v45  ;;  %v535_v48 = vpop.f32.mrf.mxu0  ;;  %v575_v49 = vpop.f32.mrf.mxu1 }
  0x9d   : > { %v536_v50 = vadd.f32 %v1362_v35, %v535_v48  ;;  %v576_v51 = vadd.f32 %v1362_v35, %v575_v49 }
  0x9e   : > { %vm725_vm4 = vcmp.ge.f32.partialorder %v614_v46, 0.0  ;;  %v789_v52 = vmul.f32 0.2, %v614_v46  ;;  %vm741_vm5 = vcmp.ge.f32.partialorder %v654_v47, 0.0  ;;  %v805_v53 = vmul.f32 0.2, %v654_v47 }
  0x9f   : > { %vm694_vm6 = vcmp.ge.f32.partialorder %v536_v50, 0.0  ;;  %v758_v54 = vmul.f32 0.2, %v536_v50  ;;  %vm710_vm7 = vcmp.ge.f32.partialorder %v576_v51, 0.0  ;;  %v774_v55 = vmul.f32 0.2, %v576_v51 }
  0xa0   : > { %v853_v56 = vsel %vm725_vm4, %v614_v46, %v789_v52  ;;  %v869_v57 = vsel %vm741_vm5, %v654_v47, %v805_v53 }
  0xa1   : > { %918 = vst.msk [vmem:[%s1370_s30 + $0x100] sm:$0xff] %vm885_vm1, %v853_v56  ;;  %v822_v58 = vsel %vm694_vm6, %v536_v50, %v758_v54  ;;  %v838_v59 = vsel %vm710_vm7, %v576_v51, %v774_v55 }
  0xa2   : > { %934 = vst.msk [vmem:[%s1370_s30 + $0x180] sm:$0xff] %vm885_vm1, %v869_v57 }
  0xa3   : > { %887 = vst.msk [vmem:[%s1370_s30 + $0x8] sm:$0xff] %vm885_vm1, %v822_v58  ;;  %v615_v60 = vpop.f32.mrf.mxu2  ;;  %v655_v61 = vpop.f32.mrf.mxu3 }
  0xa4   : > { %903 = vst.msk [vmem:[%s1370_s30 + $0x88] sm:$0xff] %vm885_vm1, %v838_v59  ;;  %v616_v62 = vadd.f32 %v1362_v35, %v615_v60  ;;  %v656_v63 = vadd.f32 %v1362_v35, %v655_v61  ;;  %v538_v0 = vpop.f32.mrf.mxu0  ;;  %v578_v1 = vpop.f32.mrf.mxu1 }
  0xa5   : > { %v539_v2 = vadd.f32 %v1362_v35, %v538_v0  ;;  %v579_v3 = vadd.f32 %v1362_v35, %v578_v1 }
  0xa6   : > { %vm726_vm8 = vcmp.ge.f32.partialorder %v616_v62, 0.0  ;;  %v790_v4 = vmul.f32 0.2, %v616_v62  ;;  %vm742_vm9 = vcmp.ge.f32.partialorder %v656_v63, 0.0  ;;  %v806_v5 = vmul.f32 0.2, %v656_v63 }
  0xa7   : > { %vm695_vm10 = vcmp.ge.f32.partialorder %v539_v2, 0.0  ;;  %v759_v6 = vmul.f32 0.2, %v539_v2  ;;  %vm711_vm11 = vcmp.ge.f32.partialorder %v579_v3, 0.0  ;;  %v775_v7 = vmul.f32 0.2, %v579_v3 }
  0xa8   : > { %v854_v8 = vsel %vm726_vm8, %v616_v62, %v790_v4  ;;  %v870_v9 = vsel %vm742_vm9, %v656_v63, %v806_v5 }
  0xa9   : > { %919 = vst.msk [vmem:[%s1370_s30 + $0x108] sm:$0xff] %vm885_vm1, %v854_v8  ;;  %v823_v10 = vsel %vm695_vm10, %v539_v2, %v759_v6  ;;  %v839_v11 = vsel %vm711_vm11, %v579_v3, %v775_v7 }
  0xaa   : > { %935 = vst.msk [vmem:[%s1370_s30 + $0x188] sm:$0xff] %vm885_vm1, %v870_v9 }
  0xab   : > { %888 = vst.msk [vmem:[%s1370_s30 + $0x10] sm:$0xff] %vm885_vm1, %v823_v10  ;;  %v618_v12 = vpop.f32.mrf.mxu2  ;;  %v658_v13 = vpop.f32.mrf.mxu3 }
  0xac   : > { %904 = vst.msk [vmem:[%s1370_s30 + $0x90] sm:$0xff] %vm885_vm1, %v839_v11  ;;  %v619_v14 = vadd.f32 %v1362_v35, %v618_v12  ;;  %v659_v15 = vadd.f32 %v1362_v35, %v658_v13  ;;  %v540_v16 = vpop.f32.mrf.mxu0  ;;  %v580_v17 = vpop.f32.mrf.mxu1 }
  0xad   : > { %v541_v18 = vadd.f32 %v1362_v35, %v540_v16  ;;  %v581_v19 = vadd.f32 %v1362_v35, %v580_v17 }
  0xae   : > { %vm727_vm12 = vcmp.ge.f32.partialorder %v619_v14, 0.0  ;;  %v791_v20 = vmul.f32 0.2, %v619_v14  ;;  %vm743_vm13 = vcmp.ge.f32.partialorder %v659_v15, 0.0  ;;  %v807_v21 = vmul.f32 0.2, %v659_v15 }
  0xaf   : > { %vm696_vm14 = vcmp.ge.f32.partialorder %v541_v18, 0.0  ;;  %v760_v22 = vmul.f32 0.2, %v541_v18  ;;  %vm712_vm15 = vcmp.ge.f32.partialorder %v581_v19, 0.0  ;;  %v776_v23 = vmul.f32 0.2, %v581_v19 }
  0xb0   : > { %v855_v24 = vsel %vm727_vm12, %v619_v14, %v791_v20  ;;  %v871_v25 = vsel %vm743_vm13, %v659_v15, %v807_v21 }
  0xb1   : > { %920 = vst.msk [vmem:[%s1370_s30 + $0x110] sm:$0xff] %vm885_vm1, %v855_v24  ;;  %v824_v26 = vsel %vm696_vm14, %v541_v18, %v760_v22  ;;  %v840_v27 = vsel %vm712_vm15, %v581_v19, %v776_v23 }
  0xb2   : > { %936 = vst.msk [vmem:[%s1370_s30 + $0x190] sm:$0xff] %vm885_vm1, %v871_v25 }
  0xb3   : > { %889 = vst.msk [vmem:[%s1370_s30 + $0x18] sm:$0xff] %vm885_vm1, %v824_v26  ;;  %v620_v28 = vpop.f32.mrf.mxu2  ;;  %v660_v29 = vpop.f32.mrf.mxu3 }
  0xb4   : > { %905 = vst.msk [vmem:[%s1370_s30 + $0x98] sm:$0xff] %vm885_vm1, %v840_v27  ;;  %v621_v30 = vadd.f32 %v1362_v35, %v620_v28  ;;  %v661_v31 = vadd.f32 %v1362_v35, %v660_v29  ;;  %v543_v32 = vpop.f32.mrf.mxu0  ;;  %v583_v33 = vpop.f32.mrf.mxu1 }
  0xb5   : > { %v544_v34 = vadd.f32 %v1362_v35, %v543_v32  ;;  %v584_v36 = vadd.f32 %v1362_v35, %v583_v33 }
  0xb6   : > { %vm728_vm0 = vcmp.ge.f32.partialorder %v621_v30, 0.0  ;;  %v792_v37 = vmul.f32 0.2, %v621_v30  ;;  %vm744_vm2 = vcmp.ge.f32.partialorder %v661_v31, 0.0  ;;  %v808_v38 = vmul.f32 0.2, %v661_v31 }
  0xb7   : > { %vm697_vm3 = vcmp.ge.f32.partialorder %v544_v34, 0.0  ;;  %v761_v39 = vmul.f32 0.2, %v544_v34  ;;  %vm713_vm4 = vcmp.ge.f32.partialorder %v584_v36, 0.0  ;;  %v777_v40 = vmul.f32 0.2, %v584_v36 }
  0xb8   : > { %v856_v41 = vsel %vm728_vm0, %v621_v30, %v792_v37  ;;  %v872_v42 = vsel %vm744_vm2, %v661_v31, %v808_v38 }
  0xb9   : > { %921 = vst.msk [vmem:[%s1370_s30 + $0x118] sm:$0xff] %vm885_vm1, %v856_v41  ;;  %v825_v43 = vsel %vm697_vm3, %v544_v34, %v761_v39  ;;  %v841_v44 = vsel %vm713_vm4, %v584_v36, %v777_v40 }
  0xba   : > { %937 = vst.msk [vmem:[%s1370_s30 + $0x198] sm:$0xff] %vm885_vm1, %v872_v42 }
  0xbb   : > { %890 = vst.msk [vmem:[%s1370_s30 + $0x20] sm:$0xff] %vm885_vm1, %v825_v43  ;;  %v623_v45 = vpop.f32.mrf.mxu2  ;;  %v663_v46 = vpop.f32.mrf.mxu3 }
  0xbc   : > { %906 = vst.msk [vmem:[%s1370_s30 + $0xa0] sm:$0xff] %vm885_vm1, %v841_v44  ;;  %v624_v47 = vadd.f32 %v1362_v35, %v623_v45  ;;  %v664_v48 = vadd.f32 %v1362_v35, %v663_v46  ;;  %v545_v49 = vpop.f32.mrf.mxu0  ;;  %v585_v50 = vpop.f32.mrf.mxu1 }
  0xbd   : > { %v546_v51 = vadd.f32 %v1362_v35, %v545_v49  ;;  %v586_v52 = vadd.f32 %v1362_v35, %v585_v50 }
  0xbe   : > { %vm729_vm5 = vcmp.ge.f32.partialorder %v624_v47, 0.0  ;;  %v793_v53 = vmul.f32 0.2, %v624_v47  ;;  %vm745_vm6 = vcmp.ge.f32.partialorder %v664_v48, 0.0  ;;  %v809_v54 = vmul.f32 0.2, %v664_v48 }
  0xbf   : > { %vm698_vm7 = vcmp.ge.f32.partialorder %v546_v51, 0.0  ;;  %v762_v55 = vmul.f32 0.2, %v546_v51  ;;  %vm714_vm8 = vcmp.ge.f32.partialorder %v586_v52, 0.0  ;;  %v778_v56 = vmul.f32 0.2, %v586_v52 }
  0xc0   : > { %v857_v57 = vsel %vm729_vm5, %v624_v47, %v793_v53  ;;  %v873_v58 = vsel %vm745_vm6, %v664_v48, %v809_v54 }
  0xc1   : > { %922 = vst.msk [vmem:[%s1370_s30 + $0x120] sm:$0xff] %vm885_vm1, %v857_v57  ;;  %v826_v59 = vsel %vm698_vm7, %v546_v51, %v762_v55  ;;  %v842_v60 = vsel %vm714_vm8, %v586_v52, %v778_v56 }
  0xc2   : > { %938 = vst.msk [vmem:[%s1370_s30 + $0x1a0] sm:$0xff] %vm885_vm1, %v873_v58 }
  0xc3   : > { %891 = vst.msk [vmem:[%s1370_s30 + $0x28] sm:$0xff] %vm885_vm1, %v826_v59  ;;  %v625_v61 = vpop.f32.mrf.mxu2  ;;  %v665_v62 = vpop.f32.mrf.mxu3 }
  0xc4   : > { %907 = vst.msk [vmem:[%s1370_s30 + $0xa8] sm:$0xff] %vm885_vm1, %v842_v60  ;;  %v626_v63 = vadd.f32 %v1362_v35, %v625_v61  ;;  %v666_v0 = vadd.f32 %v1362_v35, %v665_v62  ;;  %v548_v1 = vpop.f32.mrf.mxu0  ;;  %v588_v2 = vpop.f32.mrf.mxu1 }
  0xc5   : > { %v549_v3 = vadd.f32 %v1362_v35, %v548_v1  ;;  %v589_v4 = vadd.f32 %v1362_v35, %v588_v2 }
  0xc6   : > { %vm730_vm9 = vcmp.ge.f32.partialorder %v626_v63, 0.0  ;;  %v794_v5 = vmul.f32 0.2, %v626_v63  ;;  %vm746_vm10 = vcmp.ge.f32.partialorder %v666_v0, 0.0  ;;  %v810_v6 = vmul.f32 0.2, %v666_v0 }
  0xc7   : > { %vm699_vm11 = vcmp.ge.f32.partialorder %v549_v3, 0.0  ;;  %v763_v7 = vmul.f32 0.2, %v549_v3  ;;  %vm715_vm12 = vcmp.ge.f32.partialorder %v589_v4, 0.0  ;;  %v779_v8 = vmul.f32 0.2, %v589_v4 }
  0xc8   : > { %v858_v9 = vsel %vm730_vm9, %v626_v63, %v794_v5  ;;  %v874_v10 = vsel %vm746_vm10, %v666_v0, %v810_v6 }
  0xc9   : > { %923 = vst.msk [vmem:[%s1370_s30 + $0x128] sm:$0xff] %vm885_vm1, %v858_v9  ;;  %v827_v11 = vsel %vm699_vm11, %v549_v3, %v763_v7  ;;  %v843_v12 = vsel %vm715_vm12, %v589_v4, %v779_v8 }
  0xca   : > { %939 = vst.msk [vmem:[%s1370_s30 + $0x1a8] sm:$0xff] %vm885_vm1, %v874_v10 }
  0xcb   : > { %892 = vst.msk [vmem:[%s1370_s30 + $0x30] sm:$0xff] %vm885_vm1, %v827_v11  ;;  %v628_v13 = vpop.f32.mrf.mxu2  ;;  %v668_v14 = vpop.f32.mrf.mxu3 }
  0xcc   : > { %908 = vst.msk [vmem:[%s1370_s30 + $0xb0] sm:$0xff] %vm885_vm1, %v843_v12  ;;  %v629_v15 = vadd.f32 %v1362_v35, %v628_v13  ;;  %v669_v16 = vadd.f32 %v1362_v35, %v668_v14  ;;  %v550_v17 = vpop.f32.mrf.mxu0  ;;  %v590_v18 = vpop.f32.mrf.mxu1 }
  0xcd   : > { %v551_v19 = vadd.f32 %v1362_v35, %v550_v17  ;;  %v591_v20 = vadd.f32 %v1362_v35, %v590_v18 }
  0xce   : > { %vm731_vm13 = vcmp.ge.f32.partialorder %v629_v15, 0.0  ;;  %v795_v21 = vmul.f32 0.2, %v629_v15  ;;  %vm747_vm14 = vcmp.ge.f32.partialorder %v669_v16, 0.0  ;;  %v811_v22 = vmul.f32 0.2, %v669_v16 }
  0xcf   : > { %vm700_vm15 = vcmp.ge.f32.partialorder %v551_v19, 0.0  ;;  %v764_v23 = vmul.f32 0.2, %v551_v19  ;;  %vm716_vm0 = vcmp.ge.f32.partialorder %v591_v20, 0.0  ;;  %v780_v24 = vmul.f32 0.2, %v591_v20 }
  0xd0   : > { %v859_v25 = vsel %vm731_vm13, %v629_v15, %v795_v21  ;;  %v875_v26 = vsel %vm747_vm14, %v669_v16, %v811_v22 }
  0xd1   : > { %924 = vst.msk [vmem:[%s1370_s30 + $0x130] sm:$0xff] %vm885_vm1, %v859_v25  ;;  %v828_v27 = vsel %vm700_vm15, %v551_v19, %v764_v23  ;;  %v844_v28 = vsel %vm716_vm0, %v591_v20, %v780_v24 }
  0xd2   : > { %940 = vst.msk [vmem:[%s1370_s30 + $0x1b0] sm:$0xff] %vm885_vm1, %v875_v26 }
  0xd3   : > { %893 = vst.msk [vmem:[%s1370_s30 + $0x38] sm:$0xff] %vm885_vm1, %v828_v27  ;;  %v630_v29 = vpop.f32.mrf.mxu2  ;;  %v670_v30 = vpop.f32.mrf.mxu3 }
  0xd4   : > { %909 = vst.msk [vmem:[%s1370_s30 + $0xb8] sm:$0xff] %vm885_vm1, %v844_v28  ;;  %v631_v31 = vadd.f32 %v1362_v35, %v630_v29  ;;  %v671_v32 = vadd.f32 %v1362_v35, %v670_v30  ;;  %v553_v33 = vpop.f32.mrf.mxu0  ;;  %v593_v34 = vpop.f32.mrf.mxu1 }
  0xd5   : > { %v554_v36 = vadd.f32 %v1362_v35, %v553_v33  ;;  %v594_v37 = vadd.f32 %v1362_v35, %v593_v34 }
  0xd6   : > { %vm732_vm2 = vcmp.ge.f32.partialorder %v631_v31, 0.0  ;;  %v796_v38 = vmul.f32 0.2, %v631_v31  ;;  %vm748_vm3 = vcmp.ge.f32.partialorder %v671_v32, 0.0  ;;  %v812_v39 = vmul.f32 0.2, %v671_v32 }
  0xd7   : > { %vm701_vm4 = vcmp.ge.f32.partialorder %v554_v36, 0.0  ;;  %v765_v40 = vmul.f32 0.2, %v554_v36  ;;  %vm717_vm5 = vcmp.ge.f32.partialorder %v594_v37, 0.0  ;;  %v781_v41 = vmul.f32 0.2, %v594_v37 }
  0xd8   : > { %v860_v42 = vsel %vm732_vm2, %v631_v31, %v796_v38  ;;  %v876_v43 = vsel %vm748_vm3, %v671_v32, %v812_v39 }
  0xd9   : > { %925 = vst.msk [vmem:[%s1370_s30 + $0x138] sm:$0xff] %vm885_vm1, %v860_v42  ;;  %v829_v44 = vsel %vm701_vm4, %v554_v36, %v765_v40  ;;  %v845_v45 = vsel %vm717_vm5, %v594_v37, %v781_v41 }
  0xda   : > { %941 = vst.msk [vmem:[%s1370_s30 + $0x1b8] sm:$0xff] %vm885_vm1, %v876_v43 }
  0xdb   : > { %894 = vst.msk [vmem:[%s1370_s30 + $0x40] sm:$0xff] %vm885_vm1, %v829_v44  ;;  %v633_v46 = vpop.f32.mrf.mxu2  ;;  %v673_v47 = vpop.f32.mrf.mxu3 }
  0xdc   : > { %910 = vst.msk [vmem:[%s1370_s30 + $0xc0] sm:$0xff] %vm885_vm1, %v845_v45  ;;  %v634_v48 = vadd.f32 %v1362_v35, %v633_v46  ;;  %v674_v49 = vadd.f32 %v1362_v35, %v673_v47  ;;  %v555_v50 = vpop.f32.mrf.mxu0  ;;  %v595_v51 = vpop.f32.mrf.mxu1 }
  0xdd   : > { %v556_v52 = vadd.f32 %v1362_v35, %v555_v50  ;;  %v596_v53 = vadd.f32 %v1362_v35, %v595_v51 }
  0xde   : > { %vm733_vm6 = vcmp.ge.f32.partialorder %v634_v48, 0.0  ;;  %v797_v54 = vmul.f32 0.2, %v634_v48  ;;  %vm749_vm7 = vcmp.ge.f32.partialorder %v674_v49, 0.0  ;;  %v813_v55 = vmul.f32 0.2, %v674_v49 }
  0xdf   : > { %vm702_vm8 = vcmp.ge.f32.partialorder %v556_v52, 0.0  ;;  %v766_v56 = vmul.f32 0.2, %v556_v52  ;;  %vm718_vm9 = vcmp.ge.f32.partialorder %v596_v53, 0.0  ;;  %v782_v57 = vmul.f32 0.2, %v596_v53 }
  0xe0   : > { %v861_v58 = vsel %vm733_vm6, %v634_v48, %v797_v54  ;;  %v877_v59 = vsel %vm749_vm7, %v674_v49, %v813_v55 }
  0xe1   : > { %926 = vst.msk [vmem:[%s1370_s30 + $0x140] sm:$0xff] %vm885_vm1, %v861_v58  ;;  %v830_v60 = vsel %vm702_vm8, %v556_v52, %v766_v56  ;;  %v846_v61 = vsel %vm718_vm9, %v596_v53, %v782_v57 }
  0xe2   : > { %942 = vst.msk [vmem:[%s1370_s30 + $0x1c0] sm:$0xff] %vm885_vm1, %v877_v59 }
  0xe3   : > { %895 = vst.msk [vmem:[%s1370_s30 + $0x48] sm:$0xff] %vm885_vm1, %v830_v60  ;;  %v635_v62 = vpop.f32.mrf.mxu2  ;;  %v675_v63 = vpop.f32.mrf.mxu3 }
  0xe4   : > { %911 = vst.msk [vmem:[%s1370_s30 + $0xc8] sm:$0xff] %vm885_vm1, %v846_v61  ;;  %v636_v0 = vadd.f32 %v1362_v35, %v635_v62  ;;  %v676_v1 = vadd.f32 %v1362_v35, %v675_v63  ;;  %v558_v2 = vpop.f32.mrf.mxu0  ;;  %v598_v3 = vpop.f32.mrf.mxu1 }
  0xe5   : > { %v559_v4 = vadd.f32 %v1362_v35, %v558_v2  ;;  %v599_v5 = vadd.f32 %v1362_v35, %v598_v3 }
  0xe6   : > { %vm734_vm10 = vcmp.ge.f32.partialorder %v636_v0, 0.0  ;;  %v798_v6 = vmul.f32 0.2, %v636_v0  ;;  %vm750_vm11 = vcmp.ge.f32.partialorder %v676_v1, 0.0  ;;  %v814_v7 = vmul.f32 0.2, %v676_v1 }
  0xe7   : > { %vm703_vm12 = vcmp.ge.f32.partialorder %v559_v4, 0.0  ;;  %v767_v8 = vmul.f32 0.2, %v559_v4  ;;  %vm719_vm13 = vcmp.ge.f32.partialorder %v599_v5, 0.0  ;;  %v783_v9 = vmul.f32 0.2, %v599_v5 }
  0xe8   : > { %v862_v10 = vsel %vm734_vm10, %v636_v0, %v798_v6  ;;  %v878_v11 = vsel %vm750_vm11, %v676_v1, %v814_v7 }
  0xe9   : > { %927 = vst.msk [vmem:[%s1370_s30 + $0x148] sm:$0xff] %vm885_vm1, %v862_v10  ;;  %v831_v12 = vsel %vm703_vm12, %v559_v4, %v767_v8  ;;  %v847_v13 = vsel %vm719_vm13, %v599_v5, %v783_v9 }
  0xea   : > { %943 = vst.msk [vmem:[%s1370_s30 + $0x1c8] sm:$0xff] %vm885_vm1, %v878_v11 }
  0xeb   : > { %896 = vst.msk [vmem:[%s1370_s30 + $0x50] sm:$0xff] %vm885_vm1, %v831_v12  ;;  %v638_v14 = vpop.f32.mrf.mxu2  ;;  %v678_v15 = vpop.f32.mrf.mxu3 }
  0xec   : > { %912 = vst.msk [vmem:[%s1370_s30 + $0xd0] sm:$0xff] %vm885_vm1, %v847_v13  ;;  %v639_v16 = vadd.f32 %v1362_v35, %v638_v14  ;;  %v679_v17 = vadd.f32 %v1362_v35, %v678_v15  ;;  %v560_v18 = vpop.f32.mrf.mxu0  ;;  %v600_v19 = vpop.f32.mrf.mxu1 }
  0xed   : > { %v561_v20 = vadd.f32 %v1362_v35, %v560_v18  ;;  %v601_v21 = vadd.f32 %v1362_v35, %v600_v19 }
  0xee   : > { %vm735_vm14 = vcmp.ge.f32.partialorder %v639_v16, 0.0  ;;  %v799_v22 = vmul.f32 0.2, %v639_v16  ;;  %vm751_vm15 = vcmp.ge.f32.partialorder %v679_v17, 0.0  ;;  %v815_v23 = vmul.f32 0.2, %v679_v17 }
  0xef   : > { %vm704_vm0 = vcmp.ge.f32.partialorder %v561_v20, 0.0  ;;  %v768_v24 = vmul.f32 0.2, %v561_v20  ;;  %vm720_vm2 = vcmp.ge.f32.partialorder %v601_v21, 0.0  ;;  %v784_v25 = vmul.f32 0.2, %v601_v21 }
  0xf0   : > { %v863_v26 = vsel %vm735_vm14, %v639_v16, %v799_v22  ;;  %v879_v27 = vsel %vm751_vm15, %v679_v17, %v815_v23 }
  0xf1   : > { %928 = vst.msk [vmem:[%s1370_s30 + $0x150] sm:$0xff] %vm885_vm1, %v863_v26  ;;  %v832_v28 = vsel %vm704_vm0, %v561_v20, %v768_v24  ;;  %v848_v29 = vsel %vm720_vm2, %v601_v21, %v784_v25 }
  0xf2   : > { %944 = vst.msk [vmem:[%s1370_s30 + $0x1d0] sm:$0xff] %vm885_vm1, %v879_v27 }
  0xf3   : > { %897 = vst.msk [vmem:[%s1370_s30 + $0x58] sm:$0xff] %vm885_vm1, %v832_v28  ;;  %v640_v30 = vpop.f32.mrf.mxu2  ;;  %v680_v31 = vpop.f32.mrf.mxu3 }
  0xf4   : > { %913 = vst.msk [vmem:[%s1370_s30 + $0xd8] sm:$0xff] %vm885_vm1, %v848_v29  ;;  %v641_v32 = vadd.f32 %v1362_v35, %v640_v30  ;;  %v681_v33 = vadd.f32 %v1362_v35, %v680_v31  ;;  %v563_v34 = vpop.f32.mrf.mxu0  ;;  %v603_v36 = vpop.f32.mrf.mxu1 }
  0xf5   : > { %v564_v37 = vadd.f32 %v1362_v35, %v563_v34  ;;  %v604_v38 = vadd.f32 %v1362_v35, %v603_v36 }
  0xf6   : > { %vm736_vm3 = vcmp.ge.f32.partialorder %v641_v32, 0.0  ;;  %v800_v39 = vmul.f32 0.2, %v641_v32  ;;  %vm752_vm4 = vcmp.ge.f32.partialorder %v681_v33, 0.0  ;;  %v816_v40 = vmul.f32 0.2, %v681_v33 }
  0xf7   : > { %vm705_vm5 = vcmp.ge.f32.partialorder %v564_v37, 0.0  ;;  %v769_v41 = vmul.f32 0.2, %v564_v37  ;;  %vm721_vm6 = vcmp.ge.f32.partialorder %v604_v38, 0.0  ;;  %v785_v42 = vmul.f32 0.2, %v604_v38 }
  0xf8   : > { %v864_v43 = vsel %vm736_vm3, %v641_v32, %v800_v39  ;;  %v880_v44 = vsel %vm752_vm4, %v681_v33, %v816_v40 }
  0xf9   : > { %929 = vst.msk [vmem:[%s1370_s30 + $0x158] sm:$0xff] %vm885_vm1, %v864_v43  ;;  %v833_v45 = vsel %vm705_vm5, %v564_v37, %v769_v41  ;;  %v849_v46 = vsel %vm721_vm6, %v604_v38, %v785_v42 }
  0xfa   : > { %945 = vst.msk [vmem:[%s1370_s30 + $0x1d8] sm:$0xff] %vm885_vm1, %v880_v44 }
  0xfb   : > { %898 = vst.msk [vmem:[%s1370_s30 + $0x60] sm:$0xff] %vm885_vm1, %v833_v45  ;;  %v643_v47 = vpop.f32.mrf.mxu2  ;;  %v683_v48 = vpop.f32.mrf.mxu3 }
  0xfc   : > { %914 = vst.msk [vmem:[%s1370_s30 + $0xe0] sm:$0xff] %vm885_vm1, %v849_v46  ;;  %v644_v49 = vadd.f32 %v1362_v35, %v643_v47  ;;  %v684_v50 = vadd.f32 %v1362_v35, %v683_v48  ;;  %v565_v51 = vpop.f32.mrf.mxu0  ;;  %v605_v52 = vpop.f32.mrf.mxu1 }
  0xfd   : > { %v566_v53 = vadd.f32 %v1362_v35, %v565_v51  ;;  %v606_v54 = vadd.f32 %v1362_v35, %v605_v52 }
  0xfe   : > { %vm737_vm7 = vcmp.ge.f32.partialorder %v644_v49, 0.0  ;;  %v801_v55 = vmul.f32 0.2, %v644_v49  ;;  %vm753_vm8 = vcmp.ge.f32.partialorder %v684_v50, 0.0  ;;  %v817_v56 = vmul.f32 0.2, %v684_v50 }
  0xff   : > { %vm706_vm9 = vcmp.ge.f32.partialorder %v566_v53, 0.0  ;;  %v770_v57 = vmul.f32 0.2, %v566_v53  ;;  %vm722_vm10 = vcmp.ge.f32.partialorder %v606_v54, 0.0  ;;  %v786_v58 = vmul.f32 0.2, %v606_v54 }
 0x100   : > { %v865_v59 = vsel %vm737_vm7, %v644_v49, %v801_v55  ;;  %v881_v60 = vsel %vm753_vm8, %v684_v50, %v817_v56 }
 0x101   : > { %930 = vst.msk [vmem:[%s1370_s30 + $0x160] sm:$0xff] %vm885_vm1, %v865_v59  ;;  %v834_v61 = vsel %vm706_vm9, %v566_v53, %v770_v57  ;;  %v850_v62 = vsel %vm722_vm10, %v606_v54, %v786_v58 }
 0x102   : > { %946 = vst.msk [vmem:[%s1370_s30 + $0x1e0] sm:$0xff] %vm885_vm1, %v881_v60 }
 0x103   : > { %899 = vst.msk [vmem:[%s1370_s30 + $0x68] sm:$0xff] %vm885_vm1, %v834_v61  ;;  %v645_v63 = vpop.f32.mrf.mxu2  ;;  %v685_v0 = vpop.f32.mrf.mxu3 }
 0x104   : > { %915 = vst.msk [vmem:[%s1370_s30 + $0xe8] sm:$0xff] %vm885_vm1, %v850_v62  ;;  %v646_v1 = vadd.f32 %v1362_v35, %v645_v63  ;;  %v686_v2 = vadd.f32 %v1362_v35, %v685_v0  ;;  %v568_v3 = vpop.f32.mrf.mxu0  ;;  %v608_v4 = vpop.f32.mrf.mxu1 }
 0x105   : > { %v569_v5 = vadd.f32 %v1362_v35, %v568_v3  ;;  %v609_v6 = vadd.f32 %v1362_v35, %v608_v4 }
 0x106   : > { %vm738_vm11 = vcmp.ge.f32.partialorder %v646_v1, 0.0  ;;  %v802_v7 = vmul.f32 0.2, %v646_v1  ;;  %vm754_vm12 = vcmp.ge.f32.partialorder %v686_v2, 0.0  ;;  %v818_v8 = vmul.f32 0.2, %v686_v2 }
 0x107   : > { %vm707_vm13 = vcmp.ge.f32.partialorder %v569_v5, 0.0  ;;  %v771_v9 = vmul.f32 0.2, %v569_v5  ;;  %vm723_vm14 = vcmp.ge.f32.partialorder %v609_v6, 0.0  ;;  %v787_v10 = vmul.f32 0.2, %v609_v6 }
 0x108   : > { %v866_v11 = vsel %vm738_vm11, %v646_v1, %v802_v7  ;;  %v882_v12 = vsel %vm754_vm12, %v686_v2, %v818_v8 }
 0x109   : > { %931 = vst.msk [vmem:[%s1370_s30 + $0x168] sm:$0xff] %vm885_vm1, %v866_v11  ;;  %v835_v13 = vsel %vm707_vm13, %v569_v5, %v771_v9  ;;  %v851_v14 = vsel %vm723_vm14, %v609_v6, %v787_v10 }
 0x10a   : > { %947 = vst.msk [vmem:[%s1370_s30 + $0x1e8] sm:$0xff] %vm885_vm1, %v882_v12 }
 0x10b   : > { %900 = vst.msk [vmem:[%s1370_s30 + $0x70] sm:$0xff] %vm885_vm1, %v835_v13  ;;  %v648_v15 = vpop.f32.mrf.mxu2  ;;  %v688_v16 = vpop.f32.mrf.mxu3 }
 0x10c   : > { %916 = vst.msk [vmem:[%s1370_s30 + $0xf0] sm:$0xff] %vm885_vm1, %v851_v14  ;;  %v649_v17 = vadd.f32 %v1362_v35, %v648_v15  ;;  %v689_v18 = vadd.f32 %v1362_v35, %v688_v16  ;;  %v570_v19 = vpop.f32.mrf.mxu0  ;;  %v610_v20 = vpop.f32.mrf.mxu1 }
 0x10d   : > { %v571_v21 = vadd.f32 %v1362_v35, %v570_v19  ;;  %v611_v22 = vadd.f32 %v1362_v35, %v610_v20 }
 0x10e   : > { %vm739_vm15 = vcmp.ge.f32.partialorder %v649_v17, 0.0  ;;  %v803_v23 = vmul.f32 0.2, %v649_v17  ;;  %vm755_vm0 = vcmp.ge.f32.partialorder %v689_v18, 0.0  ;;  %v819_v24 = vmul.f32 0.2, %v689_v18 }
 0x10f   : > { %vm708_vm2 = vcmp.ge.f32.partialorder %v571_v21, 0.0  ;;  %v772_v25 = vmul.f32 0.2, %v571_v21  ;;  %vm724_vm3 = vcmp.ge.f32.partialorder %v611_v22, 0.0  ;;  %v788_v26 = vmul.f32 0.2, %v611_v22 }
 0x110   : > { %v867_v27 = vsel %vm739_vm15, %v649_v17, %v803_v23  ;;  %v883_v28 = vsel %vm755_vm0, %v689_v18, %v819_v24 }
 0x111   : > { %932 = vst.msk [vmem:[%s1370_s30 + $0x170] sm:$0xff] %vm885_vm1, %v867_v27  ;;  %v836_v29 = vsel %vm708_vm2, %v571_v21, %v772_v25  ;;  %v852_v30 = vsel %vm724_vm3, %v611_v22, %v788_v26 }
 0x112   : > { %948 = vst.msk [vmem:[%s1370_s30 + $0x1f0] sm:$0xff] %vm885_vm1, %v883_v28 }
 0x113   : > { %901 = vst.msk [vmem:[%s1370_s30 + $0x78] sm:$0xff] %vm885_vm1, %v836_v29  ;;  %v650_v31 = vpop.f32.mrf.mxu2  ;;  %v690_v32 = vpop.f32.mrf.mxu3 }
 0x114   : > { %917 = vst.msk [vmem:[%s1370_s30 + $0xf8] sm:$0xff] %vm885_vm1, %v852_v30  ;;  %v651_v33 = vadd.f32 %v1362_v35, %v650_v31  ;;  %v691_v34 = vadd.f32 %v1362_v35, %v690_v32 }
 0x116   : > { %vm740_vm4 = vcmp.ge.f32.partialorder %v651_v33, 0.0  ;;  %v804_v36 = vmul.f32 0.2, %v651_v33  ;;  %vm756_vm5 = vcmp.ge.f32.partialorder %v691_v34, 0.0  ;;  %v820_v37 = vmul.f32 0.2, %v691_v34 }
 0x118   : > { %v868_v38 = vsel %vm740_vm4, %v651_v33, %v804_v36  ;;  %v884_v39 = vsel %vm756_vm5, %v691_v34, %v820_v37 }
 0x119   : > { %933 = vst.msk [vmem:[%s1370_s30 + $0x178] sm:$0xff] %vm885_vm1, %v868_v38 }
 0x11a   : > { %949 = vst.msk [vmem:[%s1370_s30 + $0x1f8] sm:$0xff] %vm885_vm1, %v884_v39 }
 0x11b PF: > { %s13_s12 = sadd.s32 1, %s1248_s12  }
 0x11c   : > { %p10_p4 = scmp.ge.s32.totalorder %s13_s12, 6  }
 0x11e   :  { %12 = sbr.rel (!%p10_p4) target bundleno = 1 (0x1), region = 62 }

// kernel: critic_forward.6
= control target key start
LH: loop header
LB: loop body
LE: loop exit
PB: predicated region body
PF: predicated region fallthrough
CT: control target
= control target key end

     0   :  { %vm506_vm0 = vcmask 130048   ;;  %s3403_s1 = inlined_call_operand.vmem [shape: bf16[128,16], index: 1, kind: input, shape index: {}]   ;;  %s3404_s0 = inlined_call_operand.vmem [shape: bf16[512,128], index: 0, kind: input, shape index: {}]   ;;  %s3405_s2 = inlined_call_operand.vmem [shape: f32[1,16], index: 2, kind: input, shape index: {}]   ;;  %s3406_s3 = inlined_call_operand.vmem [shape: f32[1,16], index: 3, kind: input, shape index: {}]   ;;  %s3407_s4 = inlined_call_operand.vmem [shape: f32[512,16], index: 4, kind: output, shape index: {}]  }
   0x1   :  { %v1580_v0 = vld [vmem:[%s3403_s1 + $0x38] sm:$0xff]  ;;  %v1579_v1 = vld [vmem:[%s3403_s1 + $0x30] sm:$0xff]  ;;  %v1578_v2 = vld [vmem:[%s3403_s1 + $0x28] sm:$0xff] }
   0x2   :  { %337 = vmatpush.bf16.msra.mxu0 %v1580_v0  ;;  %1581 = vmatpush.bf16.msra.mxu1 %v1580_v0  ;;  %v1577_v3 = vld [vmem:[%s3403_s1 + $0x20] sm:$0xff]  ;;  %v1576_v4 = vld [vmem:[%s3403_s1 + $0x18] sm:$0xff]  ;;  %v1575_v5 = vld [vmem:[%s3403_s1 + $0x10] sm:$0xff] }
   0x3   :  { %1582 = vmatpush.bf16.msra.mxu2 %v1580_v0  ;;  %1583 = vmatpush.bf16.msra.mxu3 %v1580_v0  ;;  %v1574_v6 = vld [vmem:[%s3403_s1 + $0x8] sm:$0xff]  ;;  %v1573_v7 = vld [vmem:[%s3403_s1] sm:$0xff]  ;;  %v1543_v13 = vld [vmem:[%s3404_s0 + $0x10] sm:$0xff] }
   0x4   :  { %v1541_v8 = vld [vmem:[%s3404_s0] sm:$0xff]  ;;  %v1542_v10 = vld [vmem:[%s3404_s0 + $0x8] sm:$0xff]  ;;  %v1551_v14 = vld [vmem:[%s3404_s0 + $0x50] sm:$0xff] }
   0x5   :  { %v1549_v9 = vld [vmem:[%s3404_s0 + $0x40] sm:$0xff]  ;;  %v1550_v11 = vld [vmem:[%s3404_s0 + $0x48] sm:$0xff]  ;;  %v1544_v16 = vld [vmem:[%s3404_s0 + $0x18] sm:$0xff] }
   0x6   :  { %338 = vmatpush.bf16.msra.mxu0 %v1579_v1  ;;  %1584 = vmatpush.bf16.msra.mxu1 %v1579_v1  ;;  %v1557_v12 = vld [vmem:[%s3404_s0 + $0x80] sm:$0xff]  ;;  %v1558_v15 = vld [vmem:[%s3404_s0 + $0x88] sm:$0xff]  ;;  %v1552_v17 = vld [vmem:[%s3404_s0 + $0x58] sm:$0xff] }
   0x7   :  { %1585 = vmatpush.bf16.msra.mxu2 %v1579_v1  ;;  %1586 = vmatpush.bf16.msra.mxu3 %v1579_v1  ;;  %v1559_v18 = vld [vmem:[%s3404_s0 + $0x90] sm:$0xff]  ;;  %v1565_v19 = vld [vmem:[%s3404_s0 + $0xc0] sm:$0xff]  ;;  %v1560_v22 = vld [vmem:[%s3404_s0 + $0x98] sm:$0xff] }
   0x8   :  { %v1545_v20 = vld [vmem:[%s3404_s0 + $0x20] sm:$0xff]  ;;  %v1566_v23 = vld [vmem:[%s3404_s0 + $0xc8] sm:$0xff]  ;;  %v1567_v27 = vld [vmem:[%s3404_s0 + $0xd0] sm:$0xff] }
   0x9   :  { %v1553_v21 = vld [vmem:[%s3404_s0 + $0x60] sm:$0xff]  ;;  %v1546_v24 = vld [vmem:[%s3404_s0 + $0x28] sm:$0xff]  ;;  %v1547_v28 = vld [vmem:[%s3404_s0 + $0x30] sm:$0xff] }
   0xa   :  { %339 = vmatpush.bf16.msra.mxu0 %v1578_v2  ;;  %1587 = vmatpush.bf16.msra.mxu1 %v1578_v2  ;;  %v1554_v25 = vld [vmem:[%s3404_s0 + $0x68] sm:$0xff]  ;;  %v1561_v26 = vld [vmem:[%s3404_s0 + $0xa0] sm:$0xff]  ;;  %v1555_v29 = vld [vmem:[%s3404_s0 + $0x70] sm:$0xff] }
   0xb   :  { %1588 = vmatpush.bf16.msra.mxu2 %v1578_v2  ;;  %1589 = vmatpush.bf16.msra.mxu3 %v1578_v2  ;;  %v1562_v30 = vld [vmem:[%s3404_s0 + $0xa8] sm:$0xff]  ;;  %v1568_v31 = vld [vmem:[%s3404_s0 + $0xd8] sm:$0xff]  ;;  %v1563_v34 = vld [vmem:[%s3404_s0 + $0xb0] sm:$0xff] }
   0xc   :  { %v1548_v32 = vld [vmem:[%s3404_s0 + $0x38] sm:$0xff]  ;;  %v1569_v35 = vld [vmem:[%s3404_s0 + $0xe0] sm:$0xff]  ;;  %v1570_v39 = vld [vmem:[%s3404_s0 + $0xe8] sm:$0xff] }
   0xd   :  { %v1556_v33 = vld [vmem:[%s3404_s0 + $0x78] sm:$0xff]  ;;  %v1571_v43 = vld [vmem:[%s3404_s0 + $0xf0] sm:$0xff] }
   0xe   :  { %340 = vmatpush.bf16.msra.mxu0 %v1577_v3  ;;  %1590 = vmatpush.bf16.msra.mxu1 %v1577_v3  ;;  %v1564_v38 = vld [vmem:[%s3404_s0 + $0xb8] sm:$0xff] }
   0xf   :  { %1591 = vmatpush.bf16.msra.mxu2 %v1577_v3  ;;  %1592 = vmatpush.bf16.msra.mxu3 %v1577_v3  ;;  %v1572_v49 = vld [vmem:[%s3404_s0 + $0xf8] sm:$0xff] }
  0x12   :  { %341 = vmatpush.bf16.msra.mxu0 %v1576_v4  ;;  %1593 = vmatpush.bf16.msra.mxu1 %v1576_v4 }
  0x13   :  { %1594 = vmatpush.bf16.msra.mxu2 %v1576_v4  ;;  %1595 = vmatpush.bf16.msra.mxu3 %v1576_v4 }
  0x16   :  { %342 = vmatpush.bf16.msra.mxu0 %v1575_v5  ;;  %1596 = vmatpush.bf16.msra.mxu1 %v1575_v5 }
  0x17   :  { %1597 = vmatpush.bf16.msra.mxu2 %v1575_v5  ;;  %1598 = vmatpush.bf16.msra.mxu3 %v1575_v5 }
  0x1a   :  { %343 = vmatpush.bf16.msra.mxu0 %v1574_v6  ;;  %1599 = vmatpush.bf16.msra.mxu1 %v1574_v6 }
  0x1b   :  { %1600 = vmatpush.bf16.msra.mxu2 %v1574_v6  ;;  %1601 = vmatpush.bf16.msra.mxu3 %v1574_v6 }
  0x1e   :  { %344 = vmatpush.bf16.msra.mxu0 %v1573_v7  ;;  %1602 = vmatpush.bf16.msra.mxu1 %v1573_v7 }
  0x1f   :  { %1603 = vmatpush.bf16.msra.mxu2 %v1573_v7  ;;  %1604 = vmatpush.bf16.msra.mxu3 %v1573_v7 }
  0x21   :  { %345 = vmatmul.bf16.vlgmr.msra.gmra.mxu0 %v1541_v8  ;;  %385 = vmatmul.bf16.vlgmr.msra.gmra.mxu1 %v1549_v9 }
  0x22   :  { %425 = vmatmul.bf16.vlgmr.msra.gmra.mxu2 %v1557_v12  ;;  %465 = vmatmul.bf16.vlgmr.msra.gmra.mxu3 %v1565_v19 }
  0x31   :  { %350 = vmatmul.bf16.gmra.mxu0 %v1542_v10  ;;  %390 = vmatmul.bf16.gmra.mxu1 %v1550_v11 }
  0x32   :  { %430 = vmatmul.bf16.gmra.mxu2 %v1558_v15  ;;  %470 = vmatmul.bf16.gmra.mxu3 %v1566_v23 }
  0x41   :  { %355 = vmatmul.bf16.gmra.mxu0 %v1543_v13  ;;  %395 = vmatmul.bf16.gmra.mxu1 %v1551_v14 }
  0x42   :  { %435 = vmatmul.bf16.gmra.mxu2 %v1559_v18  ;;  %475 = vmatmul.bf16.gmra.mxu3 %v1567_v27 }
  0x51   :  { %360 = vmatmul.bf16.gmra.mxu0 %v1544_v16  ;;  %400 = vmatmul.bf16.gmra.mxu1 %v1552_v17 }
  0x52   :  { %440 = vmatmul.bf16.gmra.mxu2 %v1560_v22  ;;  %480 = vmatmul.bf16.gmra.mxu3 %v1568_v31 }
  0x61   :  { %365 = vmatmul.bf16.gmra.mxu0 %v1545_v20  ;;  %405 = vmatmul.bf16.gmra.mxu1 %v1553_v21 }
  0x62   :  { %445 = vmatmul.bf16.gmra.mxu2 %v1561_v26  ;;  %485 = vmatmul.bf16.gmra.mxu3 %v1569_v35 }
  0x71   :  { %370 = vmatmul.bf16.gmra.mxu0 %v1546_v24  ;;  %410 = vmatmul.bf16.gmra.mxu1 %v1554_v25 }
  0x72   :  { %450 = vmatmul.bf16.gmra.mxu2 %v1562_v30  ;;  %490 = vmatmul.bf16.gmra.mxu3 %v1570_v39 }
  0x81   :  { %375 = vmatmul.bf16.gmra.mxu0 %v1547_v28  ;;  %415 = vmatmul.bf16.gmra.mxu1 %v1555_v29 }
  0x82   :  { %455 = vmatmul.bf16.gmra.mxu2 %v1563_v34  ;;  %495 = vmatmul.bf16.gmra.mxu3 %v1571_v43 }
  0x91   :  { %380 = vmatmul.bf16.gmra.mxu0 %v1548_v32  ;;  %420 = vmatmul.bf16.gmra.mxu1 %v1556_v33 }
  0x92   :  { %460 = vmatmul.bf16.gmra.mxu2 %v1564_v38  ;;  %500 = vmatmul.bf16.gmra.mxu3 %v1572_v49 }
  0x9e   :  { %v1746_v36 = vpop.f32.mrf.mxu0  ;;  %v1748_v37 = vpop.f32.mrf.mxu1 }
  0x9f   :  { %v507_v9 = vsel %vm506_vm0, %v1746_v36, 0.0 }
  0xa5   :  { %v1771_v47 = vpop.f32.mrf.mxu2  ;;  %v1804_v63 = vpop.f32.mrf.mxu3 }
  0xa6   :  { %v1756_v40 = vpop.f32.mrf.mxu0  ;;  %v1758_v41 = vpop.f32.mrf.mxu1 }
  0xa7   :  { %v508_v6 = vsel %vm506_vm0, %v1756_v40, 0.0 }
  0xa8   :  { %v509_v11 = vadd.f32 %v508_v6, %v507_v9 }
  0xad   :  { %v1782_v52 = vpop.f32.mrf.mxu2  ;;  %v1812_v3 = vpop.f32.mrf.mxu3 }
  0xae   :  { %v1760_v42 = vpop.f32.mrf.mxu0  ;;  %v1765_v44 = vpop.f32.mrf.mxu1 }
  0xaf   :  { %v510_v10 = vsel %vm506_vm0, %v1760_v42, 0.0 }
  0xb0   :  { %v511_v13 = vadd.f32 %v510_v10, %v509_v11 }
  0xb5   :  { %v1788_v55 = vpop.f32.mrf.mxu2  ;;  %v1822_v8 = vpop.f32.mrf.mxu3 }
  0xb6   :  { %v1767_v45 = vpop.f32.mrf.mxu0  ;;  %v1769_v46 = vpop.f32.mrf.mxu1  ;;  %3449 = vst [vmem:[#allocation4_spill] sm:$0xff] %v1822_v8 }
  0xb7   :  { %v512_v12 = vsel %vm506_vm0, %v1767_v45, 0.0 }
  0xb8   :  { %v513_v16 = vadd.f32 %v512_v12, %v511_v13 }
  0xbd   :  { %v1794_v58 = vpop.f32.mrf.mxu2  ;;  %v1842_v23 = vpop.f32.mrf.mxu3 }
  0xbe   :  { %v1773_v48 = vpop.f32.mrf.mxu0  ;;  %v1780_v51 = vpop.f32.mrf.mxu1  ;;  %3447 = vst [vmem:[#allocation2_spill] sm:$0xff] %v1794_v58 }
  0xbf   :  { %v514_v15 = vsel %vm506_vm0, %v1773_v48, 0.0 }
  0xc0   :  { %v515_v18 = vadd.f32 %v514_v15, %v513_v16 }
  0xc5   :  { %v1800_v61 = vpop.f32.mrf.mxu2  ;;  %v1862_v43 = vpop.f32.mrf.mxu3 }
  0xc6   :  { %v1778_v50 = vpop.f32.mrf.mxu0  ;;  %v1786_v54 = vpop.f32.mrf.mxu1  ;;  %3448 = vst [vmem:[#allocation3_spill] sm:$0xff] %v1800_v61 }
  0xc7   :  { %v516_v17 = vsel %vm506_vm0, %v1778_v50, 0.0 }
  0xc8   :  { %v517_v22 = vadd.f32 %v516_v17, %v515_v18 }
  0xcd   :  { %v1810_v2 = vpop.f32.mrf.mxu2 }
  0xce   :  { %v1784_v53 = vpop.f32.mrf.mxu0  ;;  %v1792_v57 = vpop.f32.mrf.mxu1 }
  0xcf   :  { %v518_v20 = vsel %vm506_vm0, %v1784_v53, 0.0 }
  0xd0   :  { %v519_v25 = vadd.f32 %v518_v20, %v517_v22  ;;  %v1878_v22 = vpop.f32.mrf.mxu3 }
  0xd5   :  { %v1820_v7 = vpop.f32.mrf.mxu2 }
  0xd6   :  { %v1790_v56 = vpop.f32.mrf.mxu0  ;;  %v1798_v60 = vpop.f32.mrf.mxu1 }
  0xd7   :  { %v520_v24 = vsel %vm506_vm0, %v1790_v56, 0.0 }
  0xd8   :  { %v521_v28 = vadd.f32 %v520_v24, %v519_v25  ;;  %v538_v24 = vsel %vm506_vm0, %v1748_v37, 0.0 }
  0xdd   :  { %v1840_v21 = vpop.f32.mrf.mxu2 }
  0xde   :  { %v1796_v59 = vpop.f32.mrf.mxu0  ;;  %v1808_v1 = vpop.f32.mrf.mxu1 }
  0xdf   :  { %v522_v27 = vsel %vm506_vm0, %v1796_v59, 0.0 }
  0xe0   :  { %v523_v30 = vadd.f32 %v522_v27, %v521_v28  ;;  %v540_v27 = vsel %vm506_vm0, %v1758_v41, 0.0 }
  0xe5   :  { %v1858_v35 = vpop.f32.mrf.mxu2 }
  0xe6   :  { %v1802_v62 = vpop.f32.mrf.mxu0  ;;  %v1816_v5 = vpop.f32.mrf.mxu1  ;;  %3450 = vst [vmem:[#allocation5_spill] sm:$0xff] %v1858_v35 }
  0xe7   :  { %v524_v29 = vsel %vm506_vm0, %v1802_v62, 0.0 }
  0xe8   :  { %v525_v32 = vadd.f32 %v524_v29, %v523_v30  ;;  %v542_v29 = vsel %vm506_vm0, %v1765_v44, 0.0 }
  0xed   :  { %v1876_v20 = vpop.f32.mrf.mxu2 }
  0xee   :  { %v1806_v0 = vpop.f32.mrf.mxu0  ;;  %v1836_v19 = vpop.f32.mrf.mxu1  ;;  %3451 = vst [vmem:[#allocation6_spill] sm:$0xff] %v1876_v20 }
  0xef   :  { %v526_v31 = vsel %vm506_vm0, %v1806_v0, 0.0 }
  0xf0   :  { %v527_v38 = vadd.f32 %v526_v31, %v525_v32  ;;  %v544_v31 = vsel %vm506_vm0, %v1769_v46, 0.0 }
  0xf6   :  { %v1814_v4 = vpop.f32.mrf.mxu0  ;;  %v1854_v33 = vpop.f32.mrf.mxu1 }
  0xf7   :  { %v528_v34 = vsel %vm506_vm0, %v1814_v4, 0.0 }
  0xf8   :  { %v529_v6 = vadd.f32 %v528_v34, %v527_v38  ;;  %v546_v38 = vsel %vm506_vm0, %v1780_v51, 0.0 }
  0xfe   :  { %v1830_v14 = vpop.f32.mrf.mxu0  ;;  %v1872_v16 = vpop.f32.mrf.mxu1 }
  0xff   :  { %v530_v49 = vsel %vm506_vm0, %v1830_v14, 0.0 }
 0x100   :  { %v531_v10 = vadd.f32 %v530_v49, %v529_v6  ;;  %v1892_v6 = vpop.f32.mrf.mxu2 }
 0x106   :  { %v1846_v26 = vpop.f32.mrf.mxu0  ;;  %v1888_v34 = vpop.f32.mrf.mxu1 }
 0x107   :  { %v532_v9 = vsel %vm506_vm0, %v1846_v26, 0.0  ;;  %3452 = vst [vmem:[#allocation7_spill] sm:$0xff] %v1888_v34 }
 0x108   :  { %v533_v12 = vadd.f32 %v532_v9, %v531_v10  ;;  %v1894_v9 = vpop.f32.mrf.mxu3  ;;  %v548_v10 = vsel %vm506_vm0, %v1786_v54, 0.0 }
 0x10e   :  { %v1860_v39 = vpop.f32.mrf.mxu0 }
 0x10f   :  { %v534_v11 = vsel %vm506_vm0, %v1860_v39, 0.0 }
 0x110   :  { %v535_v13 = vadd.f32 %v534_v11, %v533_v12  ;;  %v550_v12 = vsel %vm506_vm0, %v1792_v57, 0.0 }
 0x116   :  { %v1870_v15 = vpop.f32.mrf.mxu0 }
 0x117   :  { %v536_v17 = vsel %vm506_vm0, %v1870_v15, 0.0 }
 0x118   :  { %v537_v18 = vadd.f32 %v536_v17, %v535_v13  ;;  %v552_v17 = vsel %vm506_vm0, %v1798_v60, 0.0 }
 0x11a   :  { %v539_v25 = vadd.f32 %v538_v24, %v537_v18  ;;  %v554_v24 = vsel %vm506_vm0, %v1808_v1, 0.0 }
 0x11c   :  { %v541_v28 = vadd.f32 %v540_v27, %v539_v25  ;;  %v1904_v27 = vpop.f32.mrf.mxu1 }
 0x11d   :  { %3453 = vst [vmem:[#allocation8_spill] sm:$0xff] %v1904_v27 }
 0x11e   :  { %v543_v30 = vadd.f32 %v542_v29, %v541_v28  ;;  %v556_v28 = vsel %vm506_vm0, %v1816_v5, 0.0 }
 0x120   :  { %v545_v32 = vadd.f32 %v544_v31, %v543_v30  ;;  %v1908_v30 = vpop.f32.mrf.mxu2  ;;  %v1910_v31 = vpop.f32.mrf.mxu3 }
 0x121   :  { %3454 = vst [vmem:[#allocation9_spill] sm:$0xff] %v1910_v31 }
 0x122   :  { %v547_v49 = vadd.f32 %v546_v38, %v545_v32  ;;  %v558_v32 = vsel %vm506_vm0, %v1836_v19, 0.0 }
 0x124   :  { %v549_v11 = vadd.f32 %v548_v10, %v547_v49  ;;  %v560_v49 = vsel %vm506_vm0, %v1854_v33, 0.0 }
 0x126   :  { %v551_v13 = vadd.f32 %v550_v12, %v549_v11  ;;  %v562_v11 = vsel %vm506_vm0, %v1872_v16, 0.0 }
 0x128   :  { %v553_v18 = vadd.f32 %v552_v17, %v551_v13  ;;  %v564_v13 = vsel %vm506_vm0, %v1888_v34, 0.0 }
 0x12a   :  { %v555_v25 = vadd.f32 %v554_v24, %v553_v18  ;;  %v1920_v18 = vpop.f32.mrf.mxu1  ;;  %v566_v24 = vsel %vm506_vm0, %v1904_v27, 0.0 }
 0x12b   :  { %3455 = vst [vmem:[#allocation10_spill] sm:$0xff] %v1920_v18 }
 0x12c   :  { %v557_v29 = vadd.f32 %v556_v28, %v555_v25  ;;  %v1924_v28 = vpop.f32.mrf.mxu2 }
 0x12e   :  { %v559_v38 = vadd.f32 %v558_v32, %v557_v29  ;;  %v1926_v29 = vpop.f32.mrf.mxu3  ;;  %v568_v32 = vsel %vm506_vm0, %v1920_v18, 0.0 }
 0x12f   :  { %3456 = vst [vmem:[#allocation11_spill] sm:$0xff] %v1926_v29 }
 0x130   :  { %v561_v10 = vadd.f32 %v560_v49, %v559_v38  ;;  %v570_v49 = vsel %vm506_vm0, %v1771_v47, 0.0 }
 0x132   :  { %v563_v12 = vadd.f32 %v562_v11, %v561_v10  ;;  %v572_v11 = vsel %vm506_vm0, %v1782_v52, 0.0 }
 0x134   :  { %v565_v17 = vadd.f32 %v564_v13, %v563_v12  ;;  %v574_v13 = vsel %vm506_vm0, %v1788_v55, 0.0  ;;  %v1938_v34 = vpop.f32.mrf.mxu2 }
 0x135   :  { %3457 = vst [vmem:[#allocation12_spill] sm:$0xff] %v1938_v34 }
 0x136   :  { %v567_v25 = vadd.f32 %v566_v24, %v565_v17  ;;  %v576_v24 = vsel %vm506_vm0, %v1794_v58, 0.0  ;;  %v1940_v18 = vpop.f32.mrf.mxu3 }
 0x137   :  { %3458 = vst [vmem:[#allocation13_spill] sm:$0xff] %v1940_v18 }
 0x138   :  { %v569_v38 = vadd.f32 %v568_v32, %v567_v25  ;;  %v578_v25 = vsel %vm506_vm0, %v1800_v61, 0.0 }
 0x13a   :  { %v571_v10 = vadd.f32 %v570_v49, %v569_v38  ;;  %v580_v38 = vsel %vm506_vm0, %v1810_v2, 0.0 }
 0x13c   :  { %v573_v12 = vadd.f32 %v572_v11, %v571_v10  ;;  %v582_v10 = vsel %vm506_vm0, %v1820_v7, 0.0  ;;  %v1952_v58 = vpop.f32.mrf.mxu2 }
 0x13e   :  { %v575_v17 = vadd.f32 %v574_v13, %v573_v12  ;;  %v584_v12 = vsel %vm506_vm0, %v1840_v21, 0.0  ;;  %v1954_v61 = vpop.f32.mrf.mxu3 }
 0x13f   :  { %3459 = vst [vmem:[#allocation14_spill] sm:$0xff] %v1954_v61 }
 0x140   :  { %v577_v27 = vadd.f32 %v576_v24, %v575_v17  ;;  %v586_v17 = vsel %vm506_vm0, %v1858_v35, 0.0 }
 0x142   :  { %v579_v32 = vadd.f32 %v578_v25, %v577_v27  ;;  %v588_v27 = vsel %vm506_vm0, %v1876_v20, 0.0 }
 0x144   :  { %v581_v49 = vadd.f32 %v580_v38, %v579_v32  ;;  %v590_v32 = vsel %vm506_vm0, %v1892_v6, 0.0  ;;  %v1966_v35 = vpop.f32.mrf.mxu2 }
 0x146   :  { %v583_v11 = vadd.f32 %v582_v10, %v581_v49  ;;  %v592_v49 = vsel %vm506_vm0, %v1908_v30, 0.0  ;;  %v1968_v20 = vpop.f32.mrf.mxu3 }
 0x147   :  { %3460 = vst [vmem:[#allocation15_spill] sm:$0xff] %v1968_v20 }
 0x148   :  { %v585_v13 = vadd.f32 %v584_v12, %v583_v11  ;;  %v594_v11 = vsel %vm506_vm0, %v1924_v28, 0.0 }
 0x14a   :  { %v587_v24 = vadd.f32 %v586_v17, %v585_v13  ;;  %v596_v13 = vsel %vm506_vm0, %v1938_v34, 0.0 }
 0x14c   :  { %v589_v25 = vadd.f32 %v588_v27, %v587_v24  ;;  %v598_v24 = vsel %vm506_vm0, %v1952_v58, 0.0 }
 0x14e   :  { %v591_v38 = vadd.f32 %v590_v32, %v589_v25  ;;  %v600_v25 = vsel %vm506_vm0, %v1966_v35, 0.0  ;;  %v1980_v34 = vpop.f32.mrf.mxu3 }
 0x14f   :  { %3461 = vst [vmem:[#allocation16_spill] sm:$0xff] %v1980_v34 }
 0x150   :  { %v593_v10 = vadd.f32 %v592_v49, %v591_v38  ;;  %v602_v38 = vsel %vm506_vm0, %v1804_v63, 0.0 }
 0x152   :  { %v595_v12 = vadd.f32 %v594_v11, %v593_v10  ;;  %v604_v10 = vsel %vm506_vm0, %v1812_v3, 0.0 }
 0x154   :  { %v597_v17 = vadd.f32 %v596_v13, %v595_v12  ;;  %v606_v12 = vsel %vm506_vm0, %v1822_v8, 0.0 }
 0x156   :  { %v599_v27 = vadd.f32 %v598_v24, %v597_v17  ;;  %v608_v17 = vsel %vm506_vm0, %v1842_v23, 0.0  ;;  %v1992_v8 = vpop.f32.mrf.mxu3 }
 0x157   :  { %3462 = vst [vmem:[#allocation17_spill] sm:$0xff] %v1992_v8 }
 0x158   :  { %v601_v32 = vadd.f32 %v600_v25, %v599_v27  ;;  %v610_v27 = vsel %vm506_vm0, %v1862_v43, 0.0 }
 0x15a   :  { %v603_v49 = vadd.f32 %v602_v38, %v601_v32  ;;  %v612_v32 = vsel %vm506_vm0, %v1878_v22, 0.0 }
 0x15c   :  { %v605_v11 = vadd.f32 %v604_v10, %v603_v49  ;;  %v614_v49 = vsel %vm506_vm0, %v1894_v9, 0.0 }
 0x15e   :  { %v607_v13 = vadd.f32 %v606_v12, %v605_v11  ;;  %v616_v11 = vsel %vm506_vm0, %v1910_v31, 0.0  ;;  %v2002_v31 = vpop.f32.mrf.mxu3 }
 0x15f   :  { %3463 = vst [vmem:[#allocation18_spill] sm:$0xff] %v2002_v31 }
 0x160   :  { %v609_v24 = vadd.f32 %v608_v17, %v607_v13  ;;  %v618_v13 = vsel %vm506_vm0, %v1926_v29, 0.0 }
 0x162   :  { %v611_v25 = vadd.f32 %v610_v27, %v609_v24  ;;  %v620_v24 = vsel %vm506_vm0, %v1940_v18, 0.0 }
 0x164   :  { %v613_v38 = vadd.f32 %v612_v32, %v611_v25  ;;  %v622_v25 = vsel %vm506_vm0, %v1954_v61, 0.0 }
 0x166   :  { %v615_v10 = vadd.f32 %v614_v49, %v613_v38  ;;  %v624_v38 = vsel %vm506_vm0, %v1968_v20, 0.0  ;;  %v2010_v61 = vpop.f32.mrf.mxu3 }
 0x168   :  { %v617_v12 = vadd.f32 %v616_v11, %v615_v10  ;;  %v626_v10 = vsel %vm506_vm0, %v1980_v34, 0.0 }
 0x16a   :  { %v619_v17 = vadd.f32 %v618_v13, %v617_v12  ;;  %v628_v12 = vsel %vm506_vm0, %v1992_v8, 0.0 }
 0x16c   :  { %v621_v27 = vadd.f32 %v620_v24, %v619_v17  ;;  %v630_v17 = vsel %vm506_vm0, %v2002_v31, 0.0 }
 0x16e   :  { %v623_v32 = vadd.f32 %v622_v25, %v621_v27  ;;  %v632_v27 = vsel %vm506_vm0, %v2010_v61, 0.0 }
 0x170   :  { %v625_v49 = vadd.f32 %v624_v38, %v623_v32  ;;  %v1612_v32 = vmov 512.0  }
 0x171   :  { %1608 = vrcp.f32 %v1612_v32 }
 0x172   :  { %v627_v11 = vadd.f32 %v626_v10, %v625_v49 }
 0x174   :  { %v629_v13 = vadd.f32 %v628_v12, %v627_v11 }
 0x176   :  { %v631_v24 = vadd.f32 %v630_v17, %v629_v13 }
 0x177   :  { %v1609_v20 = vpop.eup %1608 }
 0x178   :  { %v633_v25 = vadd.f32 %v632_v27, %v631_v24  ;;  %v641_v49 = vmul.f32 512.0, %v1609_v20  ;;  %vm645_vm1 = vweird.f32 %v1609_v20 }
 0x17a   :  { %v634_v38 = vrot.slane %v633_v25, 4  ;;  %v642_v18 = vsub.f32 1.0, %v641_v49 }
 0x17c   :  { %v635_v34 = vadd.f32 %v634_v38, %v633_v25  ;;  %v643_v11 = vmul.f32 %v1609_v20, %v642_v18 }
 0x17e   :  { %v636_v10 = vrot.slane %v635_v34, 2  ;;  %v644_v29 = vadd.f32 %v1609_v20, %v643_v11 }
 0x180   :  { %v637_v8 = vadd.f32 %v636_v10, %v635_v34  ;;  %v2014_v17 = vsel %vm645_vm1, %v1609_v20, %v644_v29 }
 0x182   :  { %v638_v12 = vrot.slane %v637_v8, 1 }
 0x184   :  { %v639_v13 = vadd.f32 %v638_v12, %v637_v8 }
 0x186   :  { %v2017_v31 = vmul.f32 %v2014_v17, %v639_v13 }
 0x188   :  { %v2021_v24 = vsub.f32 %v1746_v36, %v2017_v31  ;;  %v2025_v27 = vsub.f32 %v1756_v40, %v2017_v31  ;;  %v2029_v34 = vsub.f32 %v1760_v42, %v2017_v31  ;;  %v2033_v8 = vsub.f32 %v1767_v45, %v2017_v31 }
 0x189   :  { %v2041_v36 = vsub.f32 %v1773_v48, %v2017_v31  ;;  %v2047_v42 = vsub.f32 %v1778_v50, %v2017_v31  ;;  %v2055_v38 = vsub.f32 %v1784_v53, %v2017_v31  ;;  %v2062_v50 = vsub.f32 %v1790_v56, %v2017_v31 }
 0x18a   :  { %v712_v20 = vmul.f32 %v2021_v24, %v2021_v24  ;;  %v713_v18 = vmul.f32 %v2025_v27, %v2025_v27  ;;  %v714_v40 = vmul.f32 %v2029_v34, %v2029_v34  ;;  %v715_v45 = vmul.f32 %v2033_v8, %v2033_v8 }
 0x18b   :  { %v716_v48 = vmul.f32 %v2041_v36, %v2041_v36  ;;  %v717_v11 = vmul.f32 %v2047_v42, %v2047_v42  ;;  %v2069_v53 = vsub.f32 %v1796_v59, %v2017_v31  ;;  %v2076_v56 = vsub.f32 %v1802_v62, %v2017_v31 }
 0x18c   :  { %v776_v29 = vsel %vm506_vm0, %v712_v20, 0.0  ;;  %v777_v25 = vsel %vm506_vm0, %v713_v18, 0.0  ;;  %v779_v49 = vsel %vm506_vm0, %v714_v40, 0.0  ;;  %v781_v12 = vsel %vm506_vm0, %v715_v45, 0.0 }
 0x18d   :  { %v778_v32 = vadd.f32 %v777_v25, %v776_v29  ;;  %v718_v20 = vmul.f32 %v2055_v38, %v2055_v38  ;;  %v783_v18 = vsel %vm506_vm0, %v716_v48, 0.0  ;;  %v719_v29 = vmul.f32 %v2062_v50, %v2062_v50 }
 0x18e   :  { %v785_v45 = vsel %vm506_vm0, %v717_v11, 0.0  ;;  %v2083_v59 = vsub.f32 %v1806_v0, %v2017_v31  ;;  %v2090_v62 = vsub.f32 %v1814_v4, %v2017_v31  ;;  %v2097_v0 = vsub.f32 %v1830_v14, %v2017_v31 }
 0x18f   :  { %v780_v10 = vadd.f32 %v779_v49, %v778_v32  ;;  %v720_v32 = vmul.f32 %v2069_v53, %v2069_v53  ;;  %v787_v48 = vsel %vm506_vm0, %v718_v20, 0.0  ;;  %v789_v11 = vsel %vm506_vm0, %v719_v29, 0.0 }
 0x190   :  { %v2104_v4 = vsub.f32 %v1846_v26, %v2017_v31  ;;  %v2111_v14 = vsub.f32 %v1860_v39, %v2017_v31  ;;  %v2118_v26 = vsub.f32 %v1870_v15, %v2017_v31  ;;  %v2125_v39 = vsub.f32 %v1748_v37, %v2017_v31 }
 0x191   :  { %v782_v13 = vadd.f32 %v781_v12, %v780_v10  ;;  %v721_v10 = vmul.f32 %v2076_v56, %v2076_v56  ;;  %v791_v20 = vsel %vm506_vm0, %v720_v32, 0.0  ;;  %v2132_v15 = vsub.f32 %v1758_v41, %v2017_v31 }
 0x192   :  { %v2139_v37 = vsub.f32 %v1765_v44, %v2017_v31  ;;  %v2146_v41 = vsub.f32 %v1769_v46, %v2017_v31  ;;  %v2153_v44 = vsub.f32 %v1780_v51, %v2017_v31  ;;  %v2160_v46 = vsub.f32 %v1786_v54, %v2017_v31 }
 0x193   :  { %v784_v40 = vadd.f32 %v783_v18, %v782_v13  ;;  %v722_v13 = vmul.f32 %v2083_v59, %v2083_v59  ;;  %v793_v29 = vsel %vm506_vm0, %v721_v10, 0.0  ;;  %v2167_v51 = vsub.f32 %v1792_v57, %v2017_v31 }
 0x194   :  { %v2174_v54 = vsub.f32 %v1798_v60, %v2017_v31  ;;  %v2181_v57 = vsub.f32 %v1808_v1, %v2017_v31  ;;  %v2188_v60 = vsub.f32 %v1816_v5, %v2017_v31  ;;  %v2195_v1 = vsub.f32 %v1836_v19, %v2017_v31 }
 0x195   :  { %v786_v25 = vadd.f32 %v785_v45, %v784_v40  ;;  %v723_v40 = vmul.f32 %v2090_v62, %v2090_v62  ;;  %v795_v32 = vsel %vm506_vm0, %v722_v13, 0.0  ;;  %v2202_v5 = vsub.f32 %v1854_v33, %v2017_v31 }
 0x196   :  { %v2209_v19 = vsub.f32 %v1872_v16, %v2017_v31 }
 0x197   :  { %v788_v49 = vadd.f32 %v787_v48, %v786_v25  ;;  %v724_v25 = vmul.f32 %v2097_v0, %v2097_v0  ;;  %v797_v10 = vsel %vm506_vm0, %v723_v40, 0.0 }
 0x199   :  { %v790_v12 = vadd.f32 %v789_v11, %v788_v49  ;;  %v725_v49 = vmul.f32 %v2104_v4, %v2104_v4  ;;  %v799_v13 = vsel %vm506_vm0, %v724_v25, 0.0 }
 0x19b   :  { %v792_v18 = vadd.f32 %v791_v20, %v790_v12  ;;  %v726_v12 = vmul.f32 %v2111_v14, %v2111_v14  ;;  %v801_v40 = vsel %vm506_vm0, %v725_v49, 0.0 }
 0x19d   :  { %v794_v45 = vadd.f32 %v793_v29, %v792_v18  ;;  %v727_v18 = vmul.f32 %v2118_v26, %v2118_v26  ;;  %v803_v25 = vsel %vm506_vm0, %v726_v12, 0.0 }
 0x19f   :  { %v796_v48 = vadd.f32 %v795_v32, %v794_v45  ;;  %v728_v45 = vmul.f32 %v2125_v39, %v2125_v39  ;;  %v805_v49 = vsel %vm506_vm0, %v727_v18, 0.0 }
 0x1a1   :  { %v798_v11 = vadd.f32 %v797_v10, %v796_v48  ;;  %v729_v48 = vmul.f32 %v2132_v15, %v2132_v15  ;;  %v807_v12 = vsel %vm506_vm0, %v728_v45, 0.0 }
 0x1a3   :  { %v800_v20 = vadd.f32 %v799_v13, %v798_v11  ;;  %v730_v11 = vmul.f32 %v2139_v37, %v2139_v37  ;;  %v809_v18 = vsel %vm506_vm0, %v729_v48, 0.0 }
 0x1a5   :  { %v802_v29 = vadd.f32 %v801_v40, %v800_v20  ;;  %v731_v20 = vmul.f32 %v2146_v41, %v2146_v41  ;;  %v811_v45 = vsel %vm506_vm0, %v730_v11, 0.0 }
 0x1a7   :  { %v804_v32 = vadd.f32 %v803_v25, %v802_v29  ;;  %v732_v29 = vmul.f32 %v2153_v44, %v2153_v44  ;;  %v813_v48 = vsel %vm506_vm0, %v731_v20, 0.0 }
 0x1a9   :  { %v806_v10 = vadd.f32 %v805_v49, %v804_v32  ;;  %v733_v32 = vmul.f32 %v2160_v46, %v2160_v46  ;;  %v815_v11 = vsel %vm506_vm0, %v732_v29, 0.0 }
 0x1ab   :  { %v808_v13 = vadd.f32 %v807_v12, %v806_v10  ;;  %v734_v10 = vmul.f32 %v2167_v51, %v2167_v51  ;;  %v817_v20 = vsel %vm506_vm0, %v733_v32, 0.0 }
 0x1ad   :  { %v810_v40 = vadd.f32 %v809_v18, %v808_v13  ;;  %v735_v13 = vmul.f32 %v2174_v54, %v2174_v54  ;;  %v819_v29 = vsel %vm506_vm0, %v734_v10, 0.0 }
 0x1af   :  { %v812_v25 = vadd.f32 %v811_v45, %v810_v40  ;;  %v736_v40 = vmul.f32 %v2181_v57, %v2181_v57  ;;  %v821_v32 = vsel %vm506_vm0, %v735_v13, 0.0 }
 0x1b1   :  { %v814_v49 = vadd.f32 %v813_v48, %v812_v25  ;;  %v737_v25 = vmul.f32 %v2188_v60, %v2188_v60  ;;  %v823_v10 = vsel %vm506_vm0, %v736_v40, 0.0 }
 0x1b3   :  { %v816_v12 = vadd.f32 %v815_v11, %v814_v49  ;;  %v738_v49 = vmul.f32 %v2195_v1, %v2195_v1  ;;  %v825_v13 = vsel %vm506_vm0, %v737_v25, 0.0 }
 0x1b5   :  { %v818_v18 = vadd.f32 %v817_v20, %v816_v12  ;;  %v3464_v12 = vld [vmem:[#allocation7_spill] sm:$0xff]  ;;  %v739_v20 = vmul.f32 %v2202_v5, %v2202_v5  ;;  %v827_v40 = vsel %vm506_vm0, %v738_v49, 0.0 }
 0x1b6   :  { %v2216_v33 = vsub.f32 %v3464_v12, %v2017_v31 }
 0x1b7   :  { %v820_v45 = vadd.f32 %v819_v29, %v818_v18  ;;  %v3465_v29 = vld [vmem:[#allocation8_spill] sm:$0xff]  ;;  %v829_v25 = vsel %vm506_vm0, %v739_v20, 0.0 }
 0x1b8   :  { %v2223_v16 = vsub.f32 %v3465_v29, %v2017_v31  ;;  %v741_v12 = vmul.f32 %v2216_v33, %v2216_v33 }
 0x1b9   :  { %v822_v48 = vadd.f32 %v821_v32, %v820_v45  ;;  %v740_v45 = vmul.f32 %v2209_v19, %v2209_v19 }
 0x1ba   :  { %v742_v29 = vmul.f32 %v2223_v16, %v2223_v16  ;;  %v833_v20 = vsel %vm506_vm0, %v741_v12, 0.0 }
 0x1bb   :  { %v824_v11 = vadd.f32 %v823_v10, %v822_v48  ;;  %v3466_v48 = vld [vmem:[#allocation10_spill] sm:$0xff]  ;;  %v831_v49 = vsel %vm506_vm0, %v740_v45, 0.0 }
 0x1bc   :  { %v2230_v10 = vsub.f32 %v3466_v48, %v2017_v31  ;;  %v835_v45 = vsel %vm506_vm0, %v742_v29, 0.0 }
 0x1bd   :  { %v826_v18 = vadd.f32 %v825_v13, %v824_v11  ;;  %v2237_v13 = vsub.f32 %v1771_v47, %v2017_v31  ;;  %v2251_v47 = vsub.f32 %v1788_v55, %v2017_v31 }
 0x1be   :  { %3467 = vst [vmem:[#allocation7_spill] sm:$0xff] %v2230_v10  ;;  %v743_v48 = vmul.f32 %v2230_v10, %v2230_v10 }
 0x1bf   :  { %v828_v32 = vadd.f32 %v827_v40, %v826_v18  ;;  %3468 = vst [vmem:[#allocation8_spill] sm:$0xff] %v2237_v13  ;;  %v2244_v40 = vsub.f32 %v1782_v52, %v2017_v31 }
 0x1c0   :  { %v837_v12 = vsel %vm506_vm0, %v743_v48, 0.0 }
 0x1c1   :  { %v830_v11 = vadd.f32 %v829_v25, %v828_v32  ;;  %v744_v25 = vmul.f32 %v2237_v13, %v2237_v13  ;;  %v745_v10 = vmul.f32 %v2244_v40, %v2244_v40  ;;  %v746_v13 = vmul.f32 %v2251_v47, %v2251_v47 }
 0x1c3   :  { %v832_v18 = vadd.f32 %v831_v49, %v830_v11  ;;  %v3469_v49 = vld [vmem:[#allocation2_spill] sm:$0xff]  ;;  %v839_v29 = vsel %vm506_vm0, %v744_v25, 0.0  ;;  %v841_v48 = vsel %vm506_vm0, %v745_v10, 0.0  ;;  %v843_v25 = vsel %vm506_vm0, %v746_v13, 0.0 }
 0x1c4   :  { %v2258_v52 = vsub.f32 %v3469_v49, %v2017_v31 }
 0x1c5   :  { %v834_v32 = vadd.f32 %v833_v20, %v832_v18  ;;  %v3470_v20 = vld [vmem:[#allocation3_spill] sm:$0xff] }
 0x1c6   :  { %v2265_v55 = vsub.f32 %v3470_v20, %v2017_v31  ;;  %v747_v49 = vmul.f32 %v2258_v52, %v2258_v52 }
 0x1c7   :  { %v836_v11 = vadd.f32 %v835_v45, %v834_v32  ;;  %v2272_v45 = vsub.f32 %v1810_v2, %v2017_v31  ;;  %v2286_v2 = vsub.f32 %v1840_v21, %v2017_v31 }
 0x1c8   :  { %3471 = vst [vmem:[#allocation10_spill] sm:$0xff] %v2265_v55  ;;  %v748_v20 = vmul.f32 %v2265_v55, %v2265_v55  ;;  %v845_v10 = vsel %vm506_vm0, %v747_v49, 0.0 }
 0x1c9   :  { %v838_v18 = vadd.f32 %v837_v12, %v836_v11  ;;  %3472 = vst [vmem:[#allocation2_spill] sm:$0xff] %v2272_v45  ;;  %v2279_v12 = vsub.f32 %v1820_v7, %v2017_v31 }
 0x1ca   :  { %v847_v13 = vsel %vm506_vm0, %v748_v20, 0.0 }
 0x1cb   :  { %v840_v32 = vadd.f32 %v839_v29, %v838_v18  ;;  %v749_v29 = vmul.f32 %v2272_v45, %v2272_v45  ;;  %v750_v55 = vmul.f32 %v2279_v12, %v2279_v12  ;;  %v751_v45 = vmul.f32 %v2286_v2, %v2286_v2 }
 0x1cd   :  { %v842_v11 = vadd.f32 %v841_v48, %v840_v32  ;;  %v3473_v48 = vld [vmem:[#allocation5_spill] sm:$0xff]  ;;  %v849_v49 = vsel %vm506_vm0, %v749_v29, 0.0  ;;  %v851_v20 = vsel %vm506_vm0, %v750_v55, 0.0  ;;  %v853_v29 = vsel %vm506_vm0, %v751_v45, 0.0 }
 0x1ce   :  { %v2293_v7 = vsub.f32 %v3473_v48, %v2017_v31 }
 0x1cf   :  { %v844_v18 = vadd.f32 %v843_v25, %v842_v11  ;;  %v3474_v25 = vld [vmem:[#allocation6_spill] sm:$0xff] }
 0x1d0   :  { %v2300_v21 = vsub.f32 %v3474_v25, %v2017_v31  ;;  %v752_v48 = vmul.f32 %v2293_v7, %v2293_v7 }
 0x1d1   :  { %v846_v32 = vadd.f32 %v845_v10, %v844_v18  ;;  %v2307_v10 = vsub.f32 %v1892_v6, %v2017_v31  ;;  %v2321_v6 = vsub.f32 %v1924_v28, %v2017_v31  ;;  %v2335_v28 = vsub.f32 %v1952_v58, %v2017_v31 }
 0x1d2   :  { %3475 = vst [vmem:[#allocation3_spill] sm:$0xff] %v2300_v21  ;;  %v753_v25 = vmul.f32 %v2300_v21, %v2300_v21  ;;  %v855_v55 = vsel %vm506_vm0, %v752_v48, 0.0  ;;  %v2349_v58 = vsub.f32 %v1804_v63, %v2017_v31 }
 0x1d3   :  { %v848_v11 = vadd.f32 %v847_v13, %v846_v32  ;;  %v2314_v13 = vsub.f32 %v1908_v30, %v2017_v31  ;;  %3477 = vst [vmem:[#allocation5_spill] sm:$0xff] %v2335_v28 }
 0x1d4   :  { %v857_v45 = vsel %vm506_vm0, %v753_v25, 0.0  ;;  %3478 = vst [vmem:[#allocation6_spill] sm:$0xff] %v2349_v58 }
 0x1d5   :  { %v850_v18 = vadd.f32 %v849_v49, %v848_v11  ;;  %v754_v49 = vmul.f32 %v2307_v10, %v2307_v10  ;;  %v755_v21 = vmul.f32 %v2314_v13, %v2314_v13 }
 0x1d7   :  { %v852_v32 = vadd.f32 %v851_v20, %v850_v18  ;;  %v3476_v20 = vld [vmem:[#allocation12_spill] sm:$0xff]  ;;  %v859_v48 = vsel %vm506_vm0, %v754_v49, 0.0  ;;  %v861_v25 = vsel %vm506_vm0, %v755_v21, 0.0 }
 0x1d8   :  { %v2328_v30 = vsub.f32 %v3476_v20, %v2017_v31 }
 0x1d9   :  { %v854_v11 = vadd.f32 %v853_v29, %v852_v32  ;;  %v756_v29 = vmul.f32 %v2321_v6, %v2321_v6 }
 0x1da   :  { %v757_v20 = vmul.f32 %v2328_v30, %v2328_v30 }
 0x1db   :  { %v856_v18 = vadd.f32 %v855_v55, %v854_v11  ;;  %v2342_v55 = vsub.f32 %v1966_v35, %v2017_v31  ;;  %v863_v49 = vsel %vm506_vm0, %v756_v29, 0.0  ;;  %v2356_v35 = vsub.f32 %v1812_v3, %v2017_v31 }
 0x1dc   :  { %v865_v21 = vsel %vm506_vm0, %v757_v20, 0.0  ;;  %v2370_v3 = vsub.f32 %v1842_v23, %v2017_v31  ;;  %v2384_v23 = vsub.f32 %v1878_v22, %v2017_v31 }
 0x1dd   :  { %v858_v32 = vadd.f32 %v857_v45, %v856_v18  ;;  %v758_v45 = vmul.f32 %v2335_v28, %v2335_v28  ;;  %3479 = vst [vmem:[#allocation12_spill] sm:$0xff] %v2356_v35  ;;  %v760_v28 = vmul.f32 %v2349_v58, %v2349_v58 }
 0x1de   :  { %3482 = vst [vmem:[#allocation19_spill] sm:$0xff] %v2370_v3 }
 0x1df   :  { %v860_v11 = vadd.f32 %v859_v48, %v858_v32  ;;  %v759_v48 = vmul.f32 %v2342_v55, %v2342_v55  ;;  %v867_v29 = vsel %vm506_vm0, %v758_v45, 0.0  ;;  %v871_v45 = vsel %vm506_vm0, %v760_v28, 0.0  ;;  %3484 = vst [vmem:[#allocation21_spill] sm:$0xff] %v2384_v23 }
 0x1e1   :  { %v862_v18 = vadd.f32 %v861_v25, %v860_v11  ;;  %v3480_v25 = vld [vmem:[#allocation4_spill] sm:$0xff]  ;;  %v869_v20 = vsel %vm506_vm0, %v759_v48, 0.0 }
 0x1e2   :  { %v2363_v63 = vsub.f32 %v3480_v25, %v2017_v31 }
 0x1e3   :  { %v864_v32 = vadd.f32 %v863_v49, %v862_v18  ;;  %v761_v49 = vmul.f32 %v2356_v35, %v2356_v35 }
 0x1e4   :  { %3481 = vst [vmem:[#allocation4_spill] sm:$0xff] %v2363_v63  ;;  %v762_v25 = vmul.f32 %v2363_v63, %v2363_v63 }
 0x1e5   :  { %v866_v11 = vadd.f32 %v865_v21, %v864_v32  ;;  %v2377_v21 = vsub.f32 %v1862_v43, %v2017_v31  ;;  %v873_v48 = vsel %vm506_vm0, %v761_v49, 0.0  ;;  %v2391_v43 = vsub.f32 %v1894_v9, %v2017_v31 }
 0x1e6   :  { %v875_v28 = vsel %vm506_vm0, %v762_v25, 0.0 }
 0x1e7   :  { %v868_v18 = vadd.f32 %v867_v29, %v866_v11  ;;  %3483 = vst [vmem:[#allocation20_spill] sm:$0xff] %v2377_v21  ;;  %v763_v29 = vmul.f32 %v2370_v3, %v2370_v3  ;;  %v765_v3 = vmul.f32 %v2384_v23, %v2384_v23 }
 0x1e8   :  { %3485 = vst [vmem:[#allocation22_spill] sm:$0xff] %v2391_v43 }
 0x1e9   :  { %v870_v32 = vadd.f32 %v869_v20, %v868_v18  ;;  %v764_v20 = vmul.f32 %v2377_v21, %v2377_v21  ;;  %v877_v49 = vsel %vm506_vm0, %v763_v29, 0.0  ;;  %v766_v21 = vmul.f32 %v2391_v43, %v2391_v43 }
 0x1ea   :  { %v881_v29 = vsel %vm506_vm0, %v765_v3, 0.0 }
 0x1eb   :  { %v872_v11 = vadd.f32 %v871_v45, %v870_v32  ;;  %v3486_v45 = vld [vmem:[#allocation9_spill] sm:$0xff]  ;;  %v879_v25 = vsel %vm506_vm0, %v764_v20, 0.0  ;;  %v883_v20 = vsel %vm506_vm0, %v766_v21, 0.0 }
 0x1ec   :  { %v2398_v22 = vsub.f32 %v3486_v45, %v2017_v31 }
 0x1ed   :  { %v874_v18 = vadd.f32 %v873_v48, %v872_v11  ;;  %v3488_v48 = vld [vmem:[#allocation11_spill] sm:$0xff] }
 0x1ee   :  { %3487 = vst [vmem:[#allocation9_spill] sm:$0xff] %v2398_v22  ;;  %v2405_v9 = vsub.f32 %v3488_v48, %v2017_v31  ;;  %v767_v23 = vmul.f32 %v2398_v22, %v2398_v22 }
 0x1ef   :  { %v876_v32 = vadd.f32 %v875_v28, %v874_v18  ;;  %v3490_v28 = vld [vmem:[#allocation13_spill] sm:$0xff] }
 0x1f0   :  { %3489 = vst [vmem:[#allocation11_spill] sm:$0xff] %v2405_v9  ;;  %v2412_v45 = vsub.f32 %v3490_v28, %v2017_v31  ;;  %v768_v43 = vmul.f32 %v2405_v9, %v2405_v9  ;;  %v885_v3 = vsel %vm506_vm0, %v767_v23, 0.0  ;;  %v3496_v9 = vld [vmem:[#allocation16_spill] sm:$0xff]  ;;  %v3498_v23 = vld [vmem:[#allocation17_spill] sm:$0xff] }
 0x1f1   :  { %v878_v11 = vadd.f32 %v877_v49, %v876_v32  ;;  %v3492_v49 = vld [vmem:[#allocation14_spill] sm:$0xff]  ;;  %v2436_v63 = vsub.f32 %v3496_v9, %v2017_v31 }
 0x1f2   :  { %3491 = vst [vmem:[#allocation13_spill] sm:$0xff] %v2412_v45  ;;  %v2419_v48 = vsub.f32 %v3492_v49, %v2017_v31  ;;  %v769_v22 = vmul.f32 %v2412_v45, %v2412_v45  ;;  %v887_v49 = vsel %vm506_vm0, %v768_v43, 0.0 }
 0x1f3   :  { %v880_v18 = vadd.f32 %v879_v25, %v878_v11  ;;  %v3494_v25 = vld [vmem:[#allocation15_spill] sm:$0xff]  ;;  %3497 = vst [vmem:[#allocation16_spill] sm:$0xff] %v2436_v63  ;;  %v772_v43 = vmul.f32 %v2436_v63, %v2436_v63 }
 0x1f4   :  { %3493 = vst [vmem:[#allocation14_spill] sm:$0xff] %v2419_v48  ;;  %v2426_v28 = vsub.f32 %v3494_v25, %v2017_v31 }
 0x1f5   :  { %v882_v32 = vadd.f32 %v881_v29, %v880_v18  ;;  %v770_v29 = vmul.f32 %v2419_v48, %v2419_v48 }
 0x1f6   :  { %3495 = vst [vmem:[#allocation15_spill] sm:$0xff] %v2426_v28 }
 0x1f7   :  { %v884_v11 = vadd.f32 %v883_v20, %v882_v32  ;;  %v771_v32 = vmul.f32 %v2426_v28, %v2426_v28  ;;  %v889_v20 = vsel %vm506_vm0, %v769_v22, 0.0  ;;  %v891_v45 = vsel %vm506_vm0, %v770_v29, 0.0 }
 0x1f8   :  { %v895_v29 = vsel %vm506_vm0, %v772_v43, 0.0 }
 0x1f9   :  { %v886_v18 = vadd.f32 %v885_v3, %v884_v11  ;;  %v2444_v11 = vsub.f32 %v3498_v23, %v2017_v31  ;;  %v893_v9 = vsel %vm506_vm0, %v771_v32, 0.0 }
 0x1fb   :  { %v888_v21 = vadd.f32 %v887_v49, %v886_v18  ;;  %3499 = vst [vmem:[#allocation17_spill] sm:$0xff] %v2444_v11  ;;  %v3500_v18 = vld [vmem:[#allocation18_spill] sm:$0xff]  ;;  %v773_v22 = vmul.f32 %v2444_v11, %v2444_v11 }
 0x1fc   :  { %v2451_v49 = vsub.f32 %v3500_v18, %v2017_v31 }
 0x1fd   :  { %v890_v25 = vadd.f32 %v889_v20, %v888_v21  ;;  %v711_v20 = vsub.f32 %v2010_v61, %v2017_v31 }
 0x1fe   :  { %3501 = vst [vmem:[#allocation18_spill] sm:$0xff] %v2451_v49  ;;  %v774_v23 = vmul.f32 %v2451_v49, %v2451_v49 }
 0x1ff   :  { %v892_v3 = vadd.f32 %v891_v45, %v890_v25  ;;  %v897_v45 = vsel %vm506_vm0, %v773_v22, 0.0  ;;  %v775_v25 = vmul.f32 %v711_v20, %v711_v20 }
 0x201   :  { %v894_v48 = vadd.f32 %v893_v9, %v892_v3  ;;  %v899_v3 = vsel %vm506_vm0, %v774_v23, 0.0  ;;  %v901_v18 = vsel %vm506_vm0, %v775_v25, 0.0 }
 0x203   :  { %v896_v21 = vadd.f32 %v895_v29, %v894_v48 }
 0x205   :  { %v898_v32 = vadd.f32 %v897_v45, %v896_v21 }
 0x207   :  { %v900_v9 = vadd.f32 %v899_v3, %v898_v32 }
 0x209   :  { %v902_v63 = vadd.f32 %v901_v18, %v900_v9  ;;  %v3503_v9 = vld [vmem:[#allocation7_spill] sm:$0xff]  ;;  %v3504_v18 = vld [vmem:[#allocation8_spill] sm:$0xff] }
 0x20b   :  { %v903_v11 = vrot.slane %v902_v63, 4 }
 0x20d   :  { %v904_v28 = vadd.f32 %v903_v11, %v902_v63 }
 0x20f   :  { %v905_v43 = vrot.slane %v904_v28, 2 }
 0x211   :  { %v906_v48 = vadd.f32 %v905_v43, %v904_v28  ;;  %v2470_v28 = vld [vmem:[%s3405_s2] ss:$0 sm:$0xff] }
 0x212   :  { %v3505_v43 = vld [vmem:[#allocation10_spill] sm:$0xff] }
 0x213   :  { %v907_v29 = vrot.slane %v906_v48, 1 }
 0x215   :  { %v908_v35 = vadd.f32 %v907_v29, %v906_v48  ;;  %v3506_v29 = vld [vmem:[#allocation2_spill] sm:$0xff] }
 0x217   :  { %v909_v61 = vmul.f32 %v908_v35, %v2014_v17  ;;  %v2476_v35 = vld [vmem:[%s3406_s3] ss:$0 sm:$0xff] }
 0x219   :  { %v910_v31 = vadd.f32 1e-05, %v909_v61 }
 0x21b   :  { %1610 = vrsqrt.f32 %v910_v31  ;;  %vm917_vm3 = vweird.f32 %v910_v31 }
 0x221   :  { %v1611_v49 = vpop.eup %1610 }
 0x222   :  { %v912_v22 = vmul.f32 %v1611_v49, %v910_v31  ;;  %vm918_vm2 = vweird.f32 %v1611_v49  ;;  %v3507_v31 = vld [vmem:[#allocation3_spill] sm:$0xff] }
 0x223   :  { %vm919_vm4 = vmor %vm917_vm3, %vm918_vm2 }
 0x224   :  { %v913_v21 = vmul.f32 %v1611_v49, %v912_v22 }
 0x226   :  { %v914_v45 = vmul.f32 0.5, %v913_v21 }
 0x228   :  { %v915_v58 = vsub.f32 1.5, %v914_v45  ;;  %v3508_v45 = vld [vmem:[#allocation5_spill] sm:$0xff] }
 0x22a   :  { %v916_v23 = vmul.f32 %v1611_v49, %v915_v58 }
 0x22c   :  { %v2464_v32 = vsel %vm919_vm4, %v1611_v49, %v916_v23 }
 0x22d   :  { %v984_v63 = vmul.f32 %v2464_v32, %v711_v20  ;;  %v2480_v58 = vmul.f32 %v2464_v32, %v2021_v24  ;;  %v2484_v11 = vmul.f32 %v2464_v32, %v2025_v27  ;;  %v2488_v49 = vmul.f32 %v2464_v32, %v2029_v34 }
 0x22e   :  { %v2492_v20 = vmul.f32 %v2464_v32, %v2033_v8  ;;  %v2496_v25 = vmul.f32 %v2464_v32, %v2041_v36  ;;  %v2503_v24 = vmul.f32 %v2464_v32, %v2047_v42  ;;  %v2507_v27 = vmul.f32 %v2464_v32, %v2055_v38 }
 0x22f   :  { %v1052_v17 = vmul.f32 %v2470_v28, %v984_v63  ;;  %v2511_v34 = vmul.f32 %v2464_v32, %v2062_v50  ;;  %v2515_v8 = vmul.f32 %v2464_v32, %v2069_v53  ;;  %v2519_v36 = vmul.f32 %v2464_v32, %v2076_v56  ;;  %v3509_v63 = vld [vmem:[#allocation6_spill] sm:$0xff] }
 0x230   :  { %v2523_v42 = vmul.f32 %v2464_v32, %v2083_v59  ;;  %v2527_v38 = vmul.f32 %v2464_v32, %v2090_v62  ;;  %v2531_v50 = vmul.f32 %v2464_v32, %v2097_v0  ;;  %v2535_v53 = vmul.f32 %v2464_v32, %v2104_v4 }
 0x231   :  { %v2499_v3 = vadd.f32 %v2476_v35, %v1052_v17  ;;  %v2539_v56 = vmul.f32 %v2464_v32, %v2111_v14  ;;  %v2543_v59 = vmul.f32 %v2464_v32, %v2118_v26  ;;  %v2547_v62 = vmul.f32 %v2464_v32, %v2125_v39  ;;  %v3510_v17 = vld [vmem:[#allocation12_spill] sm:$0xff] }
 0x232   :  { %v2551_v0 = vmul.f32 %v2464_v32, %v2132_v15  ;;  %v2555_v4 = vmul.f32 %v2464_v32, %v2139_v37  ;;  %v2559_v14 = vmul.f32 %v2464_v32, %v2146_v41  ;;  %v2563_v26 = vmul.f32 %v2464_v32, %v2153_v44 }
 0x233   :  { %3502 = vst [vmem:[#allocation23_spill] sm:$0xff] %v2499_v3  ;;  %v2567_v39 = vmul.f32 %v2464_v32, %v2160_v46  ;;  %v2571_v15 = vmul.f32 %v2464_v32, %v2167_v51  ;;  %v2575_v37 = vmul.f32 %v2464_v32, %v2174_v54  ;;  %v2579_v41 = vmul.f32 %v2464_v32, %v2181_v57  ;;  %v3521_v3 = vld [vmem:[#allocation9_spill] sm:$0xff] }
 0x234   :  { %v2583_v44 = vmul.f32 %v2464_v32, %v2188_v60  ;;  %v2587_v46 = vmul.f32 %v2464_v32, %v2195_v1  ;;  %v2591_v51 = vmul.f32 %v2464_v32, %v2202_v5  ;;  %v2595_v54 = vmul.f32 %v2464_v32, %v2209_v19 }
 0x235   :  { %v2599_v57 = vmul.f32 %v2464_v32, %v2216_v33  ;;  %v2603_v60 = vmul.f32 %v2464_v32, %v2223_v16  ;;  %v2607_v1 = vmul.f32 %v2464_v32, %v3503_v9  ;;  %v2611_v5 = vmul.f32 %v2464_v32, %v3504_v18  ;;  %v3511_v9 = vld [vmem:[#allocation4_spill] sm:$0xff]  ;;  %v3513_v18 = vld [vmem:[#allocation19_spill] sm:$0xff] }
 0x236   :  { %v2615_v19 = vmul.f32 %v2464_v32, %v2244_v40  ;;  %v2619_v33 = vmul.f32 %v2464_v32, %v2251_v47  ;;  %v2623_v16 = vmul.f32 %v2464_v32, %v2258_v52  ;;  %v2627_v48 = vmul.f32 %v2464_v32, %v3505_v43 }
 0x237   :  { %v2631_v61 = vmul.f32 %v2464_v32, %v3506_v29  ;;  %v2635_v40 = vmul.f32 %v2464_v32, %v2279_v12  ;;  %v2639_v47 = vmul.f32 %v2464_v32, %v2286_v2  ;;  %v2643_v52 = vmul.f32 %v2464_v32, %v2293_v7  ;;  %v3515_v29 = vld [vmem:[#allocation20_spill] sm:$0xff] }
 0x238   :  { %v2647_v22 = vmul.f32 %v2464_v32, %v3507_v31  ;;  %v2651_v21 = vmul.f32 %v2464_v32, %v2307_v10  ;;  %v2655_v12 = vmul.f32 %v2464_v32, %v2314_v13  ;;  %v2659_v2 = vmul.f32 %v2464_v32, %v2321_v6  ;;  %v3517_v31 = vld [vmem:[#allocation21_spill] sm:$0xff] }
 0x239   :  { %v2663_v7 = vmul.f32 %v2464_v32, %v2328_v30  ;;  %v2667_v23 = vmul.f32 %v2464_v32, %v3508_v45  ;;  %v2671_v10 = vmul.f32 %v2464_v32, %v2342_v55  ;;  %v2675_v13 = vmul.f32 %v2464_v32, %v3509_v63  ;;  %v3519_v63 = vld [vmem:[#allocation22_spill] sm:$0xff] }
 0x23a   :  { %v2679_v6 = vmul.f32 %v2464_v32, %v3510_v17  ;;  %v2683_v30 = vmul.f32 %v2464_v32, %v3511_v9  ;;  %v2687_v43 = vmul.f32 %v2464_v32, %v3513_v18  ;;  %v2691_v55 = vmul.f32 %v2464_v32, %v3515_v29 }
 0x23b   :  { %v2695_v45 = vmul.f32 %v2464_v32, %v3517_v31  ;;  %v2699_v17 = vmul.f32 %v2464_v32, %v3519_v63  ;;  %v2703_v9 = vmul.f32 %v2464_v32, %v3521_v3 }
 0x23c   :  { %3512 = vst [vmem:[#allocation7_spill] sm:$0xff] %v2683_v30  ;;  %v3523_v30 = vld [vmem:[#allocation11_spill] sm:$0xff] }
 0x23d   :  { %3514 = vst [vmem:[#allocation8_spill] sm:$0xff] %v2687_v43  ;;  %v2707_v18 = vmul.f32 %v2464_v32, %v3523_v30  ;;  %v3525_v43 = vld [vmem:[#allocation13_spill] sm:$0xff] }
 0x23e   :  { %3516 = vst [vmem:[#allocation10_spill] sm:$0xff] %v2691_v55  ;;  %v2711_v29 = vmul.f32 %v2464_v32, %v3525_v43  ;;  %v3526_v55 = vld [vmem:[#allocation14_spill] sm:$0xff] }
 0x23f   :  { %3518 = vst [vmem:[#allocation2_spill] sm:$0xff] %v2695_v45  ;;  %v2715_v31 = vmul.f32 %v2464_v32, %v3526_v55  ;;  %v3528_v45 = vld [vmem:[#allocation15_spill] sm:$0xff]  ;;  %v989_v55 = vmul.f32 %v2470_v28, %v2480_v58  ;;  %v2751_v58 = vmul.f32 %v2470_v28, %v2511_v34  ;;  %v2779_v34 = vmul.f32 %v2470_v28, %v2539_v56 }
 0x240   :  { %3520 = vst [vmem:[#allocation3_spill] sm:$0xff] %v2699_v17  ;;  %v2719_v63 = vmul.f32 %v2464_v32, %v3528_v45  ;;  %v3529_v17 = vld [vmem:[#allocation16_spill] sm:$0xff]  ;;  %v991_v45 = vmul.f32 %v2470_v28, %v2488_v49  ;;  %v2759_v49 = vmul.f32 %v2470_v28, %v2519_v36  ;;  %v2787_v36 = vmul.f32 %v2470_v28, %v2547_v62 }
 0x241   :  { %3522 = vst [vmem:[#allocation5_spill] sm:$0xff] %v2703_v9  ;;  %v2723_v3 = vmul.f32 %v2464_v32, %v3529_v17  ;;  %v3530_v9 = vld [vmem:[#allocation17_spill] sm:$0xff]  ;;  %v992_v17 = vmul.f32 %v2470_v28, %v2492_v20  ;;  %v2763_v20 = vmul.f32 %v2470_v28, %v2523_v42  ;;  %v2791_v42 = vmul.f32 %v2470_v28, %v2551_v0 }
 0x242   :  { %3524 = vst [vmem:[#allocation6_spill] sm:$0xff] %v2707_v18  ;;  %v2727_v30 = vmul.f32 %v2464_v32, %v3530_v9  ;;  %v3532_v18 = vld [vmem:[#allocation18_spill] sm:$0xff]  ;;  %v993_v9 = vmul.f32 %v2470_v28, %v2496_v25  ;;  %v2767_v25 = vmul.f32 %v2470_v28, %v2527_v38  ;;  %v2795_v38 = vmul.f32 %v2470_v28, %v2555_v4 }
 0x243   :  { %3527 = vst [vmem:[#allocation12_spill] sm:$0xff] %v2715_v31  ;;  %v2731_v43 = vmul.f32 %v2464_v32, %v3532_v18  ;;  %v990_v31 = vmul.f32 %v2470_v28, %v2484_v11  ;;  %v2747_v32 = vmul.f32 %v2470_v28, %v2507_v27  ;;  %v2755_v11 = vmul.f32 %v2470_v28, %v2515_v8 }
 0x244   :  { %3531 = vst [vmem:[#allocation4_spill] sm:$0xff] %v2727_v30  ;;  %v994_v30 = vmul.f32 %v2470_v28, %v2503_v24  ;;  %v2771_v24 = vmul.f32 %v2470_v28, %v2531_v50  ;;  %v2775_v27 = vmul.f32 %v2470_v28, %v2535_v53  ;;  %v2783_v8 = vmul.f32 %v2470_v28, %v2543_v59 }
 0x245   :  { %v2799_v50 = vmul.f32 %v2470_v28, %v2559_v14  ;;  %v2803_v53 = vmul.f32 %v2470_v28, %v2563_v26  ;;  %v2807_v56 = vmul.f32 %v2470_v28, %v2567_v39  ;;  %v2811_v59 = vmul.f32 %v2470_v28, %v2571_v15 }
 0x246   :  { %v2815_v62 = vmul.f32 %v2470_v28, %v2575_v37  ;;  %v2819_v0 = vmul.f32 %v2470_v28, %v2579_v41  ;;  %v2823_v4 = vmul.f32 %v2470_v28, %v2583_v44  ;;  %v2827_v14 = vmul.f32 %v2470_v28, %v2587_v46 }
 0x247   :  { %v2831_v26 = vmul.f32 %v2470_v28, %v2591_v51  ;;  %v2835_v39 = vmul.f32 %v2470_v28, %v2595_v54  ;;  %v2839_v15 = vmul.f32 %v2470_v28, %v2599_v57  ;;  %v2843_v37 = vmul.f32 %v2470_v28, %v2603_v60 }
 0x248   :  { %v2847_v41 = vmul.f32 %v2470_v28, %v2607_v1  ;;  %v2851_v44 = vmul.f32 %v2470_v28, %v2611_v5  ;;  %v2855_v46 = vmul.f32 %v2470_v28, %v2615_v19  ;;  %v2859_v51 = vmul.f32 %v2470_v28, %v2619_v33 }
 0x249   :  { %v2863_v54 = vmul.f32 %v2470_v28, %v2623_v16  ;;  %v2867_v57 = vmul.f32 %v2470_v28, %v2627_v48  ;;  %v2871_v60 = vmul.f32 %v2470_v28, %v2631_v61  ;;  %v2875_v1 = vmul.f32 %v2470_v28, %v2635_v40 }
 0x24a   :  { %v2879_v5 = vmul.f32 %v2470_v28, %v2639_v47  ;;  %v2883_v19 = vmul.f32 %v2470_v28, %v2643_v52  ;;  %v2887_v33 = vmul.f32 %v2470_v28, %v2647_v22  ;;  %v2891_v16 = vmul.f32 %v2470_v28, %v2651_v21 }
 0x24b   :  { %v2895_v48 = vmul.f32 %v2470_v28, %v2655_v12  ;;  %v2899_v61 = vmul.f32 %v2470_v28, %v2659_v2  ;;  %v2903_v40 = vmul.f32 %v2470_v28, %v2663_v7  ;;  %v2907_v47 = vmul.f32 %v2470_v28, %v2667_v23  ;;  %v3536_v2 = vld [vmem:[#allocation7_spill] sm:$0xff]  ;;  %v3538_v23 = vld [vmem:[#allocation8_spill] sm:$0xff] }
 0x24c   :  { %v2911_v52 = vmul.f32 %v2470_v28, %v2671_v10  ;;  %v2915_v22 = vmul.f32 %v2470_v28, %v2675_v13  ;;  %v1057_v21 = vadd.f32 %v2476_v35, %v989_v55  ;;  %v2920_v12 = vmul.f32 %v2470_v28, %v2679_v6  ;;  %v3543_v6 = vld [vmem:[#allocation3_spill] sm:$0xff] }
 0x24d   :  { %v2924_v7 = vmul.f32 %v2470_v28, %v3536_v2  ;;  %v2928_v18 = vmul.f32 %v2470_v28, %v3538_v23  ;;  %v1058_v10 = vadd.f32 %v2476_v35, %v990_v31  ;;  %v1059_v2 = vadd.f32 %v2476_v35, %v991_v45 }
 0x24e   :  { %3533 = vst [vmem:[#allocation19_spill] sm:$0xff] %v2911_v52  ;;  %v3540_v52 = vld [vmem:[#allocation10_spill] sm:$0xff]  ;;  %v2963_v45 = vmul.f32 %v2470_v28, %v2719_v63  ;;  %vm1121_vm5 = vcmp.ge.f32.partialorder %v1057_v21, 0.0 }
 0x24f   :  { %3534 = vst [vmem:[#allocation20_spill] sm:$0xff] %v2915_v22  ;;  %v2933_v13 = vmul.f32 %v2470_v28, %v3540_v52  ;;  %v3541_v22 = vld [vmem:[#allocation2_spill] sm:$0xff]  ;;  %v2954_v52 = vmul.f32 %v2470_v28, %v2711_v29  ;;  %v1062_v29 = vadd.f32 %v2476_v35, %v994_v30  ;;  %vm1122_vm6 = vcmp.ge.f32.partialorder %v1058_v10, 0.0 }
 0x250   :  { %3535 = vst [vmem:[#allocation21_spill] sm:$0xff] %v2920_v12  ;;  %v2937_v55 = vmul.f32 %v2470_v28, %v3541_v22  ;;  %v2941_v12 = vmul.f32 %v2470_v28, %v3543_v6  ;;  %v1060_v22 = vadd.f32 %v2476_v35, %v992_v17  ;;  %v3554_v17 = vld [vmem:[#allocation4_spill] sm:$0xff]  ;;  %v1187_v63 = vmul.f32 0.2, %v1059_v2 }
 0x251   :  { %3537 = vst [vmem:[#allocation22_spill] sm:$0xff] %v2924_v7  ;;  %v3545_v7 = vld [vmem:[#allocation5_spill] sm:$0xff]  ;;  %vm1123_vm7 = vcmp.ge.f32.partialorder %v1059_v2, 0.0  ;;  %vm1126_vm10 = vcmp.ge.f32.partialorder %v1062_v29, 0.0 }
 0x252   :  { %3539 = vst [vmem:[#allocation9_spill] sm:$0xff] %v2928_v18  ;;  %v2946_v23 = vmul.f32 %v2470_v28, %v3545_v7  ;;  %v3547_v18 = vld [vmem:[#allocation6_spill] sm:$0xff]  ;;  %v1061_v7 = vadd.f32 %v2476_v35, %v993_v9  ;;  %v2979_v9 = vmul.f32 %v2470_v28, %v2731_v43  ;;  %v1188_v30 = vmul.f32 0.2, %v1060_v22 }
 0x253   :  { %3542 = vst [vmem:[#allocation11_spill] sm:$0xff] %v2937_v55  ;;  %v2950_v31 = vmul.f32 %v2470_v28, %v3547_v18  ;;  %v3550_v55 = vld [vmem:[#allocation12_spill] sm:$0xff]  ;;  %v2968_v18 = vmul.f32 %v2470_v28, %v2723_v3  ;;  %v1064_v3 = vadd.f32 %v2476_v35, %v2751_v58  ;;  %vm1124_vm8 = vcmp.ge.f32.partialorder %v1060_v22, 0.0 }
 0x254   :  { %3544 = vst [vmem:[#allocation13_spill] sm:$0xff] %v2941_v12  ;;  %v2959_v6 = vmul.f32 %v2470_v28, %v3550_v55  ;;  %v1063_v55 = vadd.f32 %v2476_v35, %v2747_v32  ;;  %v1066_v32 = vadd.f32 %v2476_v35, %v2759_v49  ;;  %vm1125_vm9 = vcmp.ge.f32.partialorder %v1061_v7, 0.0 }
 0x255   :  { %3546 = vst [vmem:[#allocation14_spill] sm:$0xff] %v2946_v23  ;;  %v1185_v23 = vmul.f32 0.2, %v1057_v21  ;;  %v1251_v58 = vsel %vm1123_vm7, %v1059_v2, %v1187_v63  ;;  %v1252_v12 = vsel %vm1124_vm8, %v1060_v22, %v1188_v30  ;;  %v1069_v49 = vadd.f32 %v2476_v35, %v2771_v24 }
 0x256   :  { %3548 = vst [vmem:[#allocation15_spill] sm:$0xff] %v2950_v31  ;;  %v2973_v31 = vmul.f32 %v2470_v28, %v3554_v17  ;;  %v1189_v17 = vmul.f32 0.2, %v1061_v7  ;;  %v1067_v28 = vadd.f32 %v2476_v35, %v2763_v20  ;;  %v1191_v43 = vmul.f32 0.2, %v1063_v55 }
 0x257   :  { %3549 = vst [vmem:[#allocation16_spill] sm:$0xff] %v2954_v52  ;;  %v1186_v52 = vmul.f32 0.2, %v1058_v10  ;;  %vm1127_vm11 = vcmp.ge.f32.partialorder %v1063_v55, 0.0  ;;  %vm1128_vm12 = vcmp.ge.f32.partialorder %v1064_v3, 0.0  ;;  %v1071_v24 = vadd.f32 %v2476_v35, %v2779_v34 }
 0x258   :  { %3551 = vst [vmem:[#allocation17_spill] sm:$0xff] %v2959_v6  ;;  %v1253_v20 = vsel %vm1125_vm9, %v1061_v7, %v1189_v17  ;;  %vm1130_vm14 = vcmp.ge.f32.partialorder %v1066_v32, 0.0  ;;  %vm1131_vm15 = vcmp.ge.f32.partialorder %v1067_v28, 0.0  ;;  %v1073_v34 = vadd.f32 %v2476_v35, %v2787_v36 }
 0x259   :  { %3552 = vst [vmem:[#allocation18_spill] sm:$0xff] %v2963_v45  ;;  %v1190_v45 = vmul.f32 0.2, %v1062_v29  ;;  %v1250_v6 = vsel %vm1122_vm6, %v1058_v10, %v1186_v52  ;;  %v1194_v10 = vmul.f32 0.2, %v1066_v32  ;;  %vm1133_vm2 = vcmp.ge.f32.partialorder %v1069_v49, 0.0 }
 0x25a   :  { %3553 = vst [vmem:[#allocation7_spill] sm:$0xff] %v2968_v18  ;;  %v1065_v18 = vadd.f32 %v2476_v35, %v2755_v11  ;;  %v1192_v11 = vmul.f32 0.2, %v1064_v3  ;;  %v1075_v36 = vadd.f32 %v2476_v35, %v2795_v38  ;;  %vm1135_vm4 = vcmp.ge.f32.partialorder %v1071_v24, 0.0 }
 0x25b   :  { %3555 = vst [vmem:[#allocation8_spill] sm:$0xff] %v2973_v31  ;;  %v1249_v31 = vsel %vm1121_vm5, %v1057_v21, %v1185_v23  ;;  %v1254_v2 = vsel %vm1126_vm10, %v1062_v29, %v1190_v45  ;;  %v1195_v23 = vmul.f32 0.2, %v1067_v28  ;;  %v1258_v7 = vsel %vm1130_vm14, %v1066_v32, %v1194_v10 }
 0x25c   :  { %3556 = vst [vmem:[#allocation10_spill] sm:$0xff] %v2979_v9  ;;  %v1068_v9 = vadd.f32 %v2476_v35, %v2767_v25  ;;  %v1193_v21 = vmul.f32 0.2, %v1065_v18  ;;  %v1070_v25 = vadd.f32 %v2476_v35, %v2775_v27  ;;  %vm1129_vm13 = vcmp.ge.f32.partialorder %v1065_v18, 0.0 }
 0x25d   :  { %1313 = vst.msk [vmem:[%s3407_s4] sm:$0xff] %vm506_vm0, %v1249_v31  ;;  %v1255_v31 = vsel %vm1127_vm11, %v1063_v55, %v1191_v43  ;;  %v1072_v27 = vadd.f32 %v2476_v35, %v2783_v8  ;;  %v1256_v22 = vsel %vm1128_vm12, %v1064_v3, %v1192_v11  ;;  %v1074_v8 = vadd.f32 %v2476_v35, %v2791_v42 }
 0x25e   :  { %1314 = vst.msk [vmem:[%s3407_s4 + $0x8] sm:$0xff] %vm506_vm0, %v1250_v6  ;;  %v1196_v52 = vmul.f32 0.2, %v1068_v9  ;;  %vm1132_vm1 = vcmp.ge.f32.partialorder %v1068_v9, 0.0  ;;  %v1197_v6 = vmul.f32 0.2, %v1069_v49  ;;  %v1257_v45 = vsel %vm1129_vm13, %v1065_v18, %v1193_v21 }
 0x25f   :  { %1315 = vst.msk [vmem:[%s3407_s4 + $0x10] sm:$0xff] %vm506_vm0, %v1251_v58  ;;  %vm1134_vm3 = vcmp.ge.f32.partialorder %v1070_v25, 0.0  ;;  %v1199_v18 = vmul.f32 0.2, %v1071_v24  ;;  %v1259_v29 = vsel %vm1131_vm15, %v1067_v28, %v1195_v23  ;;  %v1076_v42 = vadd.f32 %v2476_v35, %v2799_v50 }
 0x260   :  { %1316 = vst.msk [vmem:[%s3407_s4 + $0x18] sm:$0xff] %vm506_vm0, %v1252_v12  ;;  %v1198_v12 = vmul.f32 0.2, %v1070_v25  ;;  %v1200_v55 = vmul.f32 0.2, %v1072_v27  ;;  %v1260_v63 = vsel %vm1132_vm1, %v1068_v9, %v1196_v52  ;;  %v1077_v38 = vadd.f32 %v2476_v35, %v2803_v53 }
 0x261   :  { %1317 = vst.msk [vmem:[%s3407_s4 + $0x20] sm:$0xff] %vm506_vm0, %v1253_v20  ;;  %vm1136_vm5 = vcmp.ge.f32.partialorder %v1072_v27, 0.0  ;;  %v1201_v3 = vmul.f32 0.2, %v1073_v34  ;;  %v1261_v30 = vsel %vm1133_vm2, %v1069_v49, %v1197_v6  ;;  %v1078_v50 = vadd.f32 %v2476_v35, %v2807_v56 }
 0x262   :  { %1318 = vst.msk [vmem:[%s3407_s4 + $0x28] sm:$0xff] %vm506_vm0, %v1254_v2  ;;  %vm1137_vm6 = vcmp.ge.f32.partialorder %v1073_v34, 0.0  ;;  %v1202_v9 = vmul.f32 0.2, %v1074_v8  ;;  %v1262_v17 = vsel %vm1134_vm3, %v1070_v25, %v1198_v12  ;;  %v1079_v53 = vadd.f32 %v2476_v35, %v2811_v59 }
 0x263   :  { %1319 = vst.msk [vmem:[%s3407_s4 + $0x30] sm:$0xff] %vm506_vm0, %v1255_v31  ;;  %vm1138_vm7 = vcmp.ge.f32.partialorder %v1074_v8, 0.0  ;;  %v1203_v32 = vmul.f32 0.2, %v1075_v36  ;;  %v1263_v28 = vsel %vm1135_vm4, %v1071_v24, %v1199_v18  ;;  %v1080_v56 = vadd.f32 %v2476_v35, %v2815_v62 }
 0x264   :  { %1320 = vst.msk [vmem:[%s3407_s4 + $0x38] sm:$0xff] %vm506_vm0, %v1256_v22  ;;  %vm1139_vm8 = vcmp.ge.f32.partialorder %v1075_v36, 0.0  ;;  %v1204_v43 = vmul.f32 0.2, %v1076_v42  ;;  %v1264_v58 = vsel %vm1136_vm5, %v1072_v27, %v1200_v55  ;;  %v1081_v59 = vadd.f32 %v2476_v35, %v2819_v0 }
 0x265   :  { %1321 = vst.msk [vmem:[%s3407_s4 + $0x40] sm:$0xff] %vm506_vm0, %v1257_v45  ;;  %vm1140_vm9 = vcmp.ge.f32.partialorder %v1076_v42, 0.0  ;;  %v1205_v11 = vmul.f32 0.2, %v1077_v38  ;;  %v1265_v49 = vsel %vm1137_vm6, %v1073_v34, %v1201_v3  ;;  %v1082_v62 = vadd.f32 %v2476_v35, %v2823_v4 }
 0x266   :  { %1322 = vst.msk [vmem:[%s3407_s4 + $0x48] sm:$0xff] %vm506_vm0, %v1258_v7  ;;  %vm1141_vm10 = vcmp.ge.f32.partialorder %v1077_v38, 0.0  ;;  %v1206_v21 = vmul.f32 0.2, %v1078_v50  ;;  %v1266_v20 = vsel %vm1138_vm7, %v1074_v8, %v1202_v9  ;;  %v1083_v0 = vadd.f32 %v2476_v35, %v2827_v14 }
 0x267   :  { %1323 = vst.msk [vmem:[%s3407_s4 + $0x50] sm:$0xff] %vm506_vm0, %v1259_v29  ;;  %vm1142_vm11 = vcmp.ge.f32.partialorder %v1078_v50, 0.0  ;;  %v1207_v25 = vmul.f32 0.2, %v1079_v53  ;;  %v1267_v10 = vsel %vm1139_vm8, %v1075_v36, %v1203_v32  ;;  %v1084_v4 = vadd.f32 %v2476_v35, %v2831_v26 }
 0x268   :  { %1324 = vst.msk [vmem:[%s3407_s4 + $0x58] sm:$0xff] %vm506_vm0, %v1260_v63  ;;  %vm1143_vm12 = vcmp.ge.f32.partialorder %v1079_v53, 0.0  ;;  %v1208_v2 = vmul.f32 0.2, %v1080_v56  ;;  %v1268_v24 = vsel %vm1140_vm9, %v1076_v42, %v1204_v43  ;;  %v1085_v14 = vadd.f32 %v2476_v35, %v2835_v39 }
 0x269   :  { %1325 = vst.msk [vmem:[%s3407_s4 + $0x60] sm:$0xff] %vm506_vm0, %v1261_v30  ;;  %vm1144_vm13 = vcmp.ge.f32.partialorder %v1080_v56, 0.0  ;;  %v1209_v23 = vmul.f32 0.2, %v1081_v59  ;;  %v1269_v31 = vsel %vm1141_vm10, %v1077_v38, %v1205_v11  ;;  %v1086_v26 = vadd.f32 %v2476_v35, %v2839_v15 }
 0x26a   :  { %1326 = vst.msk [vmem:[%s3407_s4 + $0x68] sm:$0xff] %vm506_vm0, %v1262_v17  ;;  %vm1145_vm14 = vcmp.ge.f32.partialorder %v1081_v59, 0.0  ;;  %v1210_v27 = vmul.f32 0.2, %v1082_v62  ;;  %v1270_v52 = vsel %vm1142_vm11, %v1078_v50, %v1206_v21  ;;  %v1087_v39 = vadd.f32 %v2476_v35, %v2843_v37 }
 0x26b   :  { %1327 = vst.msk [vmem:[%s3407_s4 + $0x70] sm:$0xff] %vm506_vm0, %v1263_v28  ;;  %vm1146_vm15 = vcmp.ge.f32.partialorder %v1082_v62, 0.0  ;;  %v1211_v22 = vmul.f32 0.2, %v1083_v0  ;;  %v1271_v34 = vsel %vm1143_vm12, %v1079_v53, %v1207_v25  ;;  %v1088_v15 = vadd.f32 %v2476_v35, %v2847_v41 }
 0x26c   :  { %1328 = vst.msk [vmem:[%s3407_s4 + $0x78] sm:$0xff] %vm506_vm0, %v1264_v58  ;;  %vm1147_vm1 = vcmp.ge.f32.partialorder %v1083_v0, 0.0  ;;  %v1212_v6 = vmul.f32 0.2, %v1084_v4  ;;  %v1272_v45 = vsel %vm1144_vm13, %v1080_v56, %v1208_v2  ;;  %v1089_v37 = vadd.f32 %v2476_v35, %v2851_v44 }
 0x26d   :  { %1329 = vst.msk [vmem:[%s3407_s4 + $0x80] sm:$0xff] %vm506_vm0, %v1265_v49  ;;  %vm1148_vm2 = vcmp.ge.f32.partialorder %v1084_v4, 0.0  ;;  %v1213_v8 = vmul.f32 0.2, %v1085_v14  ;;  %v1273_v12 = vsel %vm1145_vm14, %v1081_v59, %v1209_v23  ;;  %v1090_v41 = vadd.f32 %v2476_v35, %v2855_v46 }
 0x26e   :  { %1330 = vst.msk [vmem:[%s3407_s4 + $0x88] sm:$0xff] %vm506_vm0, %v1266_v20  ;;  %vm1149_vm3 = vcmp.ge.f32.partialorder %v1085_v14, 0.0  ;;  %v1214_v7 = vmul.f32 0.2, %v1086_v26  ;;  %v1274_v36 = vsel %vm1146_vm15, %v1082_v62, %v1210_v27  ;;  %v1091_v44 = vadd.f32 %v2476_v35, %v2859_v51 }
 0x26f   :  { %1331 = vst.msk [vmem:[%s3407_s4 + $0x90] sm:$0xff] %vm506_vm0, %v1267_v10  ;;  %vm1150_vm4 = vcmp.ge.f32.partialorder %v1086_v26, 0.0  ;;  %v1215_v18 = vmul.f32 0.2, %v1087_v39  ;;  %v1275_v29 = vsel %vm1147_vm1, %v1083_v0, %v1211_v22  ;;  %v1092_v46 = vadd.f32 %v2476_v35, %v2863_v54  ;;  %v3560_v22 = vld [vmem:[#allocation22_spill] sm:$0xff] }
 0x270   :  { %1332 = vst.msk [vmem:[%s3407_s4 + $0x98] sm:$0xff] %vm506_vm0, %v1268_v24  ;;  %vm1151_vm5 = vcmp.ge.f32.partialorder %v1087_v39, 0.0  ;;  %v1216_v42 = vmul.f32 0.2, %v1088_v15  ;;  %v1276_v55 = vsel %vm1148_vm2, %v1084_v4, %v1212_v6  ;;  %v1093_v51 = vadd.f32 %v2476_v35, %v2867_v57 }
 0x271   :  { %1333 = vst.msk [vmem:[%s3407_s4 + $0xa0] sm:$0xff] %vm506_vm0, %v1269_v31  ;;  %vm1152_vm6 = vcmp.ge.f32.partialorder %v1088_v15, 0.0  ;;  %v1217_v63 = vmul.f32 0.2, %v1089_v37  ;;  %v1277_v38 = vsel %vm1149_vm3, %v1085_v14, %v1213_v8  ;;  %v1094_v54 = vadd.f32 %v2476_v35, %v2871_v60 }
 0x272   :  { %1334 = vst.msk [vmem:[%s3407_s4 + $0xa8] sm:$0xff] %vm506_vm0, %v1270_v52  ;;  %vm1153_vm7 = vcmp.ge.f32.partialorder %v1089_v37, 0.0  ;;  %v1218_v3 = vmul.f32 0.2, %v1090_v41  ;;  %v1278_v30 = vsel %vm1150_vm4, %v1086_v26, %v1214_v7  ;;  %v1095_v57 = vadd.f32 %v2476_v35, %v2875_v1  ;;  %v3559_v26 = vld [vmem:[#allocation21_spill] sm:$0xff] }
 0x273   :  { %1335 = vst.msk [vmem:[%s3407_s4 + $0xb0] sm:$0xff] %vm506_vm0, %v1271_v34  ;;  %vm1154_vm8 = vcmp.ge.f32.partialorder %v1090_v41, 0.0  ;;  %v1219_v50 = vmul.f32 0.2, %v1091_v44  ;;  %v1279_v9 = vsel %vm1151_vm5, %v1087_v39, %v1215_v18  ;;  %v1096_v60 = vadd.f32 %v2476_v35, %v2879_v5 }
 0x274   :  { %1336 = vst.msk [vmem:[%s3407_s4 + $0xb8] sm:$0xff] %vm506_vm0, %v1272_v45  ;;  %vm1155_vm9 = vcmp.ge.f32.partialorder %v1091_v44, 0.0  ;;  %v1220_v17 = vmul.f32 0.2, %v1092_v46  ;;  %v1280_v53 = vsel %vm1152_vm6, %v1088_v15, %v1216_v42  ;;  %v1097_v1 = vadd.f32 %v2476_v35, %v2883_v19  ;;  %v3561_v45 = vld [vmem:[#allocation9_spill] sm:$0xff] }
 0x275   :  { %1337 = vst.msk [vmem:[%s3407_s4 + $0xc0] sm:$0xff] %vm506_vm0, %v1273_v12  ;;  %vm1156_vm10 = vcmp.ge.f32.partialorder %v1092_v46, 0.0  ;;  %v1221_v32 = vmul.f32 0.2, %v1093_v51  ;;  %v1281_v28 = vsel %vm1153_vm7, %v1089_v37, %v1217_v63  ;;  %v1098_v5 = vadd.f32 %v2476_v35, %v2887_v33  ;;  %v3564_v63 = vld [vmem:[#allocation14_spill] sm:$0xff] }
 0x276   :  { %1338 = vst.msk [vmem:[%s3407_s4 + $0xc8] sm:$0xff] %vm506_vm0, %v1274_v36  ;;  %vm1157_vm11 = vcmp.ge.f32.partialorder %v1093_v51, 0.0  ;;  %v1222_v56 = vmul.f32 0.2, %v1094_v54  ;;  %v1282_v43 = vsel %vm1154_vm8, %v1090_v41, %v1218_v3  ;;  %v1099_v19 = vadd.f32 %v2476_v35, %v2891_v16 }
 0x277   :  { %1339 = vst.msk [vmem:[%s3407_s4 + $0xd0] sm:$0xff] %vm506_vm0, %v1275_v29  ;;  %vm1158_vm12 = vcmp.ge.f32.partialorder %v1094_v54, 0.0  ;;  %v1223_v58 = vmul.f32 0.2, %v1095_v57  ;;  %v1283_v59 = vsel %vm1155_vm9, %v1091_v44, %v1219_v50  ;;  %v1100_v33 = vadd.f32 %v2476_v35, %v2895_v48  ;;  %v3562_v44 = vld [vmem:[#allocation11_spill] sm:$0xff] }
 0x278   :  { %1340 = vst.msk [vmem:[%s3407_s4 + $0xd8] sm:$0xff] %vm506_vm0, %v1276_v55  ;;  %vm1159_vm13 = vcmp.ge.f32.partialorder %v1095_v57, 0.0  ;;  %v1224_v11 = vmul.f32 0.2, %v1096_v60  ;;  %v1284_v49 = vsel %vm1156_vm10, %v1092_v46, %v1220_v17  ;;  %v1101_v16 = vadd.f32 %v2476_v35, %v2899_v61 }
 0x279   :  { %1341 = vst.msk [vmem:[%s3407_s4 + $0xe0] sm:$0xff] %vm506_vm0, %v1277_v38  ;;  %vm1160_vm14 = vcmp.ge.f32.partialorder %v1096_v60, 0.0  ;;  %v1225_v62 = vmul.f32 0.2, %v1097_v1  ;;  %v1285_v21 = vsel %vm1157_vm11, %v1093_v51, %v1221_v32  ;;  %v1102_v48 = vadd.f32 %v2476_v35, %v2903_v40  ;;  %v3557_v40 = vld [vmem:[#allocation19_spill] sm:$0xff]  ;;  %v3567_v32 = vld [vmem:[#allocation17_spill] sm:$0xff] }
 0x27a   :  { %1342 = vst.msk [vmem:[%s3407_s4 + $0xe8] sm:$0xff] %vm506_vm0, %v1278_v30  ;;  %vm1161_vm15 = vcmp.ge.f32.partialorder %v1097_v1, 0.0  ;;  %v1226_v20 = vmul.f32 0.2, %v1098_v5  ;;  %v1286_v0 = vsel %vm1158_vm12, %v1094_v54, %v1222_v56  ;;  %v1103_v61 = vadd.f32 %v2476_v35, %v2907_v47  ;;  %v3558_v47 = vld [vmem:[#allocation20_spill] sm:$0xff]  ;;  %v3565_v30 = vld [vmem:[#allocation15_spill] sm:$0xff] }
 0x27b   :  { %1343 = vst.msk [vmem:[%s3407_s4 + $0xf0] sm:$0xff] %vm506_vm0, %v1279_v9  ;;  %vm1162_vm1 = vcmp.ge.f32.partialorder %v1098_v5, 0.0  ;;  %v1227_v25 = vmul.f32 0.2, %v1099_v19  ;;  %v1287_v10 = vsel %vm1159_vm13, %v1095_v57, %v1223_v58  ;;  %v1104_v4 = vadd.f32 %v2476_v35, %v3557_v40 }
 0x27c   :  { %1344 = vst.msk [vmem:[%s3407_s4 + $0xf8] sm:$0xff] %vm506_vm0, %v1280_v53  ;;  %vm1163_vm2 = vcmp.ge.f32.partialorder %v1099_v19, 0.0  ;;  %v1228_v2 = vmul.f32 0.2, %v1100_v33  ;;  %v1288_v24 = vsel %vm1160_vm14, %v1096_v60, %v1224_v11  ;;  %v1105_v14 = vadd.f32 %v2476_v35, %v3558_v47  ;;  %v3566_v60 = vld [vmem:[#allocation16_spill] sm:$0xff] }
 0x27d   :  { %1345 = vst.msk [vmem:[%s3407_s4 + $0x100] sm:$0xff] %vm506_vm0, %v1281_v28  ;;  %vm1164_vm3 = vcmp.ge.f32.partialorder %v1100_v33, 0.0  ;;  %v1229_v23 = vmul.f32 0.2, %v1101_v16  ;;  %v1289_v31 = vsel %vm1161_vm15, %v1097_v1, %v1225_v62  ;;  %v1106_v27 = vadd.f32 %v2476_v35, %v3559_v26  ;;  %v3570_v62 = vld [vmem:[#allocation8_spill] sm:$0xff] }
 0x27e   :  { %1346 = vst.msk [vmem:[%s3407_s4 + $0x108] sm:$0xff] %vm506_vm0, %v1282_v43  ;;  %vm1165_vm4 = vcmp.ge.f32.partialorder %v1101_v16, 0.0  ;;  %v1230_v52 = vmul.f32 0.2, %v1102_v48  ;;  %v1290_v39 = vsel %vm1162_vm1, %v1098_v5, %v1226_v20  ;;  %v1107_v34 = vadd.f32 %v2476_v35, %v3560_v22  ;;  %v3568_v43 = vld [vmem:[#allocation18_spill] sm:$0xff] }
 0x27f   :  { %1347 = vst.msk [vmem:[%s3407_s4 + $0x110] sm:$0xff] %vm506_vm0, %v1283_v59  ;;  %vm1166_vm5 = vcmp.ge.f32.partialorder %v1102_v48, 0.0  ;;  %v1231_v15 = vmul.f32 0.2, %v1103_v61  ;;  %v1291_v6 = vsel %vm1163_vm2, %v1099_v19, %v1227_v25  ;;  %v1108_v37 = vadd.f32 %v2476_v35, %v3561_v45 }
 0x280   :  { %1348 = vst.msk [vmem:[%s3407_s4 + $0x118] sm:$0xff] %vm506_vm0, %v1284_v49  ;;  %vm1167_vm6 = vcmp.ge.f32.partialorder %v1103_v61, 0.0  ;;  %v1232_v8 = vmul.f32 0.2, %v1104_v4  ;;  %v1292_v12 = vsel %vm1164_vm3, %v1100_v33, %v1228_v2  ;;  %v1109_v41 = vadd.f32 %v2476_v35, %v2933_v13  ;;  %v3563_v13 = vld [vmem:[#allocation13_spill] sm:$0xff]  ;;  %v3569_v33 = vld [vmem:[#allocation7_spill] sm:$0xff] }
 0x281   :  { %1349 = vst.msk [vmem:[%s3407_s4 + $0x120] sm:$0xff] %vm506_vm0, %v1285_v21  ;;  %vm1168_vm7 = vcmp.ge.f32.partialorder %v1104_v4, 0.0  ;;  %v1233_v7 = vmul.f32 0.2, %v1105_v14  ;;  %v1293_v36 = vsel %vm1165_vm4, %v1101_v16, %v1229_v23  ;;  %v1110_v18 = vadd.f32 %v2476_v35, %v3562_v44 }
 0x282   :  { %1350 = vst.msk [vmem:[%s3407_s4 + $0x128] sm:$0xff] %vm506_vm0, %v1286_v0  ;;  %vm1169_vm8 = vcmp.ge.f32.partialorder %v1105_v14, 0.0  ;;  %v1234_v29 = vmul.f32 0.2, %v1106_v27  ;;  %v1294_v46 = vsel %vm1166_vm5, %v1102_v48, %v1230_v52  ;;  %v1111_v42 = vadd.f32 %v2476_v35, %v3563_v13  ;;  %v3571_v0 = vld [vmem:[#allocation10_spill] sm:$0xff] }
 0x283   :  { %1351 = vst.msk [vmem:[%s3407_s4 + $0x130] sm:$0xff] %vm506_vm0, %v1287_v10  ;;  %vm1170_vm9 = vcmp.ge.f32.partialorder %v1106_v27, 0.0  ;;  %v1235_v55 = vmul.f32 0.2, %v1107_v34  ;;  %v1295_v51 = vsel %vm1167_vm6, %v1103_v61, %v1231_v15  ;;  %v1112_v38 = vadd.f32 %v2476_v35, %v3564_v63 }
 0x284   :  { %1352 = vst.msk [vmem:[%s3407_s4 + $0x138] sm:$0xff] %vm506_vm0, %v1288_v24  ;;  %vm1171_vm10 = vcmp.ge.f32.partialorder %v1107_v34, 0.0  ;;  %v1236_v54 = vmul.f32 0.2, %v1108_v37  ;;  %v1296_v3 = vsel %vm1168_vm7, %v1104_v4, %v1232_v8  ;;  %v1113_v57 = vadd.f32 %v2476_v35, %v3565_v30 }
 0x285   :  { %1353 = vst.msk [vmem:[%s3407_s4 + $0x140] sm:$0xff] %vm506_vm0, %v1289_v31  ;;  %vm1172_vm11 = vcmp.ge.f32.partialorder %v1108_v37, 0.0  ;;  %v1237_v50 = vmul.f32 0.2, %v1109_v41  ;;  %v1297_v9 = vsel %vm1169_vm8, %v1105_v14, %v1233_v7  ;;  %v1114_v17 = vadd.f32 %v2476_v35, %v3566_v60  ;;  %v3572_v31 = vld [vmem:[#allocation23_spill] sm:$0xff] }
 0x286   :  { %1354 = vst.msk [vmem:[%s3407_s4 + $0x148] sm:$0xff] %vm506_vm0, %v1290_v39  ;;  %vm1173_vm12 = vcmp.ge.f32.partialorder %v1109_v41, 0.0  ;;  %v1238_v53 = vmul.f32 0.2, %v1110_v18  ;;  %v1298_v1 = vsel %vm1170_vm9, %v1106_v27, %v1234_v29  ;;  %v1115_v28 = vadd.f32 %v2476_v35, %v3567_v32 }
 0x287   :  { %1355 = vst.msk [vmem:[%s3407_s4 + $0x150] sm:$0xff] %vm506_vm0, %v1291_v6  ;;  %vm1174_vm13 = vcmp.ge.f32.partialorder %v1110_v18, 0.0  ;;  %v1239_v5 = vmul.f32 0.2, %v1111_v42  ;;  %v1299_v56 = vsel %vm1171_vm10, %v1107_v34, %v1235_v55  ;;  %v1116_v19 = vadd.f32 %v2476_v35, %v3568_v43 }
 0x288   :  { %1356 = vst.msk [vmem:[%s3407_s4 + $0x158] sm:$0xff] %vm506_vm0, %v1292_v12  ;;  %vm1175_vm14 = vcmp.ge.f32.partialorder %v1111_v42, 0.0  ;;  %v1240_v58 = vmul.f32 0.2, %v1112_v38  ;;  %v1300_v59 = vsel %vm1172_vm11, %v1108_v37, %v1236_v54  ;;  %v1117_v11 = vadd.f32 %v2476_v35, %v3569_v33 }
 0x289   :  { %1357 = vst.msk [vmem:[%s3407_s4 + $0x160] sm:$0xff] %vm506_vm0, %v1293_v36  ;;  %vm1176_vm15 = vcmp.ge.f32.partialorder %v1112_v38, 0.0  ;;  %v1241_v49 = vmul.f32 0.2, %v1113_v57  ;;  %v1301_v16 = vsel %vm1173_vm12, %v1109_v41, %v1237_v50  ;;  %v1118_v21 = vadd.f32 %v2476_v35, %v3570_v62 }
 0x28a   :  { %1358 = vst.msk [vmem:[%s3407_s4 + $0x168] sm:$0xff] %vm506_vm0, %v1294_v46  ;;  %vm1177_vm1 = vcmp.ge.f32.partialorder %v1113_v57, 0.0  ;;  %v1242_v48 = vmul.f32 0.2, %v1114_v17  ;;  %v1302_v20 = vsel %vm1174_vm13, %v1110_v18, %v1238_v53  ;;  %v1119_v61 = vadd.f32 %v2476_v35, %v3571_v0 }
 0x28b   :  { %1359 = vst.msk [vmem:[%s3407_s4 + $0x170] sm:$0xff] %vm506_vm0, %v1295_v51  ;;  %vm1178_vm2 = vcmp.ge.f32.partialorder %v1114_v17, 0.0  ;;  %v1243_v25 = vmul.f32 0.2, %v1115_v28  ;;  %v1303_v10 = vsel %vm1175_vm14, %v1111_v42, %v1239_v5  ;;  %vm1179_vm3 = vcmp.ge.f32.partialorder %v1115_v28, 0.0 }
 0x28c   :  { %1360 = vst.msk [vmem:[%s3407_s4 + $0x178] sm:$0xff] %vm506_vm0, %v1296_v3  ;;  %v1244_v40 = vmul.f32 0.2, %v1116_v19  ;;  %v1304_v4 = vsel %vm1176_vm15, %v1112_v38, %v1240_v58  ;;  %vm1180_vm4 = vcmp.ge.f32.partialorder %v1116_v19, 0.0  ;;  %v1245_v35 = vmul.f32 0.2, %v1117_v11 }
 0x28d   :  { %1361 = vst.msk [vmem:[%s3407_s4 + $0x180] sm:$0xff] %vm506_vm0, %v1297_v9  ;;  %v1305_v2 = vsel %vm1177_vm1, %v1113_v57, %v1241_v49  ;;  %vm1181_vm5 = vcmp.ge.f32.partialorder %v1117_v11, 0.0  ;;  %v1246_v24 = vmul.f32 0.2, %v1118_v21  ;;  %v1306_v47 = vsel %vm1178_vm2, %v1114_v17, %v1242_v48 }
 0x28e   :  { %1362 = vst.msk [vmem:[%s3407_s4 + $0x188] sm:$0xff] %vm506_vm0, %v1298_v1  ;;  %vm1182_vm6 = vcmp.ge.f32.partialorder %v1118_v21, 0.0  ;;  %v1247_v14 = vmul.f32 0.2, %v1119_v61  ;;  %v1307_v23 = vsel %vm1179_vm3, %v1115_v28, %v1243_v25  ;;  %vm1183_vm7 = vcmp.ge.f32.partialorder %v1119_v61, 0.0 }
 0x28f   :  { %1363 = vst.msk [vmem:[%s3407_s4 + $0x190] sm:$0xff] %vm506_vm0, %v1299_v56  ;;  %v1248_v26 = vmul.f32 0.2, %v3572_v31  ;;  %v1308_v27 = vsel %vm1180_vm4, %v1116_v19, %v1244_v40  ;;  %vm1184_vm8 = vcmp.ge.f32.partialorder %v3572_v31, 0.0  ;;  %v1309_v52 = vsel %vm1181_vm5, %v1117_v11, %v1245_v35 }
 0x290   :  { %1364 = vst.msk [vmem:[%s3407_s4 + $0x198] sm:$0xff] %vm506_vm0, %v1300_v59  ;;  %v1310_v39 = vsel %vm1182_vm6, %v1118_v21, %v1246_v24  ;;  %v1311_v22 = vsel %vm1183_vm7, %v1119_v61, %v1247_v14 }
 0x291   :  { %1365 = vst.msk [vmem:[%s3407_s4 + $0x1a0] sm:$0xff] %vm506_vm0, %v1301_v16  ;;  %v1312_v34 = vsel %vm1184_vm8, %v3572_v31, %v1248_v26 }
 0x292   :  { %1366 = vst.msk [vmem:[%s3407_s4 + $0x1a8] sm:$0xff] %vm506_vm0, %v1302_v20 }
 0x293   :  { %1367 = vst.msk [vmem:[%s3407_s4 + $0x1b0] sm:$0xff] %vm506_vm0, %v1303_v10 }
 0x294   :  { %1368 = vst.msk [vmem:[%s3407_s4 + $0x1b8] sm:$0xff] %vm506_vm0, %v1304_v4 }
 0x295   :  { %1369 = vst.msk [vmem:[%s3407_s4 + $0x1c0] sm:$0xff] %vm506_vm0, %v1305_v2 }
 0x296   :  { %1370 = vst.msk [vmem:[%s3407_s4 + $0x1c8] sm:$0xff] %vm506_vm0, %v1306_v47 }
 0x297   :  { %1371 = vst.msk [vmem:[%s3407_s4 + $0x1d0] sm:$0xff] %vm506_vm0, %v1307_v23 }
 0x298   :  { %1372 = vst.msk [vmem:[%s3407_s4 + $0x1d8] sm:$0xff] %vm506_vm0, %v1308_v27 }
 0x299   :  { %1373 = vst.msk [vmem:[%s3407_s4 + $0x1e0] sm:$0xff] %vm506_vm0, %v1309_v52 }
 0x29a   :  { %1374 = vst.msk [vmem:[%s3407_s4 + $0x1e8] sm:$0xff] %vm506_vm0, %v1310_v39 }
 0x29b   :  { %1375 = vst.msk [vmem:[%s3407_s4 + $0x1f0] sm:$0xff] %vm506_vm0, %v1311_v22 }
 0x29c   :  { %1376 = vst.msk [vmem:[%s3407_s4 + $0x1f8] sm:$0xff] %vm506_vm0, %v1312_v34 }

// kernel: critic_forward.7
= control target key start
LH: loop header
LB: loop body
LE: loop exit
PB: predicated region body
PF: predicated region fallthrough
CT: control target
= control target key end

     0   :  { %vm339_vm0 = vcmask 261120   ;;  %s1201_s1 = inlined_call_operand.vmem [shape: bf16[256,32], index: 1, kind: input, shape index: {}]   ;;  %s1202_s0 = inlined_call_operand.vmem [shape: bf16[128,256], index: 0, kind: input, shape index: {}]   ;;  %s1203_s2 = inlined_call_operand.vmem [shape: f32[1,32], index: 2, kind: input, shape index: {}]   ;;  %s1204_s3 = inlined_call_operand.vmem [shape: f32[1,32], index: 3, kind: input, shape index: {}]   ;;  %s1205_s4 = inlined_call_operand.vmem [shape: f32[128,32], index: 4, kind: output, shape index: {}]  }
   0x1   :  { %v741_v0 = vld [vmem:[%s1201_s1 + $0x38] sm:$0xff]  ;;  %v740_v2 = vld [vmem:[%s1201_s1 + $0x30] sm:$0xff]  ;;  %v739_v4 = vld [vmem:[%s1201_s1 + $0x28] sm:$0xff] }
   0x2   :  { %v749_v1 = vld [vmem:[%s1201_s1 + $0x78] sm:$0xff]  ;;  %241 = vmatpush.bf16.msra.mxu0 %v741_v0  ;;  %v748_v3 = vld [vmem:[%s1201_s1 + $0x70] sm:$0xff]  ;;  %750 = vmatpush.bf16.msra.mxu2 %v741_v0  ;;  %v747_v5 = vld [vmem:[%s1201_s1 + $0x68] sm:$0xff] }
   0x3   :  { %290 = vmatpush.bf16.msra.mxu1 %v749_v1  ;;  %758 = vmatpush.bf16.msra.mxu3 %v749_v1  ;;  %v738_v6 = vld [vmem:[%s1201_s1 + $0x20] sm:$0xff]  ;;  %v737_v8 = vld [vmem:[%s1201_s1 + $0x18] sm:$0xff]  ;;  %v736_v10 = vld [vmem:[%s1201_s1 + $0x10] sm:$0xff] }
   0x4   :  { %v746_v7 = vld [vmem:[%s1201_s1 + $0x60] sm:$0xff]  ;;  %v745_v9 = vld [vmem:[%s1201_s1 + $0x58] sm:$0xff]  ;;  %v744_v11 = vld [vmem:[%s1201_s1 + $0x50] sm:$0xff] }
   0x5   :  { %v735_v12 = vld [vmem:[%s1201_s1 + $0x8] sm:$0xff]  ;;  %v734_v14 = vld [vmem:[%s1201_s1] sm:$0xff]  ;;  %v600_v28 = vld [vmem:[%s1202_s0 + $0x10] sm:$0xf] }
   0x6   :  { %242 = vmatpush.bf16.msra.mxu0 %v740_v2  ;;  %751 = vmatpush.bf16.msra.mxu2 %v740_v2  ;;  %v743_v13 = vld [vmem:[%s1201_s1 + $0x48] sm:$0xff]  ;;  %v742_v15 = vld [vmem:[%s1201_s1 + $0x40] sm:$0xff]  ;;  %v721_v29 = vld [vmem:[%s1202_s0 + $0x14] sm:$0xf0] }
   0x7   :  { %291 = vmatpush.bf16.msra.mxu1 %v748_v3  ;;  %759 = vmatpush.bf16.msra.mxu3 %v748_v3  ;;  %v592_v16 = vld [vmem:[%s1202_s0] sm:$0xf]  ;;  %v719_v17 = vld [vmem:[%s1202_s0 + $0x4] sm:$0xf0]  ;;  %v718_v18 = vld [vmem:[%s1202_s0 + $0x4] sm:$0xf]  ;;  %v601_v36 = vor.u32 %v721_v29, %v600_v28 }
   0x8   :  { %v594_v19 = vld [vmem:[%s1202_s0 + $0x8] sm:$0xf0]  ;;  %v624_v20 = vld [vmem:[%s1202_s0 + $0x40] sm:$0xf]  ;;  %v727_v21 = vld [vmem:[%s1202_s0 + $0x44] sm:$0xf0]  ;;  %v593_v24 = vor.u32 %v719_v17, %v592_v16 }
   0x9   :  { %v726_v22 = vld [vmem:[%s1202_s0 + $0x44] sm:$0xf]  ;;  %v626_v23 = vld [vmem:[%s1202_s0 + $0x48] sm:$0xf0]  ;;  %v597_v25 = vor.u32 %v718_v18, %v594_v19  ;;  %v625_v26 = vor.u32 %v727_v21, %v624_v20  ;;  %v720_v30 = vld [vmem:[%s1202_s0 + $0x14] sm:$0xf] }
   0xa   :  { %243 = vmatpush.bf16.msra.mxu0 %v739_v4  ;;  %752 = vmatpush.bf16.msra.mxu2 %v739_v4  ;;  %v629_v27 = vor.u32 %v726_v22, %v626_v23  ;;  %v602_v31 = vld [vmem:[%s1202_s0 + $0x18] sm:$0xf0]  ;;  %v632_v32 = vld [vmem:[%s1202_s0 + $0x50] sm:$0xf]  ;;  %v729_v33 = vld [vmem:[%s1202_s0 + $0x54] sm:$0xf0] }
   0xb   :  { %292 = vmatpush.bf16.msra.mxu1 %v747_v5  ;;  %760 = vmatpush.bf16.msra.mxu3 %v747_v5  ;;  %v728_v34 = vld [vmem:[%s1202_s0 + $0x54] sm:$0xf]  ;;  %v634_v35 = vld [vmem:[%s1202_s0 + $0x58] sm:$0xf0]  ;;  %v605_v37 = vor.u32 %v720_v30, %v602_v31  ;;  %v633_v38 = vor.u32 %v729_v33, %v632_v32  ;;  %v608_v40 = vld [vmem:[%s1202_s0 + $0x20] sm:$0xf] }
   0xc   :  { %v637_v39 = vor.u32 %v728_v34, %v634_v35  ;;  %v723_v41 = vld [vmem:[%s1202_s0 + $0x24] sm:$0xf0]  ;;  %v722_v42 = vld [vmem:[%s1202_s0 + $0x24] sm:$0xf]  ;;  %v610_v43 = vld [vmem:[%s1202_s0 + $0x28] sm:$0xf0] }
   0xd   :  { %v640_v44 = vld [vmem:[%s1202_s0 + $0x60] sm:$0xf]  ;;  %v731_v45 = vld [vmem:[%s1202_s0 + $0x64] sm:$0xf0]  ;;  %v730_v46 = vld [vmem:[%s1202_s0 + $0x64] sm:$0xf]  ;;  %v609_v48 = vor.u32 %v723_v41, %v608_v40  ;;  %v613_v49 = vor.u32 %v722_v42, %v610_v43 }
   0xe   :  { %244 = vmatpush.bf16.msra.mxu0 %v738_v6  ;;  %753 = vmatpush.bf16.msra.mxu2 %v738_v6  ;;  %v642_v47 = vld [vmem:[%s1202_s0 + $0x68] sm:$0xf0]  ;;  %v641_v50 = vor.u32 %v731_v45, %v640_v44  ;;  %v616_v52 = vld [vmem:[%s1202_s0 + $0x30] sm:$0xf]  ;;  %v725_v53 = vld [vmem:[%s1202_s0 + $0x34] sm:$0xf0] }
   0xf   :  { %293 = vmatpush.bf16.msra.mxu1 %v746_v7  ;;  %761 = vmatpush.bf16.msra.mxu3 %v746_v7  ;;  %v645_v51 = vor.u32 %v730_v46, %v642_v47  ;;  %v724_v54 = vld [vmem:[%s1202_s0 + $0x34] sm:$0xf]  ;;  %v618_v55 = vld [vmem:[%s1202_s0 + $0x38] sm:$0xf0]  ;;  %v648_v56 = vld [vmem:[%s1202_s0 + $0x70] sm:$0xf]  ;;  %v617_v60 = vor.u32 %v725_v53, %v616_v52 }
  0x10   :  { %v733_v57 = vld [vmem:[%s1202_s0 + $0x74] sm:$0xf0]  ;;  %v732_v58 = vld [vmem:[%s1202_s0 + $0x74] sm:$0xf]  ;;  %v650_v59 = vld [vmem:[%s1202_s0 + $0x78] sm:$0xf0]  ;;  %v621_v61 = vor.u32 %v724_v54, %v618_v55 }
  0x11   :  { %v649_v62 = vor.u32 %v733_v57, %v648_v56  ;;  %v653_v63 = vor.u32 %v732_v58, %v650_v59  ;;  %v773_v58 = vmov 128.0  }
  0x12   :  { %245 = vmatpush.bf16.msra.mxu0 %v737_v8  ;;  %754 = vmatpush.bf16.msra.mxu2 %v737_v8  ;;  %769 = vrcp.f32 %v773_v58 }
  0x13   :  { %294 = vmatpush.bf16.msra.mxu1 %v745_v9  ;;  %762 = vmatpush.bf16.msra.mxu3 %v745_v9 }
  0x16   :  { %246 = vmatpush.bf16.msra.mxu0 %v736_v10  ;;  %755 = vmatpush.bf16.msra.mxu2 %v736_v10 }
  0x17   :  { %295 = vmatpush.bf16.msra.mxu1 %v744_v11  ;;  %763 = vmatpush.bf16.msra.mxu3 %v744_v11 }
  0x1a   :  { %247 = vmatpush.bf16.msra.mxu0 %v735_v12  ;;  %756 = vmatpush.bf16.msra.mxu2 %v735_v12 }
  0x1b   :  { %296 = vmatpush.bf16.msra.mxu1 %v743_v13  ;;  %764 = vmatpush.bf16.msra.mxu3 %v743_v13 }
  0x1e   :  { %248 = vmatpush.bf16.msra.mxu0 %v734_v14  ;;  %757 = vmatpush.bf16.msra.mxu2 %v734_v14 }
  0x1f   :  { %297 = vmatpush.bf16.msra.mxu1 %v742_v15  ;;  %765 = vmatpush.bf16.msra.mxu3 %v742_v15 }
  0x21   :  { %249 = vmatmul.bf16.vlgmr.msra.gmra.mxu0 %v593_v24  ;;  %269 = vmatmul.bf16.vlgmr.msra.gmra.mxu2 %v625_v26 }
  0x22   :  { %298 = vmatmul.bf16.vlgmr.msra.gmra.mxu1 %v597_v25  ;;  %318 = vmatmul.bf16.vlgmr.msra.gmra.mxu3 %v629_v27 }
  0x31   :  { %254 = vmatmul.bf16.gmra.mxu0 %v601_v36  ;;  %274 = vmatmul.bf16.gmra.mxu2 %v633_v38 }
  0x32   :  { %303 = vmatmul.bf16.gmra.mxu1 %v605_v37  ;;  %323 = vmatmul.bf16.gmra.mxu3 %v637_v39 }
  0x41   :  { %259 = vmatmul.bf16.gmra.mxu0 %v609_v48  ;;  %279 = vmatmul.bf16.gmra.mxu2 %v641_v50 }
  0x42   :  { %308 = vmatmul.bf16.gmra.mxu1 %v613_v49  ;;  %328 = vmatmul.bf16.gmra.mxu3 %v645_v51 }
  0x51   :  { %264 = vmatmul.bf16.gmra.mxu0 %v617_v60  ;;  %284 = vmatmul.bf16.gmra.mxu2 %v649_v62 }
  0x52   :  { %313 = vmatmul.bf16.gmra.mxu1 %v621_v61  ;;  %333 = vmatmul.bf16.gmra.mxu3 %v653_v63 }
  0x9e   :  { %v250_v0 = vpop.f32.mrf.mxu0 }
  0x9f   :  { %v299_v1 = vpop.f32.mrf.mxu1 }
  0xa0   :  { %v945_v23 = vadd.f32 %v299_v1, %v250_v0 }
  0xa2   :  { %v340_v27 = vsel %vm339_vm0, %v945_v23, 0.0 }
  0xa4   :  { %v270_v2 = vpop.f32.mrf.mxu2 }
  0xa5   :  { %v319_v3 = vpop.f32.mrf.mxu3 }
  0xa6   :  { %v252_v4 = vpop.f32.mrf.mxu0  ;;  %v971_v47 = vadd.f32 %v319_v3, %v270_v2  ;;  %v770_v3 = vpop.eup %769 }
  0xa7   :  { %v301_v5 = vpop.f32.mrf.mxu1  ;;  %vm382_vm1 = vweird.f32 %v770_v3 }
  0xa8   :  { %v943_v22 = vadd.f32 %v301_v5, %v252_v4  ;;  %v355_v55 = vsel %vm339_vm0, %v971_v47, 0.0 }
  0xaa   :  { %v341_v25 = vsel %vm339_vm0, %v943_v22, 0.0 }
  0xab   :  { %v342_v32 = vadd.f32 %v341_v25, %v340_v27 }
  0xac   :  { %v272_v6 = vpop.f32.mrf.mxu2 }
  0xad   :  { %v321_v7 = vpop.f32.mrf.mxu3 }
  0xae   :  { %v255_v8 = vpop.f32.mrf.mxu0  ;;  %v975_v52 = vadd.f32 %v321_v7, %v272_v6 }
  0xaf   :  { %v304_v9 = vpop.f32.mrf.mxu1 }
  0xb0   :  { %v947_v24 = vadd.f32 %v304_v9, %v255_v8  ;;  %v357_v59 = vsel %vm339_vm0, %v975_v52, 0.0 }
  0xb2   :  { %v343_v28 = vsel %vm339_vm0, %v947_v24, 0.0 }
  0xb3   :  { %v344_v37 = vadd.f32 %v343_v28, %v342_v32 }
  0xb4   :  { %v275_v10 = vpop.f32.mrf.mxu2 }
  0xb5   :  { %v324_v11 = vpop.f32.mrf.mxu3 }
  0xb6   :  { %v257_v12 = vpop.f32.mrf.mxu0  ;;  %v981_v56 = vadd.f32 %v324_v11, %v275_v10 }
  0xb7   :  { %v306_v13 = vpop.f32.mrf.mxu1 }
  0xb8   :  { %v951_v26 = vadd.f32 %v306_v13, %v257_v12  ;;  %v359_v62 = vsel %vm339_vm0, %v981_v56, 0.0  ;;  %v378_v12 = vmul.f32 128.0, %v770_v3 }
  0xba   :  { %v345_v35 = vsel %vm339_vm0, %v951_v26, 0.0 }
  0xbb   :  { %v346_v40 = vadd.f32 %v345_v35, %v344_v37 }
  0xbc   :  { %v277_v14 = vpop.f32.mrf.mxu2 }
  0xbd   :  { %v326_v15 = vpop.f32.mrf.mxu3 }
  0xbe   :  { %v260_v16 = vpop.f32.mrf.mxu0  ;;  %v985_v60 = vadd.f32 %v326_v15, %v277_v14 }
  0xbf   :  { %v309_v17 = vpop.f32.mrf.mxu1 }
  0xc0   :  { %v957_v29 = vadd.f32 %v309_v17, %v260_v16  ;;  %v361_v1 = vsel %vm339_vm0, %v985_v60, 0.0  ;;  %v379_v17 = vsub.f32 1.0, %v378_v12 }
  0xc2   :  { %v347_v38 = vsel %vm339_vm0, %v957_v29, 0.0 }
  0xc3   :  { %v348_v42 = vadd.f32 %v347_v38, %v346_v40 }
  0xc4   :  { %v280_v18 = vpop.f32.mrf.mxu2 }
  0xc5   :  { %v329_v19 = vpop.f32.mrf.mxu3 }
  0xc6   :  { %v262_v20 = vpop.f32.mrf.mxu0  ;;  %v989_v63 = vadd.f32 %v329_v19, %v280_v18 }
  0xc7   :  { %v311_v21 = vpop.f32.mrf.mxu1 }
  0xc8   :  { %v961_v36 = vadd.f32 %v311_v21, %v262_v20  ;;  %v363_v7 = vsel %vm339_vm0, %v989_v63, 0.0  ;;  %v380_v20 = vmul.f32 %v770_v3, %v379_v17 }
  0xca   :  { %v349_v41 = vsel %vm339_vm0, %v961_v36, 0.0  ;;  %v381_v27 = vadd.f32 %v770_v3, %v380_v20 }
  0xcb   :  { %v350_v44 = vadd.f32 %v349_v41, %v348_v42 }
  0xcc   :  { %v282_v30 = vpop.f32.mrf.mxu2 }
  0xcd   :  { %v331_v31 = vpop.f32.mrf.mxu3 }
  0xce   :  { %v265_v33 = vpop.f32.mrf.mxu0  ;;  %v993_v2 = vadd.f32 %v331_v31, %v282_v30  ;;  %v1007_v31 = vsel %vm382_vm1, %v770_v3, %v381_v27 }
  0xcf   :  { %v314_v34 = vpop.f32.mrf.mxu1 }
  0xd0   :  { %v965_v39 = vadd.f32 %v314_v34, %v265_v33  ;;  %v365_v10 = vsel %vm339_vm0, %v993_v2, 0.0 }
  0xd2   :  { %v351_v43 = vsel %vm339_vm0, %v965_v39, 0.0 }
  0xd3   :  { %v352_v49 = vadd.f32 %v351_v43, %v350_v44 }
  0xd4   :  { %v285_v50 = vpop.f32.mrf.mxu2 }
  0xd5   :  { %v334_v51 = vpop.f32.mrf.mxu3 }
  0xd6   :  { %v267_v45 = vpop.f32.mrf.mxu0  ;;  %v997_v8 = vadd.f32 %v334_v51, %v285_v50 }
  0xd7   :  { %v316_v46 = vpop.f32.mrf.mxu1 }
  0xd8   :  { %v973_v48 = vadd.f32 %v316_v46, %v267_v45  ;;  %v367_v14 = vsel %vm339_vm0, %v997_v8, 0.0 }
  0xda   :  { %v353_v53 = vsel %vm339_vm0, %v973_v48, 0.0 }
  0xdb   :  { %v354_v54 = vadd.f32 %v353_v53, %v352_v49 }
  0xdc   :  { %v287_v5 = vpop.f32.mrf.mxu2 }
  0xdd   :  { %v356_v57 = vadd.f32 %v355_v55, %v354_v54  ;;  %v336_v6 = vpop.f32.mrf.mxu3 }
  0xde   :  { %v1001_v11 = vadd.f32 %v336_v6, %v287_v5 }
  0xdf   :  { %v358_v61 = vadd.f32 %v357_v59, %v356_v57 }
  0xe0   :  { %v369_v16 = vsel %vm339_vm0, %v1001_v11, 0.0 }
  0xe1   :  { %v360_v0 = vadd.f32 %v359_v62, %v358_v61 }
  0xe3   :  { %v362_v4 = vadd.f32 %v361_v1, %v360_v0 }
  0xe5   :  { %v364_v9 = vadd.f32 %v363_v7, %v362_v4 }
  0xe7   :  { %v366_v13 = vadd.f32 %v365_v10, %v364_v9 }
  0xe9   :  { %v368_v15 = vadd.f32 %v367_v14, %v366_v13 }
  0xeb   :  { %v370_v18 = vadd.f32 %v369_v16, %v368_v15 }
  0xed   :  { %v371_v19 = vrot.slane %v370_v18, 4 }
  0xef   :  { %v372_v21 = vadd.f32 %v371_v19, %v370_v18 }
  0xf1   :  { %v373_v25 = vrot.slane %v372_v21, 2 }
  0xf3   :  { %v374_v28 = vadd.f32 %v373_v25, %v372_v21 }
  0xf5   :  { %v375_v30 = vrot.slane %v374_v28, 1 }
  0xf7   :  { %v376_v32 = vadd.f32 %v375_v30, %v374_v28 }
  0xf9   :  { %v384_v33 = vmul.f32 %v1007_v31, %v376_v32 }
  0xfb   :  { %v1011_v34 = vsub.f32 %v945_v23, %v384_v33  ;;  %v1014_v35 = vsub.f32 %v943_v22, %v384_v33  ;;  %v1017_v37 = vsub.f32 %v947_v24, %v384_v33  ;;  %v1020_v38 = vsub.f32 %v951_v26, %v384_v33 }
  0xfc   :  { %v1027_v42 = vsub.f32 %v957_v29, %v384_v33  ;;  %v1032_v22 = vsub.f32 %v961_v36, %v384_v33  ;;  %v1039_v45 = vsub.f32 %v965_v39, %v384_v33  ;;  %v1045_v36 = vsub.f32 %v973_v48, %v384_v33 }
  0xfd   :  { %v401_v40 = vmul.f32 %v1011_v34, %v1011_v34  ;;  %v402_v41 = vmul.f32 %v1014_v35, %v1014_v35  ;;  %v403_v23 = vmul.f32 %v1017_v37, %v1017_v37  ;;  %v404_v24 = vmul.f32 %v1020_v38, %v1020_v38 }
  0xfe   :  { %v405_v29 = vmul.f32 %v1027_v42, %v1027_v42  ;;  %v406_v50 = vmul.f32 %v1032_v22, %v1032_v22  ;;  %v1051_v54 = vsub.f32 %v971_v47, %v384_v33  ;;  %v407_v39 = vmul.f32 %v1039_v45, %v1039_v45 }
  0xff   :  { %v417_v26 = vsel %vm339_vm0, %v401_v40, 0.0  ;;  %v418_v43 = vsel %vm339_vm0, %v402_v41, 0.0  ;;  %v420_v46 = vsel %vm339_vm0, %v403_v23, 0.0  ;;  %v422_v51 = vsel %vm339_vm0, %v404_v24, 0.0 }
 0x100   :  { %v419_v44 = vadd.f32 %v418_v43, %v417_v26  ;;  %v424_v55 = vsel %vm339_vm0, %v405_v29, 0.0  ;;  %v1057_v58 = vsub.f32 %v975_v52, %v384_v33  ;;  %v408_v48 = vmul.f32 %v1045_v36, %v1045_v36 }
 0x101   :  { %v426_v59 = vsel %vm339_vm0, %v406_v50, 0.0  ;;  %v1063_v62 = vsub.f32 %v981_v56, %v384_v33  ;;  %v409_v47 = vmul.f32 %v1051_v54, %v1051_v54  ;;  %v428_v0 = vsel %vm339_vm0, %v407_v39, 0.0 }
 0x102   :  { %v421_v49 = vadd.f32 %v420_v46, %v419_v44  ;;  %v1069_v3 = vsub.f32 %v985_v60, %v384_v33  ;;  %v410_v52 = vmul.f32 %v1057_v58, %v1057_v58  ;;  %v430_v4 = vsel %vm339_vm0, %v408_v48, 0.0 }
 0x103   :  { %v1075_v6 = vsub.f32 %v989_v63, %v384_v33  ;;  %v411_v56 = vmul.f32 %v1063_v62, %v1063_v62  ;;  %v432_v7 = vsel %vm339_vm0, %v409_v47, 0.0  ;;  %v398_v10 = vsub.f32 %v993_v2, %v384_v33 }
 0x104   :  { %v423_v53 = vadd.f32 %v422_v51, %v421_v49  ;;  %v412_v60 = vmul.f32 %v1069_v3, %v1069_v3  ;;  %v434_v12 = vsel %vm339_vm0, %v410_v52, 0.0  ;;  %v399_v14 = vsub.f32 %v997_v8, %v384_v33 }
 0x105   :  { %v413_v63 = vmul.f32 %v1075_v6, %v1075_v6  ;;  %v436_v15 = vsel %vm339_vm0, %v411_v56, 0.0  ;;  %v400_v17 = vsub.f32 %v1001_v11, %v384_v33  ;;  %v414_v18 = vmul.f32 %v398_v10, %v398_v10 }
 0x106   :  { %v425_v57 = vadd.f32 %v424_v55, %v423_v53  ;;  %v438_v19 = vsel %vm339_vm0, %v412_v60, 0.0  ;;  %v415_v20 = vmul.f32 %v399_v14, %v399_v14 }
 0x107   :  { %v440_v21 = vsel %vm339_vm0, %v413_v63, 0.0  ;;  %v416_v27 = vmul.f32 %v400_v17, %v400_v17  ;;  %v442_v28 = vsel %vm339_vm0, %v414_v18, 0.0 }
 0x108   :  { %v427_v61 = vadd.f32 %v426_v59, %v425_v57  ;;  %v444_v30 = vsel %vm339_vm0, %v415_v20, 0.0 }
 0x109   :  { %v446_v40 = vsel %vm339_vm0, %v416_v27, 0.0 }
 0x10a   :  { %v429_v1 = vadd.f32 %v428_v0, %v427_v61 }
 0x10c   :  { %v431_v5 = vadd.f32 %v430_v4, %v429_v1 }
 0x10e   :  { %v433_v9 = vadd.f32 %v432_v7, %v431_v5 }
 0x110   :  { %v435_v13 = vadd.f32 %v434_v12, %v433_v9 }
 0x112   :  { %v437_v16 = vadd.f32 %v436_v15, %v435_v13 }
 0x114   :  { %v439_v2 = vadd.f32 %v438_v19, %v437_v16 }
 0x116   :  { %v441_v25 = vadd.f32 %v440_v21, %v439_v2 }
 0x118   :  { %v443_v8 = vadd.f32 %v442_v28, %v441_v25 }
 0x11a   :  { %v445_v32 = vadd.f32 %v444_v30, %v443_v8 }
 0x11c   :  { %v447_v41 = vadd.f32 %v446_v40, %v445_v32 }
 0x11e   :  { %v448_v23 = vrot.slane %v447_v41, 4 }
 0x120   :  { %v449_v11 = vadd.f32 %v448_v23, %v447_v41 }
 0x122   :  { %v450_v33 = vrot.slane %v449_v11, 2 }
 0x124   :  { %v451_v24 = vadd.f32 %v450_v33, %v449_v11 }
 0x126   :  { %v452_v26 = vrot.slane %v451_v24, 1 }
 0x128   :  { %v453_v43 = vadd.f32 %v452_v26, %v451_v24 }
 0x12a   :  { %v454_v44 = vmul.f32 %v453_v43, %v1007_v31  ;;  %v767_v31 = vld [vmem:[%s1203_s2] ss:$0 sm:$0xff] }
 0x12c   :  { %v455_v29 = vadd.f32 1e-05, %v454_v44 }
 0x12e   :  { %771 = vrsqrt.f32 %v455_v29  ;;  %vm462_vm3 = vweird.f32 %v455_v29 }
 0x134   :  { %v772_v46 = vpop.eup %771 }
 0x135   :  { %v457_v49 = vmul.f32 %v772_v46, %v455_v29  ;;  %vm463_vm2 = vweird.f32 %v772_v46 }
 0x136   :  { %vm464_vm4 = vmor %vm462_vm3, %vm463_vm2 }
 0x137   :  { %v458_v50 = vmul.f32 %v772_v46, %v457_v49 }
 0x139   :  { %v459_v51 = vmul.f32 0.5, %v458_v50 }
 0x13b   :  { %v460_v53 = vsub.f32 1.5, %v459_v51 }
 0x13d   :  { %v461_v39 = vmul.f32 %v772_v46, %v460_v53 }
 0x13f   :  { %v465_v55 = vsel %vm464_vm4, %v772_v46, %v461_v39 }
 0x140   :  { %v466_v57 = vmul.f32 %v465_v55, %v1011_v34  ;;  %v467_v48 = vmul.f32 %v465_v55, %v1014_v35  ;;  %v468_v59 = vmul.f32 %v465_v55, %v1017_v37  ;;  %v469_v61 = vmul.f32 %v465_v55, %v1020_v38  ;;  %v1107_v34 = vld [vmem:[%s1204_s3] ss:$0 sm:$0xff] }
 0x141   :  { %v470_v47 = vmul.f32 %v465_v55, %v1027_v42  ;;  %v471_v0 = vmul.f32 %v465_v55, %v1032_v22  ;;  %v472_v35 = vmul.f32 %v465_v55, %v1039_v45  ;;  %v473_v4 = vmul.f32 %v465_v55, %v1045_v36 }
 0x142   :  { %v486_v1 = vmul.f32 %v767_v31, %v466_v57  ;;  %v487_v52 = vmul.f32 %v767_v31, %v467_v48  ;;  %v488_v5 = vmul.f32 %v767_v31, %v468_v59  ;;  %v474_v37 = vmul.f32 %v465_v55, %v1051_v54 }
 0x143   :  { %v475_v38 = vmul.f32 %v465_v55, %v1057_v58  ;;  %v476_v42 = vmul.f32 %v465_v55, %v1063_v62  ;;  %v489_v56 = vmul.f32 %v767_v31, %v469_v61  ;;  %v477_v22 = vmul.f32 %v465_v55, %v1069_v3 }
 0x144   :  { %v478_v7 = vmul.f32 %v465_v55, %v1075_v6  ;;  %v479_v9 = vmul.f32 %v465_v55, %v398_v10  ;;  %v490_v60 = vmul.f32 %v767_v31, %v470_v47  ;;  %v480_v12 = vmul.f32 %v465_v55, %v399_v14 }
 0x145   :  { %v491_v13 = vmul.f32 %v767_v31, %v471_v0  ;;  %v506_v45 = vadd.f32 %v1107_v34, %v486_v1  ;;  %v507_v36 = vadd.f32 %v1107_v34, %v487_v52  ;;  %v481_v63 = vmul.f32 %v465_v55, %v400_v17 }
 0x146   :  { %v492_v15 = vmul.f32 %v767_v31, %v472_v35  ;;  %v493_v54 = vmul.f32 %v767_v31, %v473_v4  ;;  %v508_v58 = vadd.f32 %v1107_v34, %v488_v5  ;;  %v494_v16 = vmul.f32 %v767_v31, %v474_v37 }
 0x147   :  { %v495_v62 = vmul.f32 %v767_v31, %v475_v38  ;;  %v496_v18 = vmul.f32 %v767_v31, %v476_v42  ;;  %v509_v3 = vadd.f32 %v1107_v34, %v489_v56  ;;  %v497_v19 = vmul.f32 %v767_v31, %v477_v22 }
 0x148   :  { %v498_v6 = vmul.f32 %v767_v31, %v478_v7  ;;  %v499_v10 = vmul.f32 %v767_v31, %v479_v9  ;;  %v510_v14 = vadd.f32 %v1107_v34, %v490_v60  ;;  %v500_v2 = vmul.f32 %v767_v31, %v480_v12 }
 0x149   :  { %v511_v20 = vadd.f32 %v1107_v34, %v491_v13  ;;  %vm522_vm5 = vcmp.ge.f32.partialorder %v506_v45, 0.0  ;;  %vm523_vm6 = vcmp.ge.f32.partialorder %v507_v36, 0.0  ;;  %v512_v17 = vadd.f32 %v1107_v34, %v492_v15 }
 0x14a   :  { %v538_v21 = vmul.f32 0.2, %v506_v45  ;;  %v539_v25 = vmul.f32 0.2, %v507_v36  ;;  %v540_v27 = vmul.f32 0.2, %v508_v58  ;;  %v501_v28 = vmul.f32 %v767_v31, %v481_v63 }
 0x14b   :  { %v513_v8 = vadd.f32 %v1107_v34, %v493_v54  ;;  %vm524_vm7 = vcmp.ge.f32.partialorder %v508_v58, 0.0  ;;  %v541_v30 = vmul.f32 0.2, %v509_v3  ;;  %v514_v32 = vadd.f32 %v1107_v34, %v494_v16 }
 0x14c   :  { %vm525_vm8 = vcmp.ge.f32.partialorder %v509_v3, 0.0  ;;  %v542_v40 = vmul.f32 0.2, %v510_v14  ;;  %v554_v41 = vsel %vm522_vm5, %v506_v45, %v538_v21  ;;  %v515_v23 = vadd.f32 %v1107_v34, %v495_v62 }
 0x14d   :  { %vm526_vm9 = vcmp.ge.f32.partialorder %v510_v14, 0.0  ;;  %v543_v11 = vmul.f32 0.2, %v511_v20  ;;  %v555_v33 = vsel %vm523_vm6, %v507_v36, %v539_v25  ;;  %v516_v24 = vadd.f32 %v1107_v34, %v496_v18  ;;  %570 = vst.msk [vmem:[%s1205_s4] sm:$0xff] %vm339_vm0, %v554_v41 }
 0x14e   :  { %vm527_vm10 = vcmp.ge.f32.partialorder %v511_v20, 0.0  ;;  %v544_v26 = vmul.f32 0.2, %v512_v17  ;;  %v556_v43 = vsel %vm524_vm7, %v508_v58, %v540_v27  ;;  %v517_v44 = vadd.f32 %v1107_v34, %v497_v19  ;;  %571 = vst.msk [vmem:[%s1205_s4 + $0x8] sm:$0xff] %vm339_vm0, %v555_v33 }
 0x14f   :  { %vm528_vm11 = vcmp.ge.f32.partialorder %v512_v17, 0.0  ;;  %v545_v29 = vmul.f32 0.2, %v513_v8  ;;  %v557_v46 = vsel %vm525_vm8, %v509_v3, %v541_v30  ;;  %v518_v49 = vadd.f32 %v1107_v34, %v498_v6  ;;  %572 = vst.msk [vmem:[%s1205_s4 + $0x10] sm:$0xff] %vm339_vm0, %v556_v43 }
 0x150   :  { %vm529_vm12 = vcmp.ge.f32.partialorder %v513_v8, 0.0  ;;  %v546_v50 = vmul.f32 0.2, %v514_v32  ;;  %v558_v51 = vsel %vm526_vm9, %v510_v14, %v542_v40  ;;  %v519_v53 = vadd.f32 %v1107_v34, %v499_v10  ;;  %573 = vst.msk [vmem:[%s1205_s4 + $0x18] sm:$0xff] %vm339_vm0, %v557_v46 }
 0x151   :  { %vm530_vm13 = vcmp.ge.f32.partialorder %v514_v32, 0.0  ;;  %v547_v39 = vmul.f32 0.2, %v515_v23  ;;  %v559_v55 = vsel %vm527_vm10, %v511_v20, %v543_v11  ;;  %v520_v57 = vadd.f32 %v1107_v34, %v500_v2  ;;  %574 = vst.msk [vmem:[%s1205_s4 + $0x20] sm:$0xff] %vm339_vm0, %v558_v51 }
 0x152   :  { %vm531_vm14 = vcmp.ge.f32.partialorder %v515_v23, 0.0  ;;  %v548_v48 = vmul.f32 0.2, %v516_v24  ;;  %v560_v31 = vsel %vm528_vm11, %v512_v17, %v544_v26  ;;  %v521_v59 = vadd.f32 %v1107_v34, %v501_v28  ;;  %575 = vst.msk [vmem:[%s1205_s4 + $0x28] sm:$0xff] %vm339_vm0, %v559_v55 }
 0x153   :  { %vm532_vm15 = vcmp.ge.f32.partialorder %v516_v24, 0.0  ;;  %v549_v61 = vmul.f32 0.2, %v517_v44  ;;  %v561_v47 = vsel %vm529_vm12, %v513_v8, %v545_v29  ;;  %vm533_vm1 = vcmp.ge.f32.partialorder %v517_v44, 0.0  ;;  %576 = vst.msk [vmem:[%s1205_s4 + $0x30] sm:$0xff] %vm339_vm0, %v560_v31 }
 0x154   :  { %v550_v0 = vmul.f32 0.2, %v518_v49  ;;  %v562_v1 = vsel %vm530_vm13, %v514_v32, %v546_v50  ;;  %vm534_vm2 = vcmp.ge.f32.partialorder %v518_v49, 0.0  ;;  %v551_v52 = vmul.f32 0.2, %v519_v53  ;;  %577 = vst.msk [vmem:[%s1205_s4 + $0x38] sm:$0xff] %vm339_vm0, %v561_v47 }
 0x155   :  { %v563_v34 = vsel %vm531_vm14, %v515_v23, %v547_v39  ;;  %vm535_vm3 = vcmp.ge.f32.partialorder %v519_v53, 0.0  ;;  %v552_v35 = vmul.f32 0.2, %v520_v57  ;;  %v564_v4 = vsel %vm532_vm15, %v516_v24, %v548_v48  ;;  %578 = vst.msk [vmem:[%s1205_s4 + $0x40] sm:$0xff] %vm339_vm0, %v562_v1 }
 0x156   :  { %vm536_vm4 = vcmp.ge.f32.partialorder %v520_v57, 0.0  ;;  %v553_v5 = vmul.f32 0.2, %v521_v59  ;;  %v565_v37 = vsel %vm533_vm1, %v517_v44, %v549_v61  ;;  %vm537_vm5 = vcmp.ge.f32.partialorder %v521_v59, 0.0  ;;  %579 = vst.msk [vmem:[%s1205_s4 + $0x48] sm:$0xff] %vm339_vm0, %v563_v34 }
 0x157   :  { %v566_v38 = vsel %vm534_vm2, %v518_v49, %v550_v0  ;;  %v567_v42 = vsel %vm535_vm3, %v519_v53, %v551_v52  ;;  %580 = vst.msk [vmem:[%s1205_s4 + $0x50] sm:$0xff] %vm339_vm0, %v564_v4  ;;  %v568_v56 = vsel %vm536_vm4, %v520_v57, %v552_v35 }
 0x158   :  { %581 = vst.msk [vmem:[%s1205_s4 + $0x58] sm:$0xff] %vm339_vm0, %v565_v37  ;;  %v569_v22 = vsel %vm537_vm5, %v521_v59, %v553_v5 }
 0x159   :  { %582 = vst.msk [vmem:[%s1205_s4 + $0x60] sm:$0xff] %vm339_vm0, %v566_v38 }
 0x15a   :  { %583 = vst.msk [vmem:[%s1205_s4 + $0x68] sm:$0xff] %vm339_vm0, %v567_v42 }
 0x15b   :  { %584 = vst.msk [vmem:[%s1205_s4 + $0x70] sm:$0xff] %vm339_vm0, %v568_v56 }
 0x15c   :  { %585 = vst.msk [vmem:[%s1205_s4 + $0x78] sm:$0xff] %vm339_vm0, %v569_v22 }

// kernel: critic_forward.8
= control target key start
LH: loop header
LB: loop body
LE: loop exit
PB: predicated region body
PF: predicated region fallthrough
CT: control target
= control target key end

     0   :  { %vm397_vm0 = vcmask 523264   ;;  %s899_s1 = inlined_call_operand.vmem [shape: bf16[512,64], index: 1, kind: input, shape index: {}]   ;;  %s900_s0 = inlined_call_operand.vmem [shape: bf16[32,512], index: 0, kind: input, shape index: {}]   ;;  %s901_s2 = inlined_call_operand.vmem [shape: f32[1,64], index: 2, kind: input, shape index: {}]   ;;  %s902_s3 = inlined_call_operand.vmem [shape: f32[1,64], index: 3, kind: input, shape index: {}]   ;;  %s903_s4 = inlined_call_operand.vmem [shape: f32[32,64], index: 4, kind: output, shape index: {}]  }
   0x1   :  { %v667_v0 = vld [vmem:[%s899_s1 + $0x38] sm:$0xff]  ;;  %v666_v4 = vld [vmem:[%s899_s1 + $0x30] sm:$0xff]  ;;  %v665_v8 = vld [vmem:[%s899_s1 + $0x28] sm:$0xff] }
   0x2   :  { %v675_v1 = vld [vmem:[%s899_s1 + $0x78] sm:$0xff]  ;;  %321 = vmatpush.bf16.msra.mxu0 %v667_v0  ;;  %v674_v5 = vld [vmem:[%s899_s1 + $0x70] sm:$0xff]  ;;  %v673_v9 = vld [vmem:[%s899_s1 + $0x68] sm:$0xff] }
   0x3   :  { %v683_v2 = vld [vmem:[%s899_s1 + $0xb8] sm:$0xff]  ;;  %340 = vmatpush.bf16.msra.mxu1 %v675_v1  ;;  %v682_v6 = vld [vmem:[%s899_s1 + $0xb0] sm:$0xff]  ;;  %v681_v10 = vld [vmem:[%s899_s1 + $0xa8] sm:$0xff] }
   0x4   :  { %v691_v3 = vld [vmem:[%s899_s1 + $0xf8] sm:$0xff]  ;;  %359 = vmatpush.bf16.msra.mxu2 %v683_v2  ;;  %v690_v7 = vld [vmem:[%s899_s1 + $0xf0] sm:$0xff]  ;;  %v689_v11 = vld [vmem:[%s899_s1 + $0xe8] sm:$0xff] }
   0x5   :  { %378 = vmatpush.bf16.msra.mxu3 %v691_v3  ;;  %v664_v12 = vld [vmem:[%s899_s1 + $0x20] sm:$0xff]  ;;  %v663_v16 = vld [vmem:[%s899_s1 + $0x18] sm:$0xff]  ;;  %v662_v20 = vld [vmem:[%s899_s1 + $0x10] sm:$0xff] }
   0x6   :  { %322 = vmatpush.bf16.msra.mxu0 %v666_v4  ;;  %v672_v13 = vld [vmem:[%s899_s1 + $0x60] sm:$0xff]  ;;  %v671_v17 = vld [vmem:[%s899_s1 + $0x58] sm:$0xff]  ;;  %v670_v21 = vld [vmem:[%s899_s1 + $0x50] sm:$0xff] }
   0x7   :  { %341 = vmatpush.bf16.msra.mxu1 %v674_v5  ;;  %v680_v14 = vld [vmem:[%s899_s1 + $0xa0] sm:$0xff]  ;;  %v679_v18 = vld [vmem:[%s899_s1 + $0x98] sm:$0xff]  ;;  %v678_v22 = vld [vmem:[%s899_s1 + $0x90] sm:$0xff] }
   0x8   :  { %360 = vmatpush.bf16.msra.mxu2 %v682_v6  ;;  %v688_v15 = vld [vmem:[%s899_s1 + $0xe0] sm:$0xff]  ;;  %v687_v19 = vld [vmem:[%s899_s1 + $0xd8] sm:$0xff]  ;;  %v686_v23 = vld [vmem:[%s899_s1 + $0xd0] sm:$0xff] }
   0x9   :  { %379 = vmatpush.bf16.msra.mxu3 %v690_v7  ;;  %v661_v24 = vld [vmem:[%s899_s1 + $0x8] sm:$0xff]  ;;  %v660_v28 = vld [vmem:[%s899_s1] sm:$0xff]  ;;  %v654_v33 = vld [vmem:[%s900_s0 + $0xc] sm:$0xf0] }
   0xa   :  { %323 = vmatpush.bf16.msra.mxu0 %v665_v8  ;;  %v669_v25 = vld [vmem:[%s899_s1 + $0x48] sm:$0xff]  ;;  %v668_v29 = vld [vmem:[%s899_s1 + $0x40] sm:$0xff]  ;;  %v496_v35 = vld [vmem:[%s900_s0 + $0x10] sm:$0xf0]  ;;  %v699_v8 = vmov 32.0  }
   0xb   :  { %342 = vmatpush.bf16.msra.mxu1 %v673_v9  ;;  %v677_v26 = vld [vmem:[%s899_s1 + $0x88] sm:$0xff]  ;;  %v676_v30 = vld [vmem:[%s899_s1 + $0x80] sm:$0xff]  ;;  %v655_v37 = vld [vmem:[%s900_s0 + $0x14] sm:$0xf0]  ;;  %695 = vrcp.f32 %v699_v8 }
   0xc   :  { %361 = vmatpush.bf16.msra.mxu2 %v681_v10  ;;  %v685_v27 = vld [vmem:[%s899_s1 + $0xc8] sm:$0xff]  ;;  %v684_v31 = vld [vmem:[%s899_s1 + $0xc0] sm:$0xff]  ;;  %v504_v39 = vld [vmem:[%s900_s0 + $0x18] sm:$0xf0] }
   0xd   :  { %380 = vmatpush.bf16.msra.mxu3 %v689_v11  ;;  %v494_v32 = vld [vmem:[%s900_s0] sm:$0xf]  ;;  %v652_v34 = vld [vmem:[%s900_s0 + $0x4] sm:$0xf]  ;;  %v502_v36 = vld [vmem:[%s900_s0 + $0x8] sm:$0xf] }
   0xe   :  { %324 = vmatpush.bf16.msra.mxu0 %v664_v12  ;;  %v653_v38 = vld [vmem:[%s900_s0 + $0xc] sm:$0xf]  ;;  %v495_v40 = vor.u32 %v654_v33, %v494_v32  ;;  %v499_v41 = vor.u32 %v652_v34, %v496_v35  ;;  %v503_v42 = vor.u32 %v655_v37, %v502_v36  ;;  %v510_v44 = vld [vmem:[%s900_s0 + $0x20] sm:$0xf]  ;;  %v658_v45 = vld [vmem:[%s900_s0 + $0x2c] sm:$0xf0] }
   0xf   :  { %343 = vmatpush.bf16.msra.mxu1 %v672_v13  ;;  %v507_v43 = vor.u32 %v653_v38, %v504_v39  ;;  %v656_v46 = vld [vmem:[%s900_s0 + $0x24] sm:$0xf]  ;;  %v512_v47 = vld [vmem:[%s900_s0 + $0x30] sm:$0xf0]  ;;  %v518_v48 = vld [vmem:[%s900_s0 + $0x28] sm:$0xf]  ;;  %v511_v52 = vor.u32 %v658_v45, %v510_v44 }
  0x10   :  { %362 = vmatpush.bf16.msra.mxu2 %v680_v14  ;;  %v659_v49 = vld [vmem:[%s900_s0 + $0x34] sm:$0xf0]  ;;  %v657_v50 = vld [vmem:[%s900_s0 + $0x2c] sm:$0xf]  ;;  %v520_v51 = vld [vmem:[%s900_s0 + $0x38] sm:$0xf0]  ;;  %v515_v53 = vor.u32 %v656_v46, %v512_v47 }
  0x11   :  { %381 = vmatpush.bf16.msra.mxu3 %v688_v15  ;;  %v519_v54 = vor.u32 %v659_v49, %v518_v48  ;;  %v523_v55 = vor.u32 %v657_v50, %v520_v51 }
  0x12   :  { %325 = vmatpush.bf16.msra.mxu0 %v663_v16  ;;  %v696_v16 = vpop.eup %695 }
  0x13   :  { %344 = vmatpush.bf16.msra.mxu1 %v671_v17  ;;  %vm416_vm1 = vweird.f32 %v696_v16 }
  0x14   :  { %363 = vmatpush.bf16.msra.mxu2 %v679_v18 }
  0x15   :  { %382 = vmatpush.bf16.msra.mxu3 %v687_v19 }
  0x16   :  { %326 = vmatpush.bf16.msra.mxu0 %v662_v20 }
  0x17   :  { %345 = vmatpush.bf16.msra.mxu1 %v670_v21 }
  0x18   :  { %364 = vmatpush.bf16.msra.mxu2 %v678_v22 }
  0x19   :  { %383 = vmatpush.bf16.msra.mxu3 %v686_v23  ;;  %v412_v23 = vmul.f32 32.0, %v696_v16 }
  0x1a   :  { %327 = vmatpush.bf16.msra.mxu0 %v661_v24 }
  0x1b   :  { %346 = vmatpush.bf16.msra.mxu1 %v669_v25 }
  0x1c   :  { %365 = vmatpush.bf16.msra.mxu2 %v677_v26 }
  0x1d   :  { %384 = vmatpush.bf16.msra.mxu3 %v685_v27 }
  0x1e   :  { %328 = vmatpush.bf16.msra.mxu0 %v660_v28 }
  0x1f   :  { %347 = vmatpush.bf16.msra.mxu1 %v668_v29  ;;  %v413_v29 = vsub.f32 1.0, %v412_v23 }
  0x20   :  { %366 = vmatpush.bf16.msra.mxu2 %v676_v30 }
  0x21   :  { %385 = vmatpush.bf16.msra.mxu3 %v684_v31  ;;  %329 = vmatmul.bf16.vlgmr.msra.gmra.mxu0 %v495_v40  ;;  %v414_v32 = vmul.f32 %v696_v16, %v413_v29 }
  0x22   :  { %348 = vmatmul.bf16.vlgmr.msra.gmra.mxu1 %v499_v41 }
  0x23   :  { %367 = vmatmul.bf16.vlgmr.msra.gmra.mxu2 %v503_v42  ;;  %v415_v35 = vadd.f32 %v696_v16, %v414_v32 }
  0x24   :  { %386 = vmatmul.bf16.vlgmr.msra.gmra.mxu3 %v507_v43 }
  0x25   :  { %v417_v38 = vsel %vm416_vm1, %v696_v16, %v415_v35 }
  0x31   :  { %334 = vmatmul.bf16.gmra.mxu0 %v511_v52 }
  0x32   :  { %353 = vmatmul.bf16.gmra.mxu1 %v515_v53 }
  0x33   :  { %372 = vmatmul.bf16.gmra.mxu2 %v519_v54 }
  0x34   :  { %391 = vmatmul.bf16.gmra.mxu3 %v523_v55 }
  0x9e   :  { %v330_v56 = vpop.f32.mrf.mxu0 }
  0x9f   :  { %v349_v57 = vpop.f32.mrf.mxu1 }
  0xa0   :  { %v350_v2 = vadd.f32 %v349_v57, %v330_v56 }
  0xa6   :  { %v368_v58 = vpop.f32.mrf.mxu2  ;;  %v332_v60 = vpop.f32.mrf.mxu0 }
  0xa7   :  { %v387_v59 = vpop.f32.mrf.mxu3  ;;  %v351_v61 = vpop.f32.mrf.mxu1  ;;  %v369_v9 = vadd.f32 %v368_v58, %v350_v2 }
  0xa8   :  { %v352_v3 = vadd.f32 %v351_v61, %v332_v60 }
  0xa9   :  { %v388_v14 = vadd.f32 %v387_v59, %v369_v9 }
  0xab   :  { %v398_v20 = vsel %vm397_vm0, %v388_v14, 0.0 }
  0xae   :  { %v370_v62 = vpop.f32.mrf.mxu2  ;;  %v335_v0 = vpop.f32.mrf.mxu0 }
  0xaf   :  { %v389_v63 = vpop.f32.mrf.mxu3  ;;  %v354_v1 = vpop.f32.mrf.mxu1  ;;  %v371_v5 = vadd.f32 %v370_v62, %v352_v3 }
  0xb0   :  { %v355_v4 = vadd.f32 %v354_v1, %v335_v0 }
  0xb1   :  { %v390_v11 = vadd.f32 %v389_v63, %v371_v5 }
  0xb3   :  { %v399_v17 = vsel %vm397_vm0, %v390_v11, 0.0 }
  0xb4   :  { %v400_v24 = vadd.f32 %v399_v17, %v398_v20 }
  0xb6   :  { %v373_v6 = vpop.f32.mrf.mxu2  ;;  %v337_v12 = vpop.f32.mrf.mxu0 }
  0xb7   :  { %v392_v7 = vpop.f32.mrf.mxu3  ;;  %v374_v10 = vadd.f32 %v373_v6, %v355_v4  ;;  %v356_v13 = vpop.f32.mrf.mxu1  ;;  %v693_v6 = vld [vmem:[%s901_s2] ss:$0 sm:$0xff] }
  0xb8   :  { %v357_v18 = vadd.f32 %v356_v13, %v337_v12  ;;  %v694_v12 = vld [vmem:[%s902_s3] ss:$0 sm:$0xff] }
  0xb9   :  { %v393_v15 = vadd.f32 %v392_v7, %v374_v10 }
  0xbb   :  { %v401_v21 = vsel %vm397_vm0, %v393_v15, 0.0 }
  0xbc   :  { %v402_v27 = vadd.f32 %v401_v21, %v400_v24 }
  0xbe   :  { %v375_v19 = vpop.f32.mrf.mxu2 }
  0xbf   :  { %v376_v22 = vadd.f32 %v375_v19, %v357_v18  ;;  %v394_v25 = vpop.f32.mrf.mxu3 }
  0xc1   :  { %v395_v26 = vadd.f32 %v394_v25, %v376_v22 }
  0xc3   :  { %v403_v28 = vsel %vm397_vm0, %v395_v26, 0.0 }
  0xc4   :  { %v404_v30 = vadd.f32 %v403_v28, %v402_v27 }
  0xc6   :  { %v405_v31 = vrot.slane %v404_v30, 4 }
  0xc8   :  { %v406_v33 = vadd.f32 %v405_v31, %v404_v30 }
  0xca   :  { %v407_v34 = vrot.slane %v406_v33, 2 }
  0xcc   :  { %v408_v36 = vadd.f32 %v407_v34, %v406_v33 }
  0xce   :  { %v409_v37 = vrot.slane %v408_v36, 1 }
  0xd0   :  { %v410_v39 = vadd.f32 %v409_v37, %v408_v36 }
  0xd2   :  { %v418_v40 = vmul.f32 %v417_v38, %v410_v39 }
  0xd4   :  { %v419_v41 = vsub.f32 %v388_v14, %v418_v40  ;;  %v420_v42 = vsub.f32 %v390_v11, %v418_v40  ;;  %v421_v43 = vsub.f32 %v393_v15, %v418_v40  ;;  %v422_v44 = vsub.f32 %v395_v26, %v418_v40 }
  0xd6   :  { %v423_v45 = vmul.f32 %v419_v41, %v419_v41  ;;  %v424_v46 = vmul.f32 %v420_v42, %v420_v42  ;;  %v425_v47 = vmul.f32 %v421_v43, %v421_v43  ;;  %v426_v48 = vmul.f32 %v422_v44, %v422_v44 }
  0xd8   :  { %v427_v49 = vsel %vm397_vm0, %v423_v45, 0.0  ;;  %v428_v50 = vsel %vm397_vm0, %v424_v46, 0.0  ;;  %v430_v52 = vsel %vm397_vm0, %v425_v47, 0.0  ;;  %v432_v54 = vsel %vm397_vm0, %v426_v48, 0.0 }
  0xd9   :  { %v429_v51 = vadd.f32 %v428_v50, %v427_v49 }
  0xdb   :  { %v431_v53 = vadd.f32 %v430_v52, %v429_v51 }
  0xdd   :  { %v433_v55 = vadd.f32 %v432_v54, %v431_v53 }
  0xdf   :  { %v434_v56 = vrot.slane %v433_v55, 4 }
  0xe1   :  { %v435_v57 = vadd.f32 %v434_v56, %v433_v55 }
  0xe3   :  { %v436_v58 = vrot.slane %v435_v57, 2 }
  0xe5   :  { %v437_v59 = vadd.f32 %v436_v58, %v435_v57 }
  0xe7   :  { %v438_v60 = vrot.slane %v437_v59, 1 }
  0xe9   :  { %v439_v61 = vadd.f32 %v438_v60, %v437_v59 }
  0xeb   :  { %v440_v62 = vmul.f32 %v439_v61, %v417_v38 }
  0xed   :  { %v441_v63 = vadd.f32 1e-05, %v440_v62 }
  0xef   :  { %697 = vrsqrt.f32 %v441_v63  ;;  %vm448_vm3 = vweird.f32 %v441_v63 }
  0xf5   :  { %v698_v0 = vpop.eup %697 }
  0xf6   :  { %v443_v1 = vmul.f32 %v698_v0, %v441_v63  ;;  %vm449_vm2 = vweird.f32 %v698_v0 }
  0xf7   :  { %vm450_vm4 = vmor %vm448_vm3, %vm449_vm2 }
  0xf8   :  { %v444_v2 = vmul.f32 %v698_v0, %v443_v1 }
  0xfa   :  { %v445_v3 = vmul.f32 0.5, %v444_v2 }
  0xfc   :  { %v446_v4 = vsub.f32 1.5, %v445_v3 }
  0xfe   :  { %v447_v5 = vmul.f32 %v698_v0, %v446_v4 }
 0x100   :  { %v451_v7 = vsel %vm450_vm4, %v698_v0, %v447_v5 }
 0x101   :  { %v452_v8 = vmul.f32 %v451_v7, %v419_v41  ;;  %v453_v9 = vmul.f32 %v451_v7, %v420_v42  ;;  %v454_v10 = vmul.f32 %v451_v7, %v421_v43  ;;  %v455_v11 = vmul.f32 %v451_v7, %v422_v44 }
 0x103   :  { %v460_v13 = vmul.f32 %v693_v6, %v452_v8  ;;  %v461_v14 = vmul.f32 %v693_v6, %v453_v9  ;;  %v462_v15 = vmul.f32 %v693_v6, %v454_v10  ;;  %v463_v16 = vmul.f32 %v693_v6, %v455_v11 }
 0x105   :  { %v468_v17 = vadd.f32 %v694_v12, %v460_v13  ;;  %v469_v18 = vadd.f32 %v694_v12, %v461_v14  ;;  %v470_v19 = vadd.f32 %v694_v12, %v462_v15  ;;  %v471_v20 = vadd.f32 %v694_v12, %v463_v16 }
 0x107   :  { %vm472_vm5 = vcmp.ge.f32.partialorder %v468_v17, 0.0  ;;  %vm473_vm6 = vcmp.ge.f32.partialorder %v469_v18, 0.0  ;;  %vm474_vm7 = vcmp.ge.f32.partialorder %v470_v19, 0.0  ;;  %vm475_vm8 = vcmp.ge.f32.partialorder %v471_v20, 0.0 }
 0x108   :  { %v476_v21 = vmul.f32 0.2, %v468_v17  ;;  %v477_v22 = vmul.f32 0.2, %v469_v18  ;;  %v478_v23 = vmul.f32 0.2, %v470_v19 }
 0x109   :  { %v479_v24 = vmul.f32 0.2, %v471_v20 }
 0x10a   :  { %v480_v25 = vsel %vm472_vm5, %v468_v17, %v476_v21  ;;  %v481_v26 = vsel %vm473_vm6, %v469_v18, %v477_v22  ;;  %v482_v27 = vsel %vm474_vm7, %v470_v19, %v478_v23 }
 0x10b   :  { %v483_v28 = vsel %vm475_vm8, %v471_v20, %v479_v24  ;;  %484 = vst.msk [vmem:[%s903_s4] sm:$0xff] %vm397_vm0, %v480_v25 }
 0x10c   :  { %485 = vst.msk [vmem:[%s903_s4 + $0x8] sm:$0xff] %vm397_vm0, %v481_v26 }
 0x10d   :  { %486 = vst.msk [vmem:[%s903_s4 + $0x10] sm:$0xff] %vm397_vm0, %v482_v27 }
 0x10e   :  { %487 = vst.msk [vmem:[%s903_s4 + $0x18] sm:$0xff] %vm397_vm0, %v483_v28 }

// kernel: critic_forward.9
= control target key start
LH: loop header
LB: loop body
LE: loop exit
PB: predicated region body
PF: predicated region fallthrough
CT: control target
= control target key end

     0   :  { %vm655_vm0 = vcmask 1024   ;;  %s1203_s1 = inlined_call_operand.vmem [shape: bf16[1024,1], index: 1, kind: input, shape index: {}]   ;;  %s1204_s0 = inlined_call_operand.vmem [shape: bf16[2,1024], index: 0, kind: input, shape index: {}]   ;;  %s1205_s2 = inlined_call_operand.<no memory space> [shape: f32[1,1], index: 2, kind: input, shape index: {}]   ;;  %s1206_s3 = inlined_call_operand.vmem [shape: f32[2,1], index: 3, kind: output, shape index: {}]  }
   0x1   :  { %v924_v0 = vld [vmem:[%s1203_s1 + $0x38] sm:$0xff]  ;;  %v923_v4 = vld [vmem:[%s1203_s1 + $0x30] sm:$0xff]  ;;  %v922_v8 = vld [vmem:[%s1203_s1 + $0x28] sm:$0xff]  ;;  %v8_v43 = vstv %s1205_s2 }
   0x2   :  { %v932_v1 = vld [vmem:[%s1203_s1 + $0x78] sm:$0xff]  ;;  %551 = vmatpush.bf16.msra.mxu0 %v924_v0  ;;  %v931_v5 = vld [vmem:[%s1203_s1 + $0x70] sm:$0xff]  ;;  %v930_v9 = vld [vmem:[%s1203_s1 + $0x68] sm:$0xff]  ;;  %9 = vst [vmem:[#allocation2] sm:$0x1] %v8_v43 }
   0x3   :  { %v940_v2 = vld [vmem:[%s1203_s1 + $0xb8] sm:$0xff]  ;;  %564 = vmatpush.bf16.msra.mxu1 %v932_v1  ;;  %v939_v6 = vld [vmem:[%s1203_s1 + $0xb0] sm:$0xff]  ;;  %v938_v10 = vld [vmem:[%s1203_s1 + $0xa8] sm:$0xff] }
   0x4   :  { %v948_v3 = vld [vmem:[%s1203_s1 + $0xf8] sm:$0xff]  ;;  %577 = vmatpush.bf16.msra.mxu2 %v940_v2  ;;  %v947_v7 = vld [vmem:[%s1203_s1 + $0xf0] sm:$0xff]  ;;  %v946_v11 = vld [vmem:[%s1203_s1 + $0xe8] sm:$0xff] }
   0x5   :  { %590 = vmatpush.bf16.msra.mxu3 %v948_v3  ;;  %v921_v12 = vld [vmem:[%s1203_s1 + $0x20] sm:$0xff]  ;;  %v920_v17 = vld [vmem:[%s1203_s1 + $0x18] sm:$0xff]  ;;  %v919_v21 = vld [vmem:[%s1203_s1 + $0x10] sm:$0xff] }
   0x6   :  { %552 = vmatpush.bf16.msra.mxu0 %v923_v4  ;;  %v929_v13 = vld [vmem:[%s1203_s1 + $0x60] sm:$0xff]  ;;  %v928_v18 = vld [vmem:[%s1203_s1 + $0x58] sm:$0xff]  ;;  %v927_v22 = vld [vmem:[%s1203_s1 + $0x50] sm:$0xff] }
   0x7   :  { %565 = vmatpush.bf16.msra.mxu1 %v931_v5  ;;  %v937_v14 = vld [vmem:[%s1203_s1 + $0xa0] sm:$0xff]  ;;  %v936_v19 = vld [vmem:[%s1203_s1 + $0x98] sm:$0xff]  ;;  %v935_v23 = vld [vmem:[%s1203_s1 + $0x90] sm:$0xff] }
   0x8   :  { %578 = vmatpush.bf16.msra.mxu2 %v939_v6  ;;  %v945_v15 = vld [vmem:[%s1203_s1 + $0xe0] sm:$0xff]  ;;  %v944_v20 = vld [vmem:[%s1203_s1 + $0xd8] sm:$0xff]  ;;  %v943_v24 = vld [vmem:[%s1203_s1 + $0xd0] sm:$0xff] }
   0x9   :  { %591 = vmatpush.bf16.msra.mxu3 %v947_v7  ;;  %v16_v16 = vld [vmem:[%s1204_s0] sm:$0xff]  ;;  %v918_v25 = vld [vmem:[%s1203_s1 + $0x8] sm:$0xff]  ;;  %v956_v33 = vld [vmem:[%s1203_s1 + $0x138] sm:$0xff] }
   0xa   :  { %553 = vmatpush.bf16.msra.mxu0 %v922_v8  ;;  %150 = vst [vmem:[#allocation1] ss:$9 sm:$0xff] %v16_v16  ;;  %v926_v26 = vld [vmem:[%s1203_s1 + $0x48] sm:$0xff]  ;;  %v917_v29 = vld [vmem:[%s1203_s1] sm:$0xff]  ;;  %v964_v34 = vld [vmem:[%s1203_s1 + $0x178] sm:$0xff] }
   0xb   :  { %566 = vmatpush.bf16.msra.mxu1 %v930_v9  ;;  %v934_v27 = vld [vmem:[%s1203_s1 + $0x88] sm:$0xff]  ;;  %v925_v30 = vld [vmem:[%s1203_s1 + $0x40] sm:$0xff]  ;;  %v972_v35 = vld [vmem:[%s1203_s1 + $0x1b8] sm:$0xff] }
   0xc   :  { %579 = vmatpush.bf16.msra.mxu2 %v938_v10  ;;  %v942_v28 = vld [vmem:[%s1203_s1 + $0xc8] sm:$0xff]  ;;  %v933_v31 = vld [vmem:[%s1203_s1 + $0x80] sm:$0xff]  ;;  %v980_v36 = vld [vmem:[%s1203_s1 + $0x1f8] sm:$0xff] }
   0xd   :  { %592 = vmatpush.bf16.msra.mxu3 %v946_v11  ;;  %v941_v32 = vld [vmem:[%s1203_s1 + $0xc0] sm:$0xff]  ;;  %v955_v37 = vld [vmem:[%s1203_s1 + $0x130] sm:$0xff]  ;;  %v954_v46 = vld [vmem:[%s1203_s1 + $0x128] sm:$0xff] }
   0xe   :  { %554 = vmatpush.bf16.msra.mxu0 %v921_v12  ;;  %v963_v40 = vld [vmem:[%s1203_s1 + $0x170] sm:$0xff]  ;;  %v962_v47 = vld [vmem:[%s1203_s1 + $0x168] sm:$0xff]  ;;  %v953_v50 = vld [vmem:[%s1203_s1 + $0x120] sm:$0xff] }
   0xf   :  { %567 = vmatpush.bf16.msra.mxu1 %v929_v13  ;;  %v971_v44 = vld [vmem:[%s1203_s1 + $0x1b0] sm:$0xff]  ;;  %v970_v48 = vld [vmem:[%s1203_s1 + $0x1a8] sm:$0xff]  ;;  %v961_v51 = vld [vmem:[%s1203_s1 + $0x160] sm:$0xff] }
  0x10   :  { %580 = vmatpush.bf16.msra.mxu2 %v937_v14  ;;  %v979_v45 = vld [vmem:[%s1203_s1 + $0x1f0] sm:$0xff]  ;;  %v978_v49 = vld [vmem:[%s1203_s1 + $0x1e8] sm:$0xff]  ;;  %v969_v52 = vld [vmem:[%s1203_s1 + $0x1a0] sm:$0xff] }
  0x11   :  { %593 = vmatpush.bf16.msra.mxu3 %v945_v15  ;;  %v153_v38 = vld [vmem:[#allocation1 + $0x12] sm:$0xff]  ;;  %v154_v39 = vld [vmem:[#allocation1 + $0x1b] sm:$0xff]  ;;  %v152_v42 = vld [vmem:[#allocation1 + $0x9] sm:$0xff] }
  0x12   :  { %555 = vmatpush.bf16.msra.mxu0 %v920_v17  ;;  %v151_v41 = vld [vmem:[#allocation1] sm:$0xff]  ;;  %v952_v54 = vld [vmem:[%s1203_s1 + $0x118] sm:$0xff]  ;;  %v951_v58 = vld [vmem:[%s1203_s1 + $0x110] sm:$0xff] }
  0x13   :  { %568 = vmatpush.bf16.msra.mxu1 %v928_v18  ;;  %v977_v53 = vld [vmem:[%s1203_s1 + $0x1e0] sm:$0xff]  ;;  %v960_v55 = vld [vmem:[%s1203_s1 + $0x158] sm:$0xff]  ;;  %v959_v59 = vld [vmem:[%s1203_s1 + $0x150] sm:$0xff] }
  0x14   :  { %581 = vmatpush.bf16.msra.mxu2 %v936_v19  ;;  %v968_v56 = vld [vmem:[%s1203_s1 + $0x198] sm:$0xff]  ;;  %v967_v60 = vld [vmem:[%s1203_s1 + $0x190] sm:$0xff]  ;;  %v950_v62 = vld [vmem:[%s1203_s1 + $0x108] sm:$0xff] }
  0x15   :  { %594 = vmatpush.bf16.msra.mxu3 %v944_v20  ;;  %v976_v57 = vld [vmem:[%s1203_s1 + $0x1d8] sm:$0xff]  ;;  %v975_v61 = vld [vmem:[%s1203_s1 + $0x1d0] sm:$0xff]  ;;  %v958_v63 = vld [vmem:[%s1203_s1 + $0x148] sm:$0xff] }
  0x16   :  { %556 = vmatpush.bf16.msra.mxu0 %v919_v21  ;;  %v966_v0 = vld [vmem:[%s1203_s1 + $0x188] sm:$0xff]  ;;  %v949_v2 = vld [vmem:[%s1203_s1 + $0x100] sm:$0xff]  ;;  %v157_v8 = vld [vmem:[#allocation1 + $0x36] sm:$0xff] }
  0x17   :  { %569 = vmatpush.bf16.msra.mxu1 %v927_v22  ;;  %v974_v1 = vld [vmem:[%s1203_s1 + $0x1c8] sm:$0xff]  ;;  %v957_v3 = vld [vmem:[%s1203_s1 + $0x140] sm:$0xff] }
  0x18   :  { %582 = vmatpush.bf16.msra.mxu2 %v935_v23  ;;  %v965_v4 = vld [vmem:[%s1203_s1 + $0x180] sm:$0xff]  ;;  %v156_v7 = vld [vmem:[#allocation1 + $0x2d] sm:$0xff]  ;;  %v981_v16 = vld [vmem:[#allocation2] ss:$0 sm:$0xff] }
  0x19   :  { %595 = vmatpush.bf16.msra.mxu3 %v943_v24  ;;  %v973_v5 = vld [vmem:[%s1203_s1 + $0x1c0] sm:$0xff] }
  0x1a   :  { %557 = vmatpush.bf16.msra.mxu0 %v918_v25  ;;  %v155_v6 = vld [vmem:[#allocation1 + $0x24] sm:$0xff] }
  0x1b   :  { %570 = vmatpush.bf16.msra.mxu1 %v926_v26  ;;  %v158_v9 = vld [vmem:[#allocation1 + $0x3f] sm:$0xff] }
  0x1c   :  { %583 = vmatpush.bf16.msra.mxu2 %v934_v27 }
  0x1d   :  { %596 = vmatpush.bf16.msra.mxu3 %v942_v28 }
  0x1e   :  { %558 = vmatpush.bf16.msra.mxu0 %v917_v29 }
  0x1f   :  { %571 = vmatpush.bf16.msra.mxu1 %v925_v30 }
  0x20   :  { %584 = vmatpush.bf16.msra.mxu2 %v933_v31 }
  0x21   :  { %597 = vmatpush.bf16.msra.mxu3 %v941_v32  ;;  %559 = vmatmul.bf16.vlgmr.msra.gmra.mxu0 %v151_v41 }
  0x22   :  { %603 = vmatpush.bf16.msrb.mxu0 %v956_v33  ;;  %572 = vmatmul.bf16.vlgmr.msra.gmra.mxu1 %v152_v42 }
  0x23   :  { %616 = vmatpush.bf16.msrb.mxu1 %v964_v34  ;;  %585 = vmatmul.bf16.vlgmr.msra.gmra.mxu2 %v153_v38 }
  0x24   :  { %629 = vmatpush.bf16.msrb.mxu2 %v972_v35  ;;  %598 = vmatmul.bf16.vlgmr.msra.gmra.mxu3 %v154_v39 }
  0x25   :  { %642 = vmatpush.bf16.msrb.mxu3 %v980_v36 }
  0x26   :  { %604 = vmatpush.bf16.msrb.mxu0 %v955_v37 }
  0x27   :  { %617 = vmatpush.bf16.msrb.mxu1 %v963_v40 }
  0x28   :  { %630 = vmatpush.bf16.msrb.mxu2 %v971_v44 }
  0x29   :  { %643 = vmatpush.bf16.msrb.mxu3 %v979_v45 }
  0x2a   :  { %605 = vmatpush.bf16.msrb.mxu0 %v954_v46 }
  0x2b   :  { %618 = vmatpush.bf16.msrb.mxu1 %v962_v47 }
  0x2c   :  { %631 = vmatpush.bf16.msrb.mxu2 %v970_v48 }
  0x2d   :  { %644 = vmatpush.bf16.msrb.mxu3 %v978_v49 }
  0x2e   :  { %606 = vmatpush.bf16.msrb.mxu0 %v953_v50 }
  0x2f   :  { %619 = vmatpush.bf16.msrb.mxu1 %v961_v51 }
  0x30   :  { %632 = vmatpush.bf16.msrb.mxu2 %v969_v52 }
  0x31   :  { %645 = vmatpush.bf16.msrb.mxu3 %v977_v53 }
  0x32   :  { %607 = vmatpush.bf16.msrb.mxu0 %v952_v54 }
  0x33   :  { %620 = vmatpush.bf16.msrb.mxu1 %v960_v55 }
  0x34   :  { %633 = vmatpush.bf16.msrb.mxu2 %v968_v56 }
  0x35   :  { %646 = vmatpush.bf16.msrb.mxu3 %v976_v57 }
  0x36   :  { %608 = vmatpush.bf16.msrb.mxu0 %v951_v58 }
  0x37   :  { %621 = vmatpush.bf16.msrb.mxu1 %v959_v59 }
  0x38   :  { %634 = vmatpush.bf16.msrb.mxu2 %v967_v60 }
  0x39   :  { %647 = vmatpush.bf16.msrb.mxu3 %v975_v61 }
  0x3a   :  { %609 = vmatpush.bf16.msrb.mxu0 %v950_v62 }
  0x3b   :  { %622 = vmatpush.bf16.msrb.mxu1 %v958_v63 }
  0x3c   :  { %635 = vmatpush.bf16.msrb.mxu2 %v966_v0 }
  0x3d   :  { %648 = vmatpush.bf16.msrb.mxu3 %v974_v1 }
  0x3e   :  { %610 = vmatpush.bf16.msrb.mxu0 %v949_v2 }
  0x3f   :  { %623 = vmatpush.bf16.msrb.mxu1 %v957_v3 }
  0x40   :  { %636 = vmatpush.bf16.msrb.mxu2 %v965_v4 }
  0x41   :  { %649 = vmatpush.bf16.msrb.mxu3 %v973_v5  ;;  %611 = vmatmul.bf16.vlgmr.msrb.gmra.mxu0 %v155_v6 }
  0x42   :  { %624 = vmatmul.bf16.vlgmr.msrb.gmra.mxu1 %v156_v7 }
  0x43   :  { %637 = vmatmul.bf16.vlgmr.msrb.gmra.mxu2 %v157_v8 }
  0x44   :  { %650 = vmatmul.bf16.vlgmr.msrb.gmra.mxu3 %v158_v9 }
  0x9e   :  { %v560_v10 = vpop.f32.mrf.mxu0 }
  0x9f   :  { %v573_v11 = vpop.f32.mrf.mxu1  ;;  %v561_v19 = vadd.f32 %v981_v16, %v560_v10 }
  0xa1   :  { %v574_v20 = vadd.f32 %v573_v11, %v561_v19 }
  0xa6   :  { %v586_v12 = vpop.f32.mrf.mxu2  ;;  %v562_v14 = vpop.f32.mrf.mxu0 }
  0xa7   :  { %v599_v13 = vpop.f32.mrf.mxu3  ;;  %v575_v15 = vpop.f32.mrf.mxu1  ;;  %v587_v21 = vadd.f32 %v586_v12, %v574_v20 }
  0xa9   :  { %v600_v22 = vadd.f32 %v599_v13, %v587_v21 }
  0xae   :  { %v588_v17 = vpop.f32.mrf.mxu2 }
  0xaf   :  { %v601_v18 = vpop.f32.mrf.mxu3 }
  0xbe   :  { %v612_v23 = vpop.f32.mrf.mxu0 }
  0xbf   :  { %v625_v24 = vpop.f32.mrf.mxu1  ;;  %v613_v25 = vadd.f32 %v612_v23, %v600_v22 }
  0xc1   :  { %v626_v26 = vadd.f32 %v625_v24, %v613_v25 }
  0xc6   :  { %v638_v27 = vpop.f32.mrf.mxu2  ;;  %v614_v30 = vpop.f32.mrf.mxu0 }
  0xc7   :  { %v651_v28 = vpop.f32.mrf.mxu3  ;;  %v639_v29 = vadd.f32 %v638_v27, %v626_v26  ;;  %v627_v31 = vpop.f32.mrf.mxu1 }
  0xc9   :  { %v652_v32 = vadd.f32 %v651_v28, %v639_v29 }
  0xcb   :  { %656 = vst.msk [vmem:[%s1206_s3] sm:$0x3] %vm655_vm0, %v652_v32 }
  0xce   :  { %v640_v33 = vpop.f32.mrf.mxu2 }
  0xcf   :  { %v653_v34 = vpop.f32.mrf.mxu3 }

</bundles_post_ra>
